<compile_context>
chip_gen: v5e
topology: v5e:2x2
jax: 0.10.0
libtpu: 0.0.40
codegen_flags: <defaults>
</compile_context>

<pallas_src>
import functools

import jax
import jax.numpy as jnp
from jax.experimental import pallas as pl
from jax.experimental.pallas import tpu as pltpu


def _round_up(n, m):
    return (n + m - 1) // m * m


def _cdiv(a, b):
    return (a + b - 1) // b


def _mlp_kernel(x_ref,
                w1_ref, b1_ref,
                w2_ref, b2_ref,
                w3_ref, b3_ref,
                w4_ref, b4_ref,
                out_ref):
    """Fused 4-layer MLP on one batch tile.

    x arrives f32 and is cast to bf16 in-kernel (VPU work hidden under the MXU).
    All matmuls are bf16 x bf16 with f32 accumulation; bias add + ReLU in f32.
    """
    x = x_ref[...].astype(jnp.bfloat16)

    h = jnp.dot(x, w1_ref[...], preferred_element_type=jnp.float32) + b1_ref[...]
    h = jnp.maximum(h, 0.0).astype(jnp.bfloat16)

    h = jnp.dot(h, w2_ref[...], preferred_element_type=jnp.float32) + b2_ref[...]
    h = jnp.maximum(h, 0.0).astype(jnp.bfloat16)

    h = jnp.dot(h, w3_ref[...], preferred_element_type=jnp.float32) + b3_ref[...]
    h = jnp.maximum(h, 0.0).astype(jnp.bfloat16)

    h = jnp.dot(h, w4_ref[...], preferred_element_type=jnp.float32) + b4_ref[...]
    out_ref[...] = h.astype(out_ref.dtype)


def prepare_params(params):
    """One-time (init/load-time) weight preparation, hoisted out of the jitted forward.

    * transpose torch-style (out, in) weights to (in, out)
    * cast weights to bf16 (native MXU input dtype); biases stay f32 as (1, out)
    * pad fc4's output columns to a multiple of 128 so the final matmul and the output
      store are lane-dense (padding is stripped in mlp_forward)

    Returns (prepared_param_dict, num_classes).
    """
    num_classes = params["w4"].shape[0]
    ncls_pad = _round_up(num_classes, 128)

    prep = {}
    for idx in (1, 2, 3, 4):
        w = jnp.asarray(params[f"w{idx}"]).T.astype(jnp.bfloat16)
        b = jnp.asarray(params[f"b{idx}"]).reshape(1, -1).astype(jnp.float32)
        if idx == 4 and ncls_pad != num_classes:
            w = jnp.pad(w, ((0, 0), (0, ncls_pad - num_classes)))
            b = jnp.pad(b, ((0, 0), (0, ncls_pad - num_classes)))
        prep[f"w{idx}"] = w
        prep[f"b{idx}"] = b
    return prep, num_classes


def _choose_tile(B, batch_tile):
    """Pick the batch tile (multiple of 8) and the padded batch size."""
    b8 = _round_up(max(B, 1), 8)
    if batch_tile is None:
        # Large batches get 512-row tiles (step overhead amortized); otherwise 256.
        batch_tile = 512 if B >= 2048 else 256
    tb = min(batch_tile, b8)
    steps = _cdiv(b8, tb)
    if steps < 4 and b8 >= 4 * 128:
        # v7x megacore: >= 4 grid steps (>= 2 per TensorCore) so each core's input DMAs
        # overlap the next step's compute, as long as tiles stay >= 128 rows.
        tb = _round_up(_cdiv(b8, 4), 8)
    elif steps < 2 and b8 >= 16:
        # Give both TensorCores work when the batch allows at least two 8-row tiles.
        tb = _round_up(_cdiv(b8, 2), 8)
    B_pad = _round_up(B, tb)
    return tb, B_pad


@functools.partial(jax.jit, static_argnames=("num_classes", "batch_tile"))
def mlp_forward(x_nchw, prep, num_classes, batch_tile=None):
    """MLP forward pass.

    x_nchw:      (B, C, H, W) float32 (NCHW, like PyTorch)
    prep:        output of prepare_params() — pre-transposed bf16 weights, f32 biases,
                 fc4 padded to 128 lanes (done once, outside this jitted function)
    num_classes: true number of output classes (static)
    batch_tile:  optional override of the batch tile fed to the MXU
    """
    B = x_nchw.shape[0]
    # Flatten (layout no-op for NCHW); keep f32 — the bf16 cast happens inside the kernel.
    x = x_nchw.reshape(B, -1)
    in_dim = x.shape[1]

    w1, b1 = prep["w1"], prep["b1"]
    w2, b2 = prep["w2"], prep["b2"]
    w3, b3 = prep["w3"], prep["b3"]
    w4, b4 = prep["w4"], prep["b4"]
    ncls_pad = w4.shape[1]

    tb, B_pad = _choose_tile(B, batch_tile)
    if B_pad != B:
        x = jnp.pad(x, ((0, B_pad - B), (0, 0)))
    grid = (B_pad // tb,)

    d0, d1 = w1.shape
    d2, d3 = w2.shape[1], w3.shape[1]
    d4 = ncls_pad
    mm_flops = d0 * d1 + d1 * d2 + d2 * d3 + d3 * d4
    cost = pl.CostEstimate(
        flops=2 * B_pad * mm_flops,
        transcendentals=0,
        bytes_accessed=(2 * mm_flops                      # bf16 weights
                        + 4 * (d1 + d2 + d3 + d4)          # f32 biases
                        + 4 * B_pad * d0                   # f32 x
                        + 4 * B_pad * d4),                 # f32 out
    )

    const = lambda i: (0, 0)  # weights/biases are grid-invariant: resident in VMEM

    def resident_spec(shape):
        # Never re-DMA'd across the grid -> single buffer (saves ~3.5 MiB of VMEM).
        return pl.BlockSpec(shape, const, pipeline_mode=pl.Buffered(1))

    out = pl.pallas_call(
        _mlp_kernel,
        out_shape=jax.ShapeDtypeStruct((B_pad, ncls_pad), jnp.float32),
        grid_spec=pl.GridSpec(
            grid=grid,
            in_specs=[
                pl.BlockSpec((tb, in_dim), lambda i: (i, 0)),
                resident_spec(w1.shape), resident_spec(b1.shape),
                resident_spec(w2.shape), resident_spec(b2.shape),
                resident_spec(w3.shape), resident_spec(b3.shape),
                resident_spec(w4.shape), resident_spec(b4.shape),
            ],
            out_specs=pl.BlockSpec((tb, ncls_pad), lambda i: (i, 0)),
        ),
        compiler_params=pltpu.CompilerParams(
            dimension_semantics=("parallel",),
            vmem_limit_bytes=48 * 1024 * 1024,  # <= v7x's 64 MiB physical VMEM
        ),
        cost_estimate=cost,
    )(x, w1, b1, w2, b2, w3, b3, w4, b4)

    # Strip batch padding and output-lane padding.
    return out[:B, :num_classes]


def init_params(key, input_channels, input_size, num_classes):
    """Deterministic init mimicking torch.nn.Linear default (uniform +-1/sqrt(fan_in))."""
    in_dim = input_channels * input_size * input_size
    dims = [(1024, in_dim), (512, 1024), (256, 512), (num_classes, 256)]
    params = {}
    for idx, (out_f, in_f) in enumerate(dims, start=1):
        key, kw, kb = jax.random.split(key, 3)
        bound = 1.0 / jnp.sqrt(jnp.float32(in_f))
        params[f"w{idx}"] = jax.random.uniform(
            kw, (out_f, in_f), jnp.float32, -bound, bound)
        params[f"b{idx}"] = jax.random.uniform(
            kb, (out_f,), jnp.float32, -bound, bound)
    return params


def mlp_reference_bf16(x_nchw, params):
    """Pure-JAX reference using the same bf16-operand / f32-accumulate scheme as the kernel."""
    x = x_nchw.reshape(x_nchw.shape[0], -1).astype(jnp.bfloat16)

    def layer(h, w, b, relu=True):
        y = jnp.dot(h, w.T.astype(jnp.bfloat16),
                    preferred_element_type=jnp.float32) + b.astype(jnp.float32)
        return jnp.maximum(y, 0.0).astype(jnp.bfloat16) if relu else y

    h = layer(x, params["w1"], params["b1"])
    h = layer(h, params["w2"], params["b2"])
    h = layer(h, params["w3"], params["b3"])
    return layer(h, params["w4"], params["b4"], relu=False)


def mlp_reference_f32(x_nchw, params):
    """Full-f32 reference matching the PyTorch module exactly."""
    x = x_nchw.reshape(x_nchw.shape[0], -1)
    h = jnp.maximum(x @ params["w1"].T + params["b1"], 0.0)
    h = jnp.maximum(h @ params["w2"].T + params["b2"], 0.0)
    h = jnp.maximum(h @ params["w3"].T + params["b3"], 0.0)
    return h @ params["w4"].T + params["b4"]


if __name__ == "__main__":
    # Small shapes consistent with the module: MLP(num_classes=10, input_channels=4, input_size=16)
    B, C, H, W = 2, 4, 16, 16
    num_classes = 10

    key = jax.random.PRNGKey(0)
    key, kx = jax.random.split(key)
    x = jax.random.normal(kx, (B, C, H, W), dtype=jnp.float32)

    params = init_params(key, input_channels=C, input_size=H, num_classes=num_classes)
    prep, ncls = prepare_params(params)   # one-time weight prep (hoisted out of the forward)

    out = jax.block_until_ready(mlp_forward(x, prep, num_classes=ncls))
    assert out.shape == (B, ncls), out.shape

    # Exactness check against a reference using the same bf16-operand quantization.
    ref_bf16 = mlp_reference_bf16(x, params)
    assert jnp.allclose(out, ref_bf16, atol=2e-3, rtol=2e-3), "mismatch vs bf16-matched reference"

    # Sanity check against the pure-f32 PyTorch-semantics reference (loose: bf16 operands).
    ref_f32 = mlp_reference_f32(x, params)
    assert jnp.allclose(out, ref_f32, atol=5e-2, rtol=0.0), "mismatch vs f32 reference"

    print("KERNEL_OK")
</pallas_src>

<mosaic_0001>
module attributes {stable_mosaic.version = 11 : i64} {
  func.func @_mlp_kernel(%arg0: i32, %arg1: memref<8x1024xf32, #tpu.memory_space<vmem>>, %arg2: memref<1024x1024xbf16, #tpu.memory_space<vmem>>, %arg3: memref<1x1024xf32, #tpu.memory_space<vmem>>, %arg4: memref<1024x512xbf16, #tpu.memory_space<vmem>>, %arg5: memref<1x512xf32, #tpu.memory_space<vmem>>, %arg6: memref<512x256xbf16, #tpu.memory_space<vmem>>, %arg7: memref<1x256xf32, #tpu.memory_space<vmem>>, %arg8: memref<256x128xbf16, #tpu.memory_space<vmem>>, %arg9: memref<1x128xf32, #tpu.memory_space<vmem>>, %arg10: memref<8x128xf32, #tpu.memory_space<vmem>>) attributes {dimension_semantics = [#tpu.dimension_semantics<parallel>], iteration_bounds = array<i64: 1>, scalar_prefetch = 0 : i64, scratch_operands = 0 : i64, tpu.core_type = #tpu.core_type<tc>, window_params = [{transform_indices = @transform_0, window_bounds = array<i64: 8, 1024>}, {pipeline_mode = #tpu.pipeline_mode<synchronous>, transform_indices = @transform_1, window_bounds = array<i64: 1024, 1024>}, {pipeline_mode = #tpu.pipeline_mode<synchronous>, transform_indices = @transform_2, window_bounds = array<i64: 1, 1024>}, {pipeline_mode = #tpu.pipeline_mode<synchronous>, transform_indices = @transform_3, window_bounds = array<i64: 1024, 512>}, {pipeline_mode = #tpu.pipeline_mode<synchronous>, transform_indices = @transform_4, window_bounds = array<i64: 1, 512>}, {pipeline_mode = #tpu.pipeline_mode<synchronous>, transform_indices = @transform_5, window_bounds = array<i64: 512, 256>}, {pipeline_mode = #tpu.pipeline_mode<synchronous>, transform_indices = @transform_6, window_bounds = array<i64: 1, 256>}, {pipeline_mode = #tpu.pipeline_mode<synchronous>, transform_indices = @transform_7, window_bounds = array<i64: 256, 128>}, {pipeline_mode = #tpu.pipeline_mode<synchronous>, transform_indices = @transform_8, window_bounds = array<i64: 1, 128>}, {transform_indices = @transform_9, window_bounds = array<i64: 8, 128>}]} {
    %c0 = arith.constant 0 : index
    %c0_0 = arith.constant 0 : index
    %0 = vector.load %arg1[%c0, %c0_0] : memref<8x1024xf32, #tpu.memory_space<vmem>>, vector<8x1024xf32>
    %1 = arith.truncf %0 : vector<8x1024xf32> to vector<8x1024xbf16>
    %c0_1 = arith.constant 0 : index
    %c0_2 = arith.constant 0 : index
    %2 = vector.load %arg2[%c0_1, %c0_2] : memref<1024x1024xbf16, #tpu.memory_space<vmem>>, vector<1024x1024xbf16>
    %cst = arith.constant dense<0.000000e+00> : vector<8x1024xf32>
    %3 = tpu.matmul %1, %2, %cst {dimension_numbers = #tpu.dot_dimension_numbers<[1], [0], [0], [1], [0, 0, 1, 1], [], []>} : vector<8x1024xbf16>, vector<1024x1024xbf16>, vector<8x1024xf32> -> vector<8x1024xf32>
    %c0_3 = arith.constant 0 : index
    %c0_4 = arith.constant 0 : index
    %4 = vector.load %arg3[%c0_3, %c0_4] : memref<1x1024xf32, #tpu.memory_space<vmem>>, vector<1x1024xf32>
    %5 = vector.broadcast %4 : vector<1x1024xf32> to vector<8x1024xf32>
    %6 = arith.addf %3, %5 : vector<8x1024xf32>
    %cst_5 = arith.constant 0.000000e+00 : f32
    %7 = vector.broadcast %cst_5 : f32 to vector<8x1024xf32>
    %8 = arith.maximumf %6, %7 : vector<8x1024xf32>
    %9 = arith.truncf %8 : vector<8x1024xf32> to vector<8x1024xbf16>
    %c0_6 = arith.constant 0 : index
    %c0_7 = arith.constant 0 : index
    %10 = vector.load %arg4[%c0_6, %c0_7] : memref<1024x512xbf16, #tpu.memory_space<vmem>>, vector<1024x512xbf16>
    %cst_8 = arith.constant dense<0.000000e+00> : vector<8x512xf32>
    %11 = tpu.matmul %9, %10, %cst_8 {dimension_numbers = #tpu.dot_dimension_numbers<[1], [0], [0], [1], [0, 0, 1, 1], [], []>} : vector<8x1024xbf16>, vector<1024x512xbf16>, vector<8x512xf32> -> vector<8x512xf32>
    %c0_9 = arith.constant 0 : index
    %c0_10 = arith.constant 0 : index
    %12 = vector.load %arg5[%c0_9, %c0_10] : memref<1x512xf32, #tpu.memory_space<vmem>>, vector<1x512xf32>
    %13 = vector.broadcast %12 : vector<1x512xf32> to vector<8x512xf32>
    %14 = arith.addf %11, %13 : vector<8x512xf32>
    %cst_11 = arith.constant 0.000000e+00 : f32
    %15 = vector.broadcast %cst_11 : f32 to vector<8x512xf32>
    %16 = arith.maximumf %14, %15 : vector<8x512xf32>
    %17 = arith.truncf %16 : vector<8x512xf32> to vector<8x512xbf16>
    %c0_12 = arith.constant 0 : index
    %c0_13 = arith.constant 0 : index
    %18 = vector.load %arg6[%c0_12, %c0_13] : memref<512x256xbf16, #tpu.memory_space<vmem>>, vector<512x256xbf16>
    %cst_14 = arith.constant dense<0.000000e+00> : vector<8x256xf32>
    %19 = tpu.matmul %17, %18, %cst_14 {dimension_numbers = #tpu.dot_dimension_numbers<[1], [0], [0], [1], [0, 0, 1, 1], [], []>} : vector<8x512xbf16>, vector<512x256xbf16>, vector<8x256xf32> -> vector<8x256xf32>
    %c0_15 = arith.constant 0 : index
    %c0_16 = arith.constant 0 : index
    %20 = vector.load %arg7[%c0_15, %c0_16] : memref<1x256xf32, #tpu.memory_space<vmem>>, vector<1x256xf32>
    %21 = vector.broadcast %20 : vector<1x256xf32> to vector<8x256xf32>
    %22 = arith.addf %19, %21 : vector<8x256xf32>
    %cst_17 = arith.constant 0.000000e+00 : f32
    %23 = vector.broadcast %cst_17 : f32 to vector<8x256xf32>
    %24 = arith.maximumf %22, %23 : vector<8x256xf32>
    %25 = arith.truncf %24 : vector<8x256xf32> to vector<8x256xbf16>
    %c0_18 = arith.constant 0 : index
    %c0_19 = arith.constant 0 : index
    %26 = vector.load %arg8[%c0_18, %c0_19] : memref<256x128xbf16, #tpu.memory_space<vmem>>, vector<256x128xbf16>
    %cst_20 = arith.constant dense<0.000000e+00> : vector<8x128xf32>
    %27 = tpu.matmul %25, %26, %cst_20 {dimension_numbers = #tpu.dot_dimension_numbers<[1], [0], [0], [1], [0, 0, 1, 1], [], []>} : vector<8x256xbf16>, vector<256x128xbf16>, vector<8x128xf32> -> vector<8x128xf32>
    %c0_21 = arith.constant 0 : index
    %c0_22 = arith.constant 0 : index
    %28 = vector.load %arg9[%c0_21, %c0_22] : memref<1x128xf32, #tpu.memory_space<vmem>>, vector<1x128xf32>
    %29 = vector.broadcast %28 : vector<1x128xf32> to vector<8x128xf32>
    %30 = arith.addf %27, %29 : vector<8x128xf32>
    %c0_23 = arith.constant 0 : index
    %c0_24 = arith.constant 0 : index
    %31 = vector.load %arg10[%c0_23, %c0_24] : memref<8x128xf32, #tpu.memory_space<vmem>>, vector<8x128xf32>
    tpu.vector_store %arg10[%c0_23, %c0_24], %30 {strides = array<i32>} : memref<8x128xf32, #tpu.memory_space<vmem>>, vector<8x128xf32>,
    return
  }
  func.func @transform_0(%arg0: i32) -> (i32, i32) {
    %c0_i32 = arith.constant 0 : i32
    %c0_i32_0 = arith.constant 0 : i32
    return %arg0, %c0_i32 : i32, i32
  }
  func.func @transform_1(%arg0: i32) -> (i32, i32) {
    %c0_i32 = arith.constant 0 : i32
    %c0_i32_0 = arith.constant 0 : i32
    %c0_i32_1 = arith.constant 0 : i32
    return %c0_i32, %c0_i32_0 : i32, i32
  }
  func.func @transform_2(%arg0: i32) -> (i32, i32) {
    %c0_i32 = arith.constant 0 : i32
    %c0_i32_0 = arith.constant 0 : i32
    %c0_i32_1 = arith.constant 0 : i32
    return %c0_i32, %c0_i32_0 : i32, i32
  }
  func.func @transform_3(%arg0: i32) -> (i32, i32) {
    %c0_i32 = arith.constant 0 : i32
    %c0_i32_0 = arith.constant 0 : i32
    %c0_i32_1 = arith.constant 0 : i32
    return %c0_i32, %c0_i32_0 : i32, i32
  }
  func.func @transform_4(%arg0: i32) -> (i32, i32) {
    %c0_i32 = arith.constant 0 : i32
    %c0_i32_0 = arith.constant 0 : i32
    %c0_i32_1 = arith.constant 0 : i32
    return %c0_i32, %c0_i32_0 : i32, i32
  }
  func.func @transform_5(%arg0: i32) -> (i32, i32) {
    %c0_i32 = arith.constant 0 : i32
    %c0_i32_0 = arith.constant 0 : i32
    %c0_i32_1 = arith.constant 0 : i32
    return %c0_i32, %c0_i32_0 : i32, i32
  }
  func.func @transform_6(%arg0: i32) -> (i32, i32) {
    %c0_i32 = arith.constant 0 : i32
    %c0_i32_0 = arith.constant 0 : i32
    %c0_i32_1 = arith.constant 0 : i32
    return %c0_i32, %c0_i32_0 : i32, i32
  }
  func.func @transform_7(%arg0: i32) -> (i32, i32) {
    %c0_i32 = arith.constant 0 : i32
    %c0_i32_0 = arith.constant 0 : i32
    %c0_i32_1 = arith.constant 0 : i32
    return %c0_i32, %c0_i32_0 : i32, i32
  }
  func.func @transform_8(%arg0: i32) -> (i32, i32) {
    %c0_i32 = arith.constant 0 : i32
    %c0_i32_0 = arith.constant 0 : i32
    %c0_i32_1 = arith.constant 0 : i32
    return %c0_i32, %c0_i32_0 : i32, i32
  }
  func.func @transform_9(%arg0: i32) -> (i32, i32) {
    %c0_i32 = arith.constant 0 : i32
    %c0_i32_0 = arith.constant 0 : i32
    return %arg0, %c0_i32 : i32, i32
  }
}

</mosaic_0001>

<bundles_post_ra>
// kernel: mlp_forward.1
= control target key start
LH: loop header
LB: loop body
LE: loop exit
PB: predicated region body
PF: predicated region fallthrough
CT: control target
= control target key end

     0   :  { %14 = vsyncpa [#allocation3], 0  ;;  %s11591_s0 = inlined_call_operand.vmem [shape: f32[8,1024], index: 0, kind: input, shape index: {}]   ;;  %s11592_s1 = inlined_call_operand.hbm [shape: bf16[1024,1024], index: 1, kind: input, shape index: {}]   ;;  %s11593_s2 = inlined_call_operand.hbm [shape: f32[1,1024], index: 2, kind: input, shape index: {}]   ;;  %s11594_s3 = inlined_call_operand.hbm [shape: bf16[1024,512], index: 3, kind: input, shape index: {}]   ;;  %s11595_s4 = inlined_call_operand.hbm [shape: f32[1,512], index: 4, kind: input, shape index: {}]   ;;  %s11596_s5 = inlined_call_operand.hbm [shape: bf16[512,256], index: 5, kind: input, shape index: {}]   ;;  %s11597_s6 = inlined_call_operand.hbm [shape: f32[1,256], index: 6, kind: input, shape index: {}]   ;;  %s11598_s7 = inlined_call_operand.hbm [shape: bf16[256,128], index: 7, kind: input, shape index: {}]   ;;  %s11599_s8 = inlined_call_operand.hbm [shape: f32[1,128], index: 8, kind: input, shape index: {}]   ;;  %s11600_s9 = inlined_call_operand.vmem [shape: f32[8,128], index: 9, kind: output, shape index: {}]  }
   0x1   :  { %15 = vsyncpa [#allocation5], 0 }
   0x2   :  { %16 = vsyncpa [#allocation8], 0 }
   0x3   :  { %17 = vsyncpa [#allocation11], 0  ;;  %s39_s11 = sshll.u32 %s11593_s2, 4  ;;  %s40_s11 = int_to_ptr.hbm [resolvable:$true] %s39_s11 }
   0x4   :  { %18 = vsyncpa [#allocation14], 0  ;;  %s11202_s12 = smov [#allocation4]   ;;  %s63_s16 = sshll.u32 %s11595_s4, 4  ;;  %s64_s16 = int_to_ptr.hbm [resolvable:$true] %s63_s16 }
   0x5   :  { %s41_s13 = sshll.u32 %s11202_s12, 4  ;;  %s11203_s17 = smov [#allocation7]   ;;  %s42_s13 = int_to_ptr.vmem [resolvable:$true] %s41_s13 }
   0x6   :  { %44 = dma.hbm_to_vmem [thread:$0]  %s40_s11, 128, %s42_s13, [#allocation5]  }
   0x7   :  { %s65_s18 = sshll.u32 %s11203_s17, 4  ;;  %s87_s21 = sshll.u32 %s11597_s6, 4  ;;  %s66_s18 = int_to_ptr.vmem [resolvable:$true] %s65_s18  ;;  %s88_s21 = int_to_ptr.hbm [resolvable:$true] %s87_s21 }
   0x8   :  { %68 = dma.hbm_to_vmem [thread:$0]  %s64_s16, 64, %s66_s18, [#allocation8]  }
   0x9   :  { %s25_s23 = sshll.u32 %s11592_s1, 4  ;;  %s11204_s24 = smov [#allocation10]   ;;  %s26_s23 = int_to_ptr.hbm [resolvable:$true] %s25_s23 }
   0xa   :  { %s89_s25 = sshll.u32 %s11204_s24, 4  ;;  %s11205_s4 = smov [#allocation2]   ;;  %s90_s25 = int_to_ptr.vmem [resolvable:$true] %s89_s25 }
   0xb   :  { %92 = dma.hbm_to_vmem [thread:$0]  %s88_s21, 32, %s90_s25, [#allocation11]  }
   0xc   :  { %s27_s26 = sshll.u32 %s11205_s4, 4  ;;  %s11206_s27 = smov 512   ;;  %s28_s26 = int_to_ptr.vmem [resolvable:$true] %s27_s26 }
   0xd   :  { %s11207_s28 = smov 32   ;;  %s49_s30 = sshll.u32 %s11594_s3, 4  ;;  %s50_s30 = int_to_ptr.hbm [resolvable:$true] %s49_s30 }
   0xe   :  { %33 = dma.hbm_to_vmem [thread:$0]  %s26_s23, 65536, %s28_s26, [#allocation3], %s11206_s27, %s11206_s27, %s11207_s28  }
   0xf   :  { %s11208_s10 = smov [#allocation6]   ;;  %s73_s13 = sshll.u32 %s11596_s5, 4  ;;  %s74_s13 = int_to_ptr.hbm [resolvable:$true] %s73_s13 }
  0x10   :  { %s51_s11 = sshll.u32 %s11208_s10, 4  ;;  %s11209_s14 = smov 256   ;;  %s52_s11 = int_to_ptr.vmem [resolvable:$true] %s51_s11 }
  0x11   :  { %s11210_s15 = smov 16   ;;  %s11211_s16 = smov [#allocation9]  }
  0x12   :  { %57 = dma.hbm_to_vmem [thread:$0]  %s50_s30, 32768, %s52_s11, [#allocation5], %s11209_s14, %s11209_s14, %s11210_s15  }
  0x13   :  { %s75_s17 = sshll.u32 %s11211_s16, 4  ;;  %s11212_s18 = smov 128   ;;  %s76_s17 = int_to_ptr.vmem [resolvable:$true] %s75_s17 }
  0x14   :  { %s11213_s19 = smov 8   ;;  %s97_s21 = sshll.u32 %s11598_s7, 4  ;;  %s98_s21 = int_to_ptr.hbm [resolvable:$true] %s97_s21 }
  0x15   :  { %81 = dma.hbm_to_vmem [thread:$0]  %s74_s13, 8192, %s76_s17, [#allocation8], %s11212_s18, %s11212_s18, %s11213_s19  }
  0x16   :  { %s11214_s2 = smov [#allocation12]   ;;  %s111_s24 = sshll.u32 %s11599_s8, 4  ;;  %s112_s24 = int_to_ptr.hbm [resolvable:$true] %s111_s24 }
  0x17   :  { %s99_s22 = sshll.u32 %s11214_s2, 4  ;;  %s11215_s25 = smov 64   ;;  %s100_s22 = int_to_ptr.vmem [resolvable:$true] %s99_s22 }
  0x18   :  { %s11216_s4 = smov 4   ;;  %s11217_s26 = smov [#allocation13]  }
  0x19   :  { %105 = dma.hbm_to_vmem [thread:$0]  %s98_s21, 2048, %s100_s22, [#allocation11], %s11215_s25, %s11215_s25, %s11216_s4  }
  0x1a   :  { %s113_s27 = sshll.u32 %s11217_s26, 4  ;;  %s114_s27 = int_to_ptr.vmem [resolvable:$true] %s113_s27 }
  0x1b   :  { %116 = dma.hbm_to_vmem [thread:$0]  %s112_s24, 16, %s114_s27, [#allocation14]  }
  0x1c   :  { %11192 = dma.done.wait [#allocation3], 65536  }
  0x1d   :  { %11193 = vsyncadd [#allocation3], 4294901760 }
  0x1e   :  { %11194 = dma.done.wait [#allocation5], 32896  }
  0x1f   :  { %11195 = vsyncadd [#allocation5], 4294934400 }
  0x20   :  { %11196 = dma.done.wait [#allocation8], 8256  }
  0x21   :  { %11197 = vsyncadd [#allocation8], 4294959040 }
  0x22   :  { %11198 = dma.done.wait [#allocation11], 2080  }
  0x23   :  { %11199 = vsyncadd [#allocation11], 4294965216 }
  0x24   :  { %11200 = dma.done.wait [#allocation14], 16  }
  0x25   :  { %11201 = vsyncadd [#allocation14], 4294967280  ;;  %v6965_v0 = vld [vmem:[#allocation2 + $0x1c0] sm:$0xf] }
  0x26   :  { %v10191_v1 = vld [vmem:[#allocation2 + $0x1dc] sm:$0xf0] }
  0x27   :  { %v7221_v2 = vld [vmem:[#allocation2 + $0x3c0] sm:$0xf]  ;;  %v6966_v3 = vor.u32 %v10191_v1, %v6965_v0 }
  0x28   :  { %v10255_v4 = vld [vmem:[#allocation2 + $0x3dc] sm:$0xf0] }
  0x29   :  { %v7477_v5 = vld [vmem:[#allocation2 + $0x5c0] sm:$0xf]  ;;  %v7222_v7 = vor.u32 %v10255_v4, %v7221_v2  ;;  %3255 = vmatpush.bf16.msra.mxu0 %v6966_v3 }
  0x2a   :  { %v10319_v6 = vld [vmem:[#allocation2 + $0x5dc] sm:$0xf0] }
  0x2b   :  { %v7478_v8 = vor.u32 %v10319_v6, %v7477_v5  ;;  %v7733_v9 = vld [vmem:[#allocation2 + $0x7c0] sm:$0xf]  ;;  %3268 = vmatpush.bf16.msra.mxu1 %v7222_v7 }
  0x2c   :  { %v10383_v10 = vld [vmem:[#allocation2 + $0x7dc] sm:$0xf0] }
  0x2d   :  { %v6933_v11 = vld [vmem:[#allocation2 + $0x180] sm:$0xf]  ;;  %v7734_v12 = vor.u32 %v10383_v10, %v7733_v9  ;;  %3281 = vmatpush.bf16.msra.mxu2 %v7478_v8 }
  0x2e   :  { %v10183_v13 = vld [vmem:[#allocation2 + $0x19c] sm:$0xf0] }
  0x2f   :  { %v7189_v14 = vld [vmem:[#allocation2 + $0x380] sm:$0xf]  ;;  %v6934_v16 = vor.u32 %v10183_v13, %v6933_v11  ;;  %3294 = vmatpush.bf16.msra.mxu3 %v7734_v12 }
  0x30   :  { %v10247_v15 = vld [vmem:[#allocation2 + $0x39c] sm:$0xf0] }
  0x31   :  { %v7190_v17 = vor.u32 %v10247_v15, %v7189_v14  ;;  %v7445_v18 = vld [vmem:[#allocation2 + $0x580] sm:$0xf]  ;;  %3256 = vmatpush.bf16.msra.mxu0 %v6934_v16 }
  0x32   :  { %v10311_v19 = vld [vmem:[#allocation2 + $0x59c] sm:$0xf0] }
  0x33   :  { %v7701_v20 = vld [vmem:[#allocation2 + $0x780] sm:$0xf]  ;;  %v7446_v21 = vor.u32 %v10311_v19, %v7445_v18  ;;  %3269 = vmatpush.bf16.msra.mxu1 %v7190_v17 }
  0x34   :  { %v10375_v22 = vld [vmem:[#allocation2 + $0x79c] sm:$0xf0] }
  0x35   :  { %v6901_v23 = vld [vmem:[#allocation2 + $0x140] sm:$0xf]  ;;  %v7702_v25 = vor.u32 %v10375_v22, %v7701_v20  ;;  %3282 = vmatpush.bf16.msra.mxu2 %v7446_v21 }
  0x36   :  { %v10175_v24 = vld [vmem:[#allocation2 + $0x15c] sm:$0xf0] }
  0x37   :  { %v7157_v26 = vld [vmem:[#allocation2 + $0x340] sm:$0xf]  ;;  %v6902_v29 = vor.u32 %v10175_v24, %v6901_v23  ;;  %3295 = vmatpush.bf16.msra.mxu3 %v7702_v25 }
  0x38   :  { %v10239_v27 = vld [vmem:[#allocation2 + $0x35c] sm:$0xf0] }
  0x39   :  { %v7413_v28 = vld [vmem:[#allocation2 + $0x540] sm:$0xf]  ;;  %v7158_v33 = vor.u32 %v10239_v27, %v7157_v26  ;;  %3257 = vmatpush.bf16.msra.mxu0 %v6902_v29 }
  0x3a   :  { %v10303_v30 = vld [vmem:[#allocation2 + $0x55c] sm:$0xf0] }
  0x3b   :  { %v7669_v31 = vld [vmem:[#allocation2 + $0x740] sm:$0xf]  ;;  %v7414_v34 = vor.u32 %v10303_v30, %v7413_v28  ;;  %3270 = vmatpush.bf16.msra.mxu1 %v7158_v33 }
  0x3c   :  { %v10367_v32 = vld [vmem:[#allocation2 + $0x75c] sm:$0xf0] }
  0x3d   :  { %v6869_v35 = vld [vmem:[#allocation2 + $0x100] sm:$0xf]  ;;  %v7670_v38 = vor.u32 %v10367_v32, %v7669_v31  ;;  %3283 = vmatpush.bf16.msra.mxu2 %v7414_v34 }
  0x3e   :  { %v10167_v36 = vld [vmem:[#allocation2 + $0x11c] sm:$0xf0] }
  0x3f   :  { %v7125_v37 = vld [vmem:[#allocation2 + $0x300] sm:$0xf]  ;;  %v6870_v44 = vor.u32 %v10167_v36, %v6869_v35  ;;  %3296 = vmatpush.bf16.msra.mxu3 %v7670_v38 }
  0x40   :  { %v10231_v39 = vld [vmem:[#allocation2 + $0x31c] sm:$0xf0] }
  0x41   :  { %v7381_v40 = vld [vmem:[#allocation2 + $0x500] sm:$0xf]  ;;  %v7126_v45 = vor.u32 %v10231_v39, %v7125_v37  ;;  %3258 = vmatpush.bf16.msra.mxu0 %v6870_v44 }
  0x42   :  { %v10295_v41 = vld [vmem:[#allocation2 + $0x51c] sm:$0xf0] }
  0x43   :  { %v7637_v42 = vld [vmem:[#allocation2 + $0x700] sm:$0xf]  ;;  %v7382_v46 = vor.u32 %v10295_v41, %v7381_v40  ;;  %3271 = vmatpush.bf16.msra.mxu1 %v7126_v45 }
  0x44   :  { %v10359_v43 = vld [vmem:[#allocation2 + $0x71c] sm:$0xf0] }
  0x45   :  { %v6837_v47 = vld [vmem:[#allocation2 + $0xc0] sm:$0xf]  ;;  %v7638_v50 = vor.u32 %v10359_v43, %v7637_v42  ;;  %3284 = vmatpush.bf16.msra.mxu2 %v7382_v46 }
  0x46   :  { %v10159_v48 = vld [vmem:[#allocation2 + $0xdc] sm:$0xf0] }
  0x47   :  { %v7093_v49 = vld [vmem:[#allocation2 + $0x2c0] sm:$0xf]  ;;  %v6838_v56 = vor.u32 %v10159_v48, %v6837_v47  ;;  %3297 = vmatpush.bf16.msra.mxu3 %v7638_v50 }
  0x48   :  { %v10223_v51 = vld [vmem:[#allocation2 + $0x2dc] sm:$0xf0] }
  0x49   :  { %v7349_v52 = vld [vmem:[#allocation2 + $0x4c0] sm:$0xf]  ;;  %v7094_v57 = vor.u32 %v10223_v51, %v7093_v49  ;;  %3259 = vmatpush.bf16.msra.mxu0 %v6838_v56 }
  0x4a   :  { %v10287_v53 = vld [vmem:[#allocation2 + $0x4dc] sm:$0xf0] }
  0x4b   :  { %v7605_v54 = vld [vmem:[#allocation2 + $0x6c0] sm:$0xf]  ;;  %v7350_v58 = vor.u32 %v10287_v53, %v7349_v52  ;;  %3272 = vmatpush.bf16.msra.mxu1 %v7094_v57 }
  0x4c   :  { %v10351_v55 = vld [vmem:[#allocation2 + $0x6dc] sm:$0xf0] }
  0x4d   :  { %v6805_v59 = vld [vmem:[#allocation2 + $0x80] sm:$0xf]  ;;  %v7606_v62 = vor.u32 %v10351_v55, %v7605_v54  ;;  %3285 = vmatpush.bf16.msra.mxu2 %v7350_v58 }
  0x4e   :  { %v10151_v60 = vld [vmem:[#allocation2 + $0x9c] sm:$0xf0] }
  0x4f   :  { %v7061_v61 = vld [vmem:[#allocation2 + $0x280] sm:$0xf]  ;;  %v6806_v4 = vor.u32 %v10151_v60, %v6805_v59  ;;  %3298 = vmatpush.bf16.msra.mxu3 %v7606_v62 }
  0x50   :  { %v10215_v63 = vld [vmem:[#allocation2 + $0x29c] sm:$0xf0] }
  0x51   :  { %v7317_v0 = vld [vmem:[#allocation2 + $0x480] sm:$0xf]  ;;  %v7062_v5 = vor.u32 %v10215_v63, %v7061_v61  ;;  %3260 = vmatpush.bf16.msra.mxu0 %v6806_v4 }
  0x52   :  { %v10279_v1 = vld [vmem:[#allocation2 + $0x49c] sm:$0xf0] }
  0x53   :  { %v7573_v2 = vld [vmem:[#allocation2 + $0x680] sm:$0xf]  ;;  %v7318_v6 = vor.u32 %v10279_v1, %v7317_v0  ;;  %3273 = vmatpush.bf16.msra.mxu1 %v7062_v5 }
  0x54   :  { %v10343_v3 = vld [vmem:[#allocation2 + $0x69c] sm:$0xf0] }
  0x55   :  { %v6773_v7 = vld [vmem:[#allocation2 + $0x40] sm:$0xf]  ;;  %v7574_v10 = vor.u32 %v10343_v3, %v7573_v2  ;;  %3286 = vmatpush.bf16.msra.mxu2 %v7318_v6  ;;  %v151_v3 = vld [vmem:[%s11591_s0 + $0x10] sm:$0xff] }
  0x56   :  { %v10143_v8 = vld [vmem:[#allocation2 + $0x5c] sm:$0xf0] }
  0x57   :  { %v7029_v9 = vld [vmem:[#allocation2 + $0x240] sm:$0xf]  ;;  %v6774_v16 = vor.u32 %v10143_v8, %v6773_v7  ;;  %3299 = vmatpush.bf16.msra.mxu3 %v7574_v10  ;;  %v11298_v8 = vpack.c.bf16 %v151_v3, %v151_v3  ;;  %v152_v10 = vld [vmem:[%s11591_s0 + $0x18] sm:$0xff] }
  0x58   :  { %v10207_v11 = vld [vmem:[#allocation2 + $0x25c] sm:$0xf0] }
  0x59   :  { %v7285_v12 = vld [vmem:[#allocation2 + $0x440] sm:$0xf]  ;;  %v7030_v19 = vor.u32 %v10207_v11, %v7029_v9  ;;  %3261 = vmatpush.bf16.msra.mxu0 %v6774_v16 }
  0x5a   :  { %v10271_v13 = vld [vmem:[#allocation2 + $0x45c] sm:$0xf0] }
  0x5b   :  { %v7541_v14 = vld [vmem:[#allocation2 + $0x640] sm:$0xf]  ;;  %v7286_v20 = vor.u32 %v10271_v13, %v7285_v12  ;;  %3274 = vmatpush.bf16.msra.mxu1 %v7030_v19  ;;  %v150_v19 = vld [vmem:[%s11591_s0 + $0x8] sm:$0xff] }
  0x5c   :  { %v10335_v15 = vld [vmem:[#allocation2 + $0x65c] sm:$0xf0] }
  0x5d   :  { %v6741_v17 = vld [vmem:[#allocation2] sm:$0xf]  ;;  %v7542_v24 = vor.u32 %v10335_v15, %v7541_v14  ;;  %3287 = vmatpush.bf16.msra.mxu2 %v7286_v20  ;;  %v11305_v15 = vpack.c.bf16 %v152_v10, %v152_v10  ;;  %v7223_v10 = vld [vmem:[#allocation2 + $0x3e0] sm:$0xf0] }
  0x5e   :  { %v10135_v18 = vld [vmem:[#allocation2 + $0x1c] sm:$0xf0] }
  0x5f   :  { %v6997_v21 = vld [vmem:[#allocation2 + $0x200] sm:$0xf]  ;;  %v6742_v31 = vor.u32 %v10135_v18, %v6741_v17  ;;  %3300 = vmatpush.bf16.msra.mxu3 %v7542_v24 }
  0x60   :  { %v10199_v22 = vld [vmem:[#allocation2 + $0x21c] sm:$0xf0] }
  0x61   :  { %v7253_v23 = vld [vmem:[#allocation2 + $0x400] sm:$0xf]  ;;  %v6998_v35 = vor.u32 %v10199_v22, %v6997_v21  ;;  %3262 = vmatpush.bf16.msra.mxu0 %v6742_v31 }
  0x62   :  { %v10263_v25 = vld [vmem:[#allocation2 + $0x41c] sm:$0xf0] }
  0x63   :  { %v7509_v26 = vld [vmem:[#allocation2 + $0x600] sm:$0xf]  ;;  %v7254_v36 = vor.u32 %v10263_v25, %v7253_v23  ;;  %3275 = vmatpush.bf16.msra.mxu1 %v6998_v35  ;;  %v11313_v25 = vpack.c.bf16 %v150_v19, %v150_v19 }
  0x64   :  { %v10327_v27 = vld [vmem:[#allocation2 + $0x61c] sm:$0xf0] }
  0x65   :  { %v7989_v28 = vld [vmem:[#allocation2 + $0x9c0] sm:$0xf]  ;;  %v7510_v39 = vor.u32 %v10327_v27, %v7509_v26  ;;  %3288 = vmatpush.bf16.msra.mxu2 %v7254_v36 }
  0x66   :  { %v10447_v29 = vld [vmem:[#allocation2 + $0x9dc] sm:$0xf0]  ;;  %3276 = vmatmul.bf16.vlgmr.msra.gmra.mxu1 %v11313_v25 }
  0x67   :  { %v8245_v30 = vld [vmem:[#allocation2 + $0xbc0] sm:$0xf]  ;;  %v7990_v40 = vor.u32 %v10447_v29, %v7989_v28  ;;  %3301 = vmatpush.bf16.msra.mxu3 %v7510_v39 }
  0x68   :  { %v10511_v32 = vld [vmem:[#allocation2 + $0xbdc] sm:$0xf0]  ;;  %3289 = vmatmul.bf16.vlgmr.msra.gmra.mxu2 %v11298_v8 }
  0x69   :  { %v8501_v33 = vld [vmem:[#allocation2 + $0xdc0] sm:$0xf]  ;;  %v8246_v41 = vor.u32 %v10511_v32, %v8245_v30  ;;  %3307 = vmatpush.bf16.msrb.mxu0 %v7990_v40 }
  0x6a   :  { %v10575_v34 = vld [vmem:[#allocation2 + $0xddc] sm:$0xf0]  ;;  %3302 = vmatmul.bf16.vlgmr.msra.gmra.mxu3 %v11305_v15 }
  0x6b   :  { %v8757_v37 = vld [vmem:[#allocation2 + $0xfc0] sm:$0xf]  ;;  %v8502_v42 = vor.u32 %v10575_v34, %v8501_v33  ;;  %3320 = vmatpush.bf16.msrb.mxu1 %v8246_v41 }
  0x6c   :  { %v10639_v38 = vld [vmem:[#allocation2 + $0xfdc] sm:$0xf0] }
  0x6d   :  { %v7957_v43 = vld [vmem:[#allocation2 + $0x980] sm:$0xf]  ;;  %v8758_v46 = vor.u32 %v10639_v38, %v8757_v37  ;;  %3333 = vmatpush.bf16.msrb.mxu2 %v8502_v42 }
  0x6e   :  { %v10439_v44 = vld [vmem:[#allocation2 + $0x99c] sm:$0xf0] }
  0x6f   :  { %v8213_v45 = vld [vmem:[#allocation2 + $0xb80] sm:$0xf]  ;;  %v7958_v52 = vor.u32 %v10439_v44, %v7957_v43  ;;  %3346 = vmatpush.bf16.msrb.mxu3 %v8758_v46 }
  0x70   :  { %v10503_v47 = vld [vmem:[#allocation2 + $0xb9c] sm:$0xf0] }
  0x71   :  { %v8469_v48 = vld [vmem:[#allocation2 + $0xd80] sm:$0xf]  ;;  %v8214_v54 = vor.u32 %v10503_v47, %v8213_v45  ;;  %3308 = vmatpush.bf16.msrb.mxu0 %v7958_v52 }
  0x72   :  { %v10567_v49 = vld [vmem:[#allocation2 + $0xd9c] sm:$0xf0] }
  0x73   :  { %v8725_v50 = vld [vmem:[#allocation2 + $0xf80] sm:$0xf]  ;;  %v8470_v55 = vor.u32 %v10567_v49, %v8469_v48  ;;  %3321 = vmatpush.bf16.msrb.mxu1 %v8214_v54 }
  0x74   :  { %v10631_v51 = vld [vmem:[#allocation2 + $0xf9c] sm:$0xf0] }
  0x75   :  { %v7925_v53 = vld [vmem:[#allocation2 + $0x940] sm:$0xf]  ;;  %v8726_v59 = vor.u32 %v10631_v51, %v8725_v50  ;;  %3334 = vmatpush.bf16.msrb.mxu2 %v8470_v55 }
  0x76   :  { %v10431_v56 = vld [vmem:[#allocation2 + $0x95c] sm:$0xf0] }
  0x77   :  { %v8181_v57 = vld [vmem:[#allocation2 + $0xb40] sm:$0xf]  ;;  %v7926_v0 = vor.u32 %v10431_v56, %v7925_v53  ;;  %3347 = vmatpush.bf16.msrb.mxu3 %v8726_v59 }
  0x78   :  { %v10495_v58 = vld [vmem:[#allocation2 + $0xb5c] sm:$0xf0] }
  0x79   :  { %v8437_v60 = vld [vmem:[#allocation2 + $0xd40] sm:$0xf]  ;;  %v8182_v1 = vor.u32 %v10495_v58, %v8181_v57  ;;  %3309 = vmatpush.bf16.msrb.mxu0 %v7926_v0 }
  0x7a   :  { %v10559_v61 = vld [vmem:[#allocation2 + $0xd5c] sm:$0xf0] }
  0x7b   :  { %v8693_v62 = vld [vmem:[#allocation2 + $0xf40] sm:$0xf]  ;;  %v8438_v5 = vor.u32 %v10559_v61, %v8437_v60  ;;  %3322 = vmatpush.bf16.msrb.mxu1 %v8182_v1 }
  0x7c   :  { %v10623_v63 = vld [vmem:[#allocation2 + $0xf5c] sm:$0xf0] }
  0x7d   :  { %v7893_v2 = vld [vmem:[#allocation2 + $0x900] sm:$0xf]  ;;  %v8694_v11 = vor.u32 %v10623_v63, %v8693_v62  ;;  %3335 = vmatpush.bf16.msrb.mxu2 %v8438_v5  ;;  %v6967_v5 = vld [vmem:[#allocation2 + $0x1e0] sm:$0xf0] }
  0x7e   :  { %v149_v4 = vld [vmem:[%s11591_s0] sm:$0xff] }
  0x7f   :  { %v10423_v6 = vld [vmem:[#allocation2 + $0x91c] sm:$0xf0]  ;;  %v11300_v9 = vpack.c.bf16 %v149_v4, %v149_v4  ;;  %3348 = vmatpush.bf16.msrb.mxu3 %v8694_v11  ;;  %v10187_v4 = vld [vmem:[#allocation2 + $0x1c4] sm:$0xf] }
  0x80   :  { %v8149_v7 = vld [vmem:[#allocation2 + $0xb00] sm:$0xf]  ;;  %v7894_v18 = vor.u32 %v10423_v6, %v7893_v2  ;;  %v10251_v6 = vld [vmem:[#allocation2 + $0x3c4] sm:$0xf] }
  0x81   :  { %v10487_v12 = vld [vmem:[#allocation2 + $0xb1c] sm:$0xf0]  ;;  %3263 = vmatmul.bf16.vlgmr.msra.gmra.mxu0 %v11300_v9  ;;  %v10315_v11 = vld [vmem:[#allocation2 + $0x5c4] sm:$0xf] }
  0x82   :  { %v8405_v13 = vld [vmem:[#allocation2 + $0xd00] sm:$0xf]  ;;  %v8150_v20 = vor.u32 %v10487_v12, %v8149_v7  ;;  %3310 = vmatpush.bf16.msrb.mxu0 %v7894_v18  ;;  %v7479_v12 = vld [vmem:[#allocation2 + $0x5e0] sm:$0xf0]  ;;  %v155_v18 = vld [vmem:[%s11591_s0 + $0x30] sm:$0xff] }
  0x83   :  { %v10551_v14 = vld [vmem:[#allocation2 + $0xd1c] sm:$0xf0] }
  0x84   :  { %v8661_v16 = vld [vmem:[#allocation2 + $0xf00] sm:$0xf]  ;;  %v8406_v21 = vor.u32 %v10551_v14, %v8405_v13  ;;  %3323 = vmatpush.bf16.msrb.mxu1 %v8150_v20  ;;  %v6970_v20 = vor.u32 %v10187_v4, %v6967_v5  ;;  %v6839_v4 = vld [vmem:[#allocation2 + $0xe0] sm:$0xf0] }
  0x85   :  { %v10615_v17 = vld [vmem:[#allocation2 + $0xf1c] sm:$0xf0]  ;;  %v10219_v5 = vld [vmem:[#allocation2 + $0x2c4] sm:$0xf] }
  0x86   :  { %v7861_v22 = vld [vmem:[#allocation2 + $0x8c0] sm:$0xf]  ;;  %v8662_v26 = vor.u32 %v10615_v17, %v8661_v16  ;;  %3336 = vmatpush.bf16.msrb.mxu2 %v8406_v21  ;;  %v10379_v16 = vld [vmem:[#allocation2 + $0x7c4] sm:$0xf] }
  0x87   :  { %v10415_v23 = vld [vmem:[#allocation2 + $0x8dc] sm:$0xf0]  ;;  %v7735_v17 = vld [vmem:[#allocation2 + $0x7e0] sm:$0xf0] }
  0x88   :  { %v8117_v24 = vld [vmem:[#allocation2 + $0xac0] sm:$0xf]  ;;  %v7862_v32 = vor.u32 %v10415_v23, %v7861_v22  ;;  %3349 = vmatpush.bf16.msrb.mxu3 %v8662_v26  ;;  %v10179_v21 = vld [vmem:[#allocation2 + $0x184] sm:$0xf]  ;;  %v156_v23 = vld [vmem:[%s11591_s0 + $0x38] sm:$0xff]  ;;  %v7482_v26 = vor.u32 %v10315_v11, %v7479_v12 }
  0x89   :  { %v10479_v27 = vld [vmem:[#allocation2 + $0xadc] sm:$0xf0]  ;;  %v7351_v11 = vld [vmem:[#allocation2 + $0x4e0] sm:$0xf0] }
  0x8a   :  { %v8373_v28 = vld [vmem:[#allocation2 + $0xcc0] sm:$0xf]  ;;  %v8118_v33 = vor.u32 %v10479_v27, %v8117_v24  ;;  %3311 = vmatpush.bf16.msrb.mxu0 %v7862_v32  ;;  %v7226_v24 = vor.u32 %v10251_v6, %v7223_v10  ;;  %v6935_v27 = vld [vmem:[#allocation2 + $0x1a0] sm:$0xf0] }
  0x8b   :  { %v10543_v29 = vld [vmem:[#allocation2 + $0xcdc] sm:$0xf0]  ;;  %v10307_v32 = vld [vmem:[#allocation2 + $0x584] sm:$0xf] }
  0x8c   :  { %v8629_v30 = vld [vmem:[#allocation2 + $0xec0] sm:$0xf]  ;;  %v8374_v34 = vor.u32 %v10543_v29, %v8373_v28  ;;  %3324 = vmatpush.bf16.msrb.mxu1 %v8118_v33  ;;  %v10243_v28 = vld [vmem:[#allocation2 + $0x384] sm:$0xf]  ;;  %v154_v29 = vld [vmem:[%s11591_s0 + $0x28] sm:$0xff] }
  0x8d   :  { %v10607_v31 = vld [vmem:[#allocation2 + $0xedc] sm:$0xf0]  ;;  %v7447_v33 = vld [vmem:[#allocation2 + $0x5a0] sm:$0xf0] }
  0x8e   :  { %v7829_v35 = vld [vmem:[#allocation2 + $0x880] sm:$0xf]  ;;  %v8630_v38 = vor.u32 %v10607_v31, %v8629_v30  ;;  %3337 = vmatpush.bf16.msrb.mxu2 %v8374_v34  ;;  %v7738_v30 = vor.u32 %v10379_v16, %v7735_v17  ;;  %v7191_v31 = vld [vmem:[#allocation2 + $0x3a0] sm:$0xf0]  ;;  %v11328_v34 = vpack.c.bf16 %v155_v18, %v155_v18 }
  0x8f   :  { %v10407_v36 = vld [vmem:[#allocation2 + $0x89c] sm:$0xf0]  ;;  %v10283_v10 = vld [vmem:[#allocation2 + $0x4c4] sm:$0xf] }
  0x90   :  { %v8085_v37 = vld [vmem:[#allocation2 + $0xa80] sm:$0xf]  ;;  %v7830_v44 = vor.u32 %v10407_v36, %v7829_v35  ;;  %3350 = vmatpush.bf16.msrb.mxu3 %v8630_v38  ;;  %v10371_v35 = vld [vmem:[#allocation2 + $0x784] sm:$0xf]  ;;  %v11332_v38 = vpack.c.bf16 %v156_v23, %v156_v23  ;;  %v7354_v17 = vor.u32 %v10283_v10, %v7351_v11 }
  0x91   :  { %v10471_v39 = vld [vmem:[#allocation2 + $0xa9c] sm:$0xf0]  ;;  %v7703_v36 = vld [vmem:[#allocation2 + $0x7a0] sm:$0xf0] }
  0x92   :  { %v8341_v40 = vld [vmem:[#allocation2 + $0xc80] sm:$0xf]  ;;  %v8086_v45 = vor.u32 %v10471_v39, %v8085_v37  ;;  %3312 = vmatpush.bf16.msrb.mxu0 %v7830_v44  ;;  %v6938_v39 = vor.u32 %v10179_v21, %v6935_v27  ;;  %v6903_v44 = vld [vmem:[#allocation2 + $0x160] sm:$0xf0] }
  0x93   :  { %v10535_v41 = vld [vmem:[#allocation2 + $0xc9c] sm:$0xf0]  ;;  %v10347_v12 = vld [vmem:[#allocation2 + $0x6c4] sm:$0xf] }
  0x94   :  { %v8597_v42 = vld [vmem:[#allocation2 + $0xe80] sm:$0xf]  ;;  %v8342_v46 = vor.u32 %v10535_v41, %v8341_v40  ;;  %3325 = vmatpush.bf16.msrb.mxu1 %v8086_v45  ;;  %v11334_v40 = vpack.c.bf16 %v154_v29, %v154_v29  ;;  %v7194_v41 = vor.u32 %v10243_v28, %v7191_v31  ;;  %v10235_v45 = vld [vmem:[#allocation2 + $0x344] sm:$0xf] }
  0x95   :  { %v10599_v43 = vld [vmem:[#allocation2 + $0xe9c] sm:$0xf0]  ;;  %v10147_v18 = vld [vmem:[#allocation2 + $0x84] sm:$0xf] }
  0x96   :  { %v7797_v47 = vld [vmem:[#allocation2 + $0x840] sm:$0xf]  ;;  %v8598_v50 = vor.u32 %v10599_v43, %v8597_v42  ;;  %3338 = vmatpush.bf16.msrb.mxu2 %v8342_v46  ;;  %v7450_v42 = vor.u32 %v10307_v32, %v7447_v33  ;;  %v10171_v43 = vld [vmem:[#allocation2 + $0x144] sm:$0xf]  ;;  %v7706_v46 = vor.u32 %v10371_v35, %v7703_v36 }
  0x97   :  { %v10399_v48 = vld [vmem:[#allocation2 + $0x85c] sm:$0xf0]  ;;  %v10275_v23 = vld [vmem:[#allocation2 + $0x484] sm:$0xf] }
  0x98   :  { %v8053_v49 = vld [vmem:[#allocation2 + $0xa40] sm:$0xf]  ;;  %v7798_v56 = vor.u32 %v10399_v48, %v7797_v47  ;;  %3351 = vmatpush.bf16.msrb.mxu3 %v8598_v50  ;;  %v7159_v47 = vld [vmem:[#allocation2 + $0x360] sm:$0xf0] }
  0x99   :  { %v10463_v51 = vld [vmem:[#allocation2 + $0xa5c] sm:$0xf0]  ;;  %v10299_v48 = vld [vmem:[#allocation2 + $0x544] sm:$0xf] }
  0x9a   :  { %v8309_v52 = vld [vmem:[#allocation2 + $0xc40] sm:$0xf]  ;;  %v8054_v59 = vor.u32 %v10463_v51, %v8053_v49  ;;  %3313 = vmatpush.bf16.msrb.mxu0 %v7798_v56  ;;  %v7415_v49 = vld [vmem:[#allocation2 + $0x560] sm:$0xf0] }
  0x9b   :  { %v10527_v53 = vld [vmem:[#allocation2 + $0xc5c] sm:$0xf0]  ;;  %v10363_v50 = vld [vmem:[#allocation2 + $0x744] sm:$0xf] }
  0x9c   :  { %v8565_v54 = vld [vmem:[#allocation2 + $0xe40] sm:$0xf]  ;;  %v8310_v60 = vor.u32 %v10527_v53, %v8309_v52  ;;  %3326 = vmatpush.bf16.msrb.mxu1 %v8054_v59  ;;  %v7671_v51 = vld [vmem:[#allocation2 + $0x760] sm:$0xf0]  ;;  %v6906_v52 = vor.u32 %v10171_v43, %v6903_v44  ;;  %v7162_v53 = vor.u32 %v10235_v45, %v7159_v47 }
  0x9d   :  { %v10591_v55 = vld [vmem:[#allocation2 + $0xe5c] sm:$0xf0]  ;;  %v6871_v56 = vld [vmem:[#allocation2 + $0x120] sm:$0xf0] }
  0x9e   :  { %v7765_v57 = vld [vmem:[#allocation2 + $0x800] sm:$0xf]  ;;  %v8566_v0 = vor.u32 %v10591_v55, %v8565_v54  ;;  %3339 = vmatpush.bf16.msrb.mxu2 %v8310_v60  ;;  %v7418_v54 = vor.u32 %v10299_v48, %v7415_v49  ;;  %v10163_v55 = vld [vmem:[#allocation2 + $0x104] sm:$0xf] }
  0x9f   :  { %v10391_v58 = vld [vmem:[#allocation2 + $0x81c] sm:$0xf0]  ;;  %v7127_v59 = vld [vmem:[#allocation2 + $0x320] sm:$0xf0] }
  0xa0   :  { %v8021_v61 = vld [vmem:[#allocation2 + $0xa00] sm:$0xf]  ;;  %v7766_v7 = vor.u32 %v10391_v58, %v7765_v57  ;;  %3352 = vmatpush.bf16.msrb.mxu3 %v8566_v0  ;;  %v10227_v57 = vld [vmem:[#allocation2 + $0x304] sm:$0xf]  ;;  %v7674_v58 = vor.u32 %v10363_v50, %v7671_v51  ;;  %v6874_v0 = vor.u32 %v10163_v55, %v6871_v56 }
  0xa1   :  { %v10455_v62 = vld [vmem:[#allocation2 + $0xa1c] sm:$0xf0]  ;;  %v10291_v60 = vld [vmem:[#allocation2 + $0x504] sm:$0xf] }
  0xa2   :  { %v8277_v63 = vld [vmem:[#allocation2 + $0xc00] sm:$0xf]  ;;  %v8022_v13 = vor.u32 %v10455_v62, %v8021_v61  ;;  %3314 = vmatpush.bf16.msrb.mxu0 %v7766_v7  ;;  %v7383_v61 = vld [vmem:[#allocation2 + $0x520] sm:$0xf0] }
  0xa3   :  { %v10519_v1 = vld [vmem:[#allocation2 + $0xc1c] sm:$0xf0]  ;;  %v10355_v62 = vld [vmem:[#allocation2 + $0x704] sm:$0xf] }
  0xa4   :  { %v8533_v2 = vld [vmem:[#allocation2 + $0xe00] sm:$0xf]  ;;  %v8278_v14 = vor.u32 %v10519_v1, %v8277_v63  ;;  %3327 = vmatpush.bf16.msrb.mxu1 %v8022_v13  ;;  %v7639_v63 = vld [vmem:[#allocation2 + $0x720] sm:$0xf0]  ;;  %v7130_v1 = vor.u32 %v10227_v57, %v7127_v59 }
  0xa5   :  { %v10583_v3 = vld [vmem:[#allocation2 + $0xe1c] sm:$0xf0]  ;;  %v7642_v6 = vor.u32 %v10355_v62, %v7639_v63  ;;  %v7095_v7 = vld [vmem:[#allocation2 + $0x2e0] sm:$0xf0] }
  0xa6   :  { %v8534_v19 = vor.u32 %v10583_v3, %v8533_v2  ;;  %v153_v22 = vld [vmem:[%s11591_s0 + $0x20] sm:$0xff]  ;;  %3340 = vmatpush.bf16.msrb.mxu2 %v8278_v14  ;;  %3359 = vmatpush.bf16.msra.mxu0 %v6970_v20  ;;  %v7386_v2 = vor.u32 %v10291_v60, %v7383_v61  ;;  %v7098_v16 = vor.u32 %v10219_v5, %v7095_v7 }
  0xa7   :  { %v11330_v37 = vpack.c.bf16 %v153_v22, %v153_v22  ;;  %3328 = vmatmul.bf16.vlgmr.msrb.gmra.mxu1 %v11334_v40  ;;  %v10155_v3 = vld [vmem:[#allocation2 + $0xc4] sm:$0xf] }
  0xa8   :  { %3353 = vmatpush.bf16.msrb.mxu3 %v8534_v19  ;;  %3372 = vmatpush.bf16.msra.mxu1 %v7226_v24  ;;  %v7607_v13 = vld [vmem:[#allocation2 + $0x6e0] sm:$0xf0]  ;;  %v6842_v14 = vor.u32 %v10155_v3, %v6839_v4 }
  0xa9   :  { %3341 = vmatmul.bf16.vlgmr.msrb.gmra.mxu2 %v11328_v34  ;;  %3315 = vmatmul.bf16.vlgmr.msrb.gmra.mxu0 %v11330_v37  ;;  %v6807_v19 = vld [vmem:[#allocation2 + $0xa0] sm:$0xf0]  ;;  %v7610_v21 = vor.u32 %v10347_v12, %v7607_v13 }
  0xaa   :  { %3385 = vmatpush.bf16.msra.mxu2 %v7482_v26  ;;  %3360 = vmatpush.bf16.msra.mxu0 %v6938_v39  ;;  %v10211_v20 = vld [vmem:[#allocation2 + $0x284] sm:$0xf]  ;;  %v6810_v28 = vor.u32 %v10147_v18, %v6807_v19 }
  0xab   :  { %3354 = vmatmul.bf16.vlgmr.msrb.gmra.mxu3 %v11332_v38  ;;  %v7063_v22 = vld [vmem:[#allocation2 + $0x2a0] sm:$0xf0] }
  0xac   :  { %3398 = vmatpush.bf16.msra.mxu3 %v7738_v30  ;;  %3373 = vmatpush.bf16.msra.mxu1 %v7194_v41  ;;  %v7319_v24 = vld [vmem:[#allocation2 + $0x4a0] sm:$0xf0]  ;;  %v7066_v29 = vor.u32 %v10211_v20, %v7063_v22 }
  0xad   :  { %v10339_v26 = vld [vmem:[#allocation2 + $0x684] sm:$0xf]  ;;  %v7322_v30 = vor.u32 %v10275_v23, %v7319_v24 }
  0xae   :  { %3386 = vmatpush.bf16.msra.mxu2 %v7450_v42  ;;  %3361 = vmatpush.bf16.msra.mxu0 %v6906_v52  ;;  %v7575_v27 = vld [vmem:[#allocation2 + $0x6a0] sm:$0xf0] }
  0xaf   :  { %v10139_v31 = vld [vmem:[#allocation2 + $0x44] sm:$0xf]  ;;  %v7578_v35 = vor.u32 %v10339_v26, %v7575_v27 }
  0xb0   :  { %3399 = vmatpush.bf16.msra.mxu3 %v7706_v46  ;;  %3374 = vmatpush.bf16.msra.mxu1 %v7162_v53  ;;  %v6775_v32 = vld [vmem:[#allocation2 + $0x60] sm:$0xf0] }
  0xb1   :  { %v10203_v33 = vld [vmem:[#allocation2 + $0x244] sm:$0xf]  ;;  %v6778_v44 = vor.u32 %v10139_v31, %v6775_v32 }
  0xb2   :  { %3387 = vmatpush.bf16.msra.mxu2 %v7418_v54  ;;  %3362 = vmatpush.bf16.msra.mxu0 %v6874_v0  ;;  %v7031_v36 = vld [vmem:[#allocation2 + $0x260] sm:$0xf0] }
  0xb3   :  { %v10267_v39 = vld [vmem:[#allocation2 + $0x444] sm:$0xf]  ;;  %v7034_v47 = vor.u32 %v10203_v33, %v7031_v36 }
  0xb4   :  { %3400 = vmatpush.bf16.msra.mxu3 %v7674_v58  ;;  %3375 = vmatpush.bf16.msra.mxu1 %v7130_v1  ;;  %v7287_v41 = vld [vmem:[#allocation2 + $0x460] sm:$0xf0] }
  0xb5   :  { %v10331_v42 = vld [vmem:[#allocation2 + $0x644] sm:$0xf]  ;;  %v7290_v48 = vor.u32 %v10267_v39, %v7287_v41 }
  0xb6   :  { %3388 = vmatpush.bf16.msra.mxu2 %v7386_v2  ;;  %3363 = vmatpush.bf16.msra.mxu0 %v6842_v14  ;;  %v7543_v43 = vld [vmem:[#allocation2 + $0x660] sm:$0xf0] }
  0xb7   :  { %v10131_v45 = vld [vmem:[#allocation2 + $0x4] sm:$0xf]  ;;  %v7546_v52 = vor.u32 %v10331_v42, %v7543_v43 }
  0xb8   :  { %3401 = vmatpush.bf16.msra.mxu3 %v7642_v6  ;;  %3376 = vmatpush.bf16.msra.mxu1 %v7098_v16  ;;  %v6743_v46 = vld [vmem:[#allocation2 + $0x20] sm:$0xf0] }
  0xb9   :  { %v10195_v49 = vld [vmem:[#allocation2 + $0x204] sm:$0xf]  ;;  %v6746_v59 = vor.u32 %v10131_v45, %v6743_v46 }
  0xba   :  { %3389 = vmatpush.bf16.msra.mxu2 %v7354_v17  ;;  %3364 = vmatpush.bf16.msra.mxu0 %v6810_v28  ;;  %v6999_v50 = vld [vmem:[#allocation2 + $0x220] sm:$0xf0] }
  0xbb   :  { %v10259_v51 = vld [vmem:[#allocation2 + $0x404] sm:$0xf]  ;;  %v7002_v63 = vor.u32 %v10195_v49, %v6999_v50 }
  0xbc   :  { %3402 = vmatpush.bf16.msra.mxu3 %v7610_v21  ;;  %3377 = vmatpush.bf16.msra.mxu1 %v7066_v29  ;;  %v7255_v53 = vld [vmem:[#allocation2 + $0x420] sm:$0xf0] }
  0xbd   :  { %v10323_v54 = vld [vmem:[#allocation2 + $0x604] sm:$0xf]  ;;  %v7258_v0 = vor.u32 %v10259_v51, %v7255_v53 }
  0xbe   :  { %3390 = vmatpush.bf16.msra.mxu2 %v7322_v30  ;;  %v7511_v55 = vld [vmem:[#allocation2 + $0x620] sm:$0xf0]  ;;  %3365 = vmatpush.bf16.msra.mxu0 %v6778_v44 }
  0xbf   :  { %v10443_v56 = vld [vmem:[#allocation2 + $0x9c4] sm:$0xf]  ;;  %v7514_v3 = vor.u32 %v10323_v54, %v7511_v55 }
  0xc0   :  { %3403 = vmatpush.bf16.msra.mxu3 %v7578_v35  ;;  %v7991_v57 = vld [vmem:[#allocation2 + $0x9e0] sm:$0xf0]  ;;  %3378 = vmatpush.bf16.msra.mxu1 %v7034_v47 }
  0xc1   :  { %v10507_v58 = vld [vmem:[#allocation2 + $0xbc4] sm:$0xf]  ;;  %v7994_v4 = vor.u32 %v10443_v56, %v7991_v57 }
  0xc2   :  { %v8247_v60 = vld [vmem:[#allocation2 + $0xbe0] sm:$0xf0]  ;;  %3391 = vmatpush.bf16.msra.mxu2 %v7290_v48  ;;  %3366 = vmatpush.bf16.msra.mxu0 %v6746_v59 }
  0xc3   :  { %v10571_v61 = vld [vmem:[#allocation2 + $0xdc4] sm:$0xf]  ;;  %v8250_v5 = vor.u32 %v10507_v58, %v8247_v60 }
  0xc4   :  { %v8503_v62 = vld [vmem:[#allocation2 + $0xde0] sm:$0xf0]  ;;  %3404 = vmatpush.bf16.msra.mxu3 %v7546_v52  ;;  %3379 = vmatpush.bf16.msra.mxu1 %v7002_v63 }
  0xc5   :  { %v10635_v1 = vld [vmem:[#allocation2 + $0xfc4] sm:$0xf]  ;;  %v8506_v6 = vor.u32 %v10571_v61, %v8503_v62  ;;  %3367 = vmatmul.bf16.vlgmr.msra.gmra.mxu0 %v11300_v9 }
  0xc6   :  { %v8759_v2 = vld [vmem:[#allocation2 + $0xfe0] sm:$0xf0]  ;;  %3392 = vmatpush.bf16.msra.mxu2 %v7258_v0  ;;  %3411 = vmatpush.bf16.msrb.mxu0 %v7994_v4 }
  0xc7   :  { %v10435_v7 = vld [vmem:[#allocation2 + $0x984] sm:$0xf]  ;;  %v8762_v12 = vor.u32 %v10635_v1, %v8759_v2  ;;  %3380 = vmatmul.bf16.vlgmr.msra.gmra.mxu1 %v11313_v25 }
  0xc8   :  { %v7959_v10 = vld [vmem:[#allocation2 + $0x9a0] sm:$0xf0]  ;;  %3405 = vmatpush.bf16.msra.mxu3 %v7514_v3  ;;  %3424 = vmatpush.bf16.msrb.mxu1 %v8250_v5 }
  0xc9   :  { %v10499_v11 = vld [vmem:[#allocation2 + $0xb84] sm:$0xf]  ;;  %v7962_v19 = vor.u32 %v10435_v7, %v7959_v10  ;;  %3393 = vmatmul.bf16.vlgmr.msra.gmra.mxu2 %v11298_v8 }
  0xca   :  { %v8215_v13 = vld [vmem:[#allocation2 + $0xba0] sm:$0xf0]  ;;  %3437 = vmatpush.bf16.msrb.mxu2 %v8506_v6 }
  0xcb   :  { %v10563_v14 = vld [vmem:[#allocation2 + $0xd84] sm:$0xf]  ;;  %v8218_v20 = vor.u32 %v10499_v11, %v8215_v13  ;;  %3406 = vmatmul.bf16.vlgmr.msra.gmra.mxu3 %v11305_v15  ;;  %3412 = vmatpush.bf16.msrb.mxu0 %v7962_v19 }
  0xcc   :  { %v8471_v16 = vld [vmem:[#allocation2 + $0xda0] sm:$0xf0]  ;;  %3450 = vmatpush.bf16.msrb.mxu3 %v8762_v12 }
  0xcd   :  { %v10627_v17 = vld [vmem:[#allocation2 + $0xf84] sm:$0xf]  ;;  %v8474_v21 = vor.u32 %v10563_v14, %v8471_v16  ;;  %3425 = vmatpush.bf16.msrb.mxu1 %v8218_v20 }
  0xce   :  { %v8727_v18 = vld [vmem:[#allocation2 + $0xfa0] sm:$0xf0] }
  0xcf   :  { %v10427_v22 = vld [vmem:[#allocation2 + $0x944] sm:$0xf]  ;;  %v8730_v26 = vor.u32 %v10627_v17, %v8727_v18  ;;  %3438 = vmatpush.bf16.msrb.mxu2 %v8474_v21 }
  0xd0   :  { %v7927_v23 = vld [vmem:[#allocation2 + $0x960] sm:$0xf0] }
  0xd1   :  { %v10491_v24 = vld [vmem:[#allocation2 + $0xb44] sm:$0xf]  ;;  %v7930_v32 = vor.u32 %v10427_v22, %v7927_v23  ;;  %3451 = vmatpush.bf16.msrb.mxu3 %v8730_v26 }
  0xd2   :  { %v8183_v27 = vld [vmem:[#allocation2 + $0xb60] sm:$0xf0] }
  0xd3   :  { %v10555_v28 = vld [vmem:[#allocation2 + $0xd44] sm:$0xf]  ;;  %v8186_v33 = vor.u32 %v10491_v24, %v8183_v27  ;;  %3413 = vmatpush.bf16.msrb.mxu0 %v7930_v32 }
  0xd4   :  { %v8439_v29 = vld [vmem:[#allocation2 + $0xd60] sm:$0xf0] }
  0xd5   :  { %v10619_v30 = vld [vmem:[#allocation2 + $0xf44] sm:$0xf]  ;;  %v8442_v35 = vor.u32 %v10555_v28, %v8439_v29  ;;  %3426 = vmatpush.bf16.msrb.mxu1 %v8186_v33 }
  0xd6   :  { %v8695_v31 = vld [vmem:[#allocation2 + $0xf60] sm:$0xf0] }
  0xd7   :  { %v10419_v36 = vld [vmem:[#allocation2 + $0x904] sm:$0xf]  ;;  %v8698_v42 = vor.u32 %v10619_v30, %v8695_v31  ;;  %3439 = vmatpush.bf16.msrb.mxu2 %v8442_v35 }
  0xd8   :  { %v7895_v39 = vld [vmem:[#allocation2 + $0x920] sm:$0xf0] }
  0xd9   :  { %v10483_v41 = vld [vmem:[#allocation2 + $0xb04] sm:$0xf]  ;;  %v7898_v48 = vor.u32 %v10419_v36, %v7895_v39  ;;  %3452 = vmatpush.bf16.msrb.mxu3 %v8698_v42  ;;  %v6973_v39 = vld [vmem:[#allocation2 + $0x1c8] sm:$0xf] }
  0xda   :  { %v8151_v43 = vld [vmem:[#allocation2 + $0xb20] sm:$0xf0]  ;;  %v7229_v42 = vld [vmem:[#allocation2 + $0x3c8] sm:$0xf] }
  0xdb   :  { %v10547_v44 = vld [vmem:[#allocation2 + $0xd04] sm:$0xf]  ;;  %v8154_v49 = vor.u32 %v10483_v41, %v8151_v43  ;;  %3414 = vmatpush.bf16.msrb.mxu0 %v7898_v48  ;;  %v10192_v41 = vld [vmem:[#allocation2 + $0x1e4] sm:$0xf0] }
  0xdc   :  { %v8407_v45 = vld [vmem:[#allocation2 + $0xd20] sm:$0xf0] }
  0xdd   :  { %v10611_v46 = vld [vmem:[#allocation2 + $0xf04] sm:$0xf]  ;;  %v8410_v50 = vor.u32 %v10547_v44, %v8407_v45  ;;  %3427 = vmatpush.bf16.msrb.mxu1 %v8154_v49  ;;  %v10256_v44 = vld [vmem:[#allocation2 + $0x3e4] sm:$0xf0] }
  0xde   :  { %v8663_v47 = vld [vmem:[#allocation2 + $0xf20] sm:$0xf0]  ;;  %v7485_v45 = vld [vmem:[#allocation2 + $0x5c8] sm:$0xf] }
  0xdf   :  { %v10411_v51 = vld [vmem:[#allocation2 + $0x8c4] sm:$0xf]  ;;  %v8666_v54 = vor.u32 %v10611_v46, %v8663_v47  ;;  %3440 = vmatpush.bf16.msrb.mxu2 %v8410_v50  ;;  %v10320_v46 = vld [vmem:[#allocation2 + $0x5e4] sm:$0xf0] }
  0xe0   :  { %v7863_v52 = vld [vmem:[#allocation2 + $0x8e0] sm:$0xf0]  ;;  %v7741_v49 = vld [vmem:[#allocation2 + $0x7c8] sm:$0xf] }
  0xe1   :  { %v10475_v53 = vld [vmem:[#allocation2 + $0xac4] sm:$0xf]  ;;  %v7866_v60 = vor.u32 %v10411_v51, %v7863_v52  ;;  %3453 = vmatpush.bf16.msrb.mxu3 %v8666_v54  ;;  %v10384_v50 = vld [vmem:[#allocation2 + $0x7e4] sm:$0xf0]  ;;  %v6974_v52 = vor.u32 %v10192_v41, %v6973_v39  ;;  %v7486_v54 = vor.u32 %v10320_v46, %v7485_v45 }
  0xe2   :  { %v8119_v55 = vld [vmem:[#allocation2 + $0xae0] sm:$0xf0]  ;;  %v7357_v39 = vld [vmem:[#allocation2 + $0x4c8] sm:$0xf] }
  0xe3   :  { %v10539_v56 = vld [vmem:[#allocation2 + $0xcc4] sm:$0xf]  ;;  %v8122_v61 = vor.u32 %v10475_v53, %v8119_v55  ;;  %3415 = vmatpush.bf16.msrb.mxu0 %v7866_v60  ;;  %v7230_v53 = vor.u32 %v10256_v44, %v7229_v42  ;;  %v6941_v55 = vld [vmem:[#allocation2 + $0x188] sm:$0xf] }
  0xe4   :  { %v8375_v57 = vld [vmem:[#allocation2 + $0xce0] sm:$0xf0]  ;;  %v7453_v60 = vld [vmem:[#allocation2 + $0x588] sm:$0xf] }
  0xe5   :  { %v10603_v58 = vld [vmem:[#allocation2 + $0xec4] sm:$0xf]  ;;  %v8378_v62 = vor.u32 %v10539_v56, %v8375_v57  ;;  %3428 = vmatpush.bf16.msrb.mxu1 %v8122_v61  ;;  %v10184_v56 = vld [vmem:[#allocation2 + $0x1a4] sm:$0xf0] }
  0xe6   :  { %v8631_v59 = vld [vmem:[#allocation2 + $0xee0] sm:$0xf0]  ;;  %v7197_v57 = vld [vmem:[#allocation2 + $0x388] sm:$0xf] }
  0xe7   :  { %v10403_v63 = vld [vmem:[#allocation2 + $0x884] sm:$0xf]  ;;  %v8634_v2 = vor.u32 %v10603_v58, %v8631_v59  ;;  %3441 = vmatpush.bf16.msrb.mxu2 %v8378_v62  ;;  %v7742_v58 = vor.u32 %v10384_v50, %v7741_v49  ;;  %v10248_v59 = vld [vmem:[#allocation2 + $0x3a4] sm:$0xf0] }
  0xe8   :  { %v7831_v0 = vld [vmem:[#allocation2 + $0x8a0] sm:$0xf0]  ;;  %v10312_v61 = vld [vmem:[#allocation2 + $0x5a4] sm:$0xf0] }
  0xe9   :  { %v10467_v1 = vld [vmem:[#allocation2 + $0xa84] sm:$0xf]  ;;  %v7834_v10 = vor.u32 %v10403_v63, %v7831_v0  ;;  %3454 = vmatpush.bf16.msrb.mxu3 %v8634_v2  ;;  %v7709_v62 = vld [vmem:[#allocation2 + $0x788] sm:$0xf]  ;;  %v6942_v0 = vor.u32 %v10184_v56, %v6941_v55  ;;  %v7454_v2 = vor.u32 %v10312_v61, %v7453_v60 }
  0xea   :  { %v8087_v3 = vld [vmem:[#allocation2 + $0xaa0] sm:$0xf0]  ;;  %v10376_v63 = vld [vmem:[#allocation2 + $0x7a4] sm:$0xf0] }
  0xeb   :  { %v10531_v4 = vld [vmem:[#allocation2 + $0xc84] sm:$0xf]  ;;  %v8090_v11 = vor.u32 %v10467_v1, %v8087_v3  ;;  %3416 = vmatpush.bf16.msrb.mxu0 %v7834_v10  ;;  %v7198_v1 = vor.u32 %v10248_v59, %v7197_v57  ;;  %v6909_v3 = vld [vmem:[#allocation2 + $0x148] sm:$0xf] }
  0xec   :  { %v8343_v5 = vld [vmem:[#allocation2 + $0xca0] sm:$0xf0]  ;;  %v7421_v10 = vld [vmem:[#allocation2 + $0x548] sm:$0xf] }
  0xed   :  { %v10595_v6 = vld [vmem:[#allocation2 + $0xe84] sm:$0xf]  ;;  %v8346_v12 = vor.u32 %v10531_v4, %v8343_v5  ;;  %3429 = vmatpush.bf16.msrb.mxu1 %v8090_v11  ;;  %v10176_v4 = vld [vmem:[#allocation2 + $0x164] sm:$0xf0] }
  0xee   :  { %v8599_v7 = vld [vmem:[#allocation2 + $0xea0] sm:$0xf0]  ;;  %v7165_v5 = vld [vmem:[#allocation2 + $0x348] sm:$0xf] }
  0xef   :  { %v10395_v13 = vld [vmem:[#allocation2 + $0x844] sm:$0xf]  ;;  %v8602_v17 = vor.u32 %v10595_v6, %v8599_v7  ;;  %3442 = vmatpush.bf16.msrb.mxu2 %v8346_v12  ;;  %v7710_v6 = vor.u32 %v10376_v63, %v7709_v62  ;;  %v10240_v7 = vld [vmem:[#allocation2 + $0x364] sm:$0xf0] }
  0xf0   :  { %v7799_v14 = vld [vmem:[#allocation2 + $0x860] sm:$0xf0]  ;;  %v10304_v11 = vld [vmem:[#allocation2 + $0x564] sm:$0xf0] }
  0xf1   :  { %v10459_v16 = vld [vmem:[#allocation2 + $0xa44] sm:$0xf]  ;;  %v7802_v23 = vor.u32 %v10395_v13, %v7799_v14  ;;  %3455 = vmatpush.bf16.msrb.mxu3 %v8602_v17  ;;  %v7677_v12 = vld [vmem:[#allocation2 + $0x748] sm:$0xf]  ;;  %v6910_v14 = vor.u32 %v10176_v4, %v6909_v3  ;;  %v7422_v17 = vor.u32 %v10304_v11, %v7421_v10 }
  0xf2   :  { %v8055_v18 = vld [vmem:[#allocation2 + $0xa60] sm:$0xf0]  ;;  %v10368_v13 = vld [vmem:[#allocation2 + $0x764] sm:$0xf0] }
  0xf3   :  { %v10523_v19 = vld [vmem:[#allocation2 + $0xc44] sm:$0xf]  ;;  %v8058_v27 = vor.u32 %v10459_v16, %v8055_v18  ;;  %3417 = vmatpush.bf16.msrb.mxu0 %v7802_v23  ;;  %v7166_v16 = vor.u32 %v10240_v7, %v7165_v5  ;;  %v6877_v18 = vld [vmem:[#allocation2 + $0x108] sm:$0xf] }
  0xf4   :  { %v8311_v20 = vld [vmem:[#allocation2 + $0xc60] sm:$0xf0]  ;;  %v7389_v23 = vld [vmem:[#allocation2 + $0x508] sm:$0xf] }
  0xf5   :  { %v10587_v21 = vld [vmem:[#allocation2 + $0xe44] sm:$0xf]  ;;  %v8314_v28 = vor.u32 %v10523_v19, %v8311_v20  ;;  %3430 = vmatpush.bf16.msrb.mxu1 %v8058_v27  ;;  %v10168_v19 = vld [vmem:[#allocation2 + $0x124] sm:$0xf0] }
  0xf6   :  { %v8567_v22 = vld [vmem:[#allocation2 + $0xe60] sm:$0xf0]  ;;  %v7133_v20 = vld [vmem:[#allocation2 + $0x308] sm:$0xf] }
  0xf7   :  { %v10387_v24 = vld [vmem:[#allocation2 + $0x804] sm:$0xf]  ;;  %v8570_v32 = vor.u32 %v10587_v21, %v8567_v22  ;;  %3443 = vmatpush.bf16.msrb.mxu2 %v8314_v28  ;;  %v7678_v21 = vor.u32 %v10368_v13, %v7677_v12  ;;  %v10232_v22 = vld [vmem:[#allocation2 + $0x324] sm:$0xf0]  ;;  %v6878_v28 = vor.u32 %v10168_v19, %v6877_v18 }
  0xf8   :  { %v7767_v26 = vld [vmem:[#allocation2 + $0x820] sm:$0xf0]  ;;  %v10360_v27 = vld [vmem:[#allocation2 + $0x724] sm:$0xf0] }
  0xf9   :  { %v10451_v29 = vld [vmem:[#allocation2 + $0xa04] sm:$0xf]  ;;  %v7770_v43 = vor.u32 %v10387_v24, %v7767_v26  ;;  %3456 = vmatpush.bf16.msrb.mxu3 %v8570_v32  ;;  %v10296_v24 = vld [vmem:[#allocation2 + $0x524] sm:$0xf0] }
  0xfa   :  { %v8023_v30 = vld [vmem:[#allocation2 + $0xa20] sm:$0xf0]  ;;  %v7645_v26 = vld [vmem:[#allocation2 + $0x708] sm:$0xf] }
  0xfb   :  { %v10515_v31 = vld [vmem:[#allocation2 + $0xc04] sm:$0xf]  ;;  %v8026_v47 = vor.u32 %v10451_v29, %v8023_v30  ;;  %3418 = vmatpush.bf16.msrb.mxu0 %v7770_v43  ;;  %v7134_v29 = vor.u32 %v10232_v22, %v7133_v20  ;;  %v7390_v30 = vor.u32 %v10296_v24, %v7389_v23  ;;  %v10160_v32 = vld [vmem:[#allocation2 + $0xe4] sm:$0xf0] }
  0xfc   :  { %v8279_v33 = vld [vmem:[#allocation2 + $0xc20] sm:$0xf0]  ;;  %v10288_v41 = vld [vmem:[#allocation2 + $0x4e4] sm:$0xf0] }
  0xfd   :  { %v10579_v35 = vld [vmem:[#allocation2 + $0xe04] sm:$0xf]  ;;  %v8282_v48 = vor.u32 %v10515_v31, %v8279_v33  ;;  %3431 = vmatpush.bf16.msrb.mxu1 %v8026_v47  ;;  %v6845_v31 = vld [vmem:[#allocation2 + $0xc8] sm:$0xf]  ;;  %v7358_v46 = vor.u32 %v10288_v41, %v7357_v39 }
  0xfe   :  { %v8535_v36 = vld [vmem:[#allocation2 + $0xe20] sm:$0xf0]  ;;  %3419 = vmatmul.bf16.vlgmr.msrb.gmra.mxu0 %v11330_v37  ;;  %v7101_v33 = vld [vmem:[#allocation2 + $0x2c8] sm:$0xf]  ;;  %v6846_v44 = vor.u32 %v10160_v32, %v6845_v31 }
  0xff   :  { %v8538_v51 = vor.u32 %v10579_v35, %v8535_v36  ;;  %3444 = vmatpush.bf16.msrb.mxu2 %v8282_v48  ;;  %3463 = vmatpush.bf16.msra.mxu0 %v6974_v52  ;;  %v7646_v35 = vor.u32 %v10360_v27, %v7645_v26  ;;  %v10224_v36 = vld [vmem:[#allocation2 + $0x2e4] sm:$0xf0] }
 0x100   :  { %3432 = vmatmul.bf16.vlgmr.msrb.gmra.mxu1 %v11334_v40  ;;  %v7613_v42 = vld [vmem:[#allocation2 + $0x6c8] sm:$0xf]  ;;  %v7102_v45 = vor.u32 %v10224_v36, %v7101_v33 }
 0x101   :  { %3457 = vmatpush.bf16.msrb.mxu3 %v8538_v51  ;;  %3476 = vmatpush.bf16.msra.mxu1 %v7230_v53  ;;  %v10352_v43 = vld [vmem:[#allocation2 + $0x6e4] sm:$0xf0] }
 0x102   :  { %3445 = vmatmul.bf16.vlgmr.msrb.gmra.mxu2 %v11328_v34  ;;  %v6813_v47 = vld [vmem:[#allocation2 + $0x88] sm:$0xf]  ;;  %v7614_v50 = vor.u32 %v10352_v43, %v7613_v42 }
 0x103   :  { %3489 = vmatpush.bf16.msra.mxu2 %v7486_v54  ;;  %3464 = vmatpush.bf16.msra.mxu0 %v6942_v0  ;;  %v10152_v48 = vld [vmem:[#allocation2 + $0xa4] sm:$0xf0] }
 0x104   :  { %3458 = vmatmul.bf16.vlgmr.msrb.gmra.mxu3 %v11332_v38  ;;  %v7069_v49 = vld [vmem:[#allocation2 + $0x288] sm:$0xf]  ;;  %v6814_v56 = vor.u32 %v10152_v48, %v6813_v47 }
 0x105   :  { %3502 = vmatpush.bf16.msra.mxu3 %v7742_v58  ;;  %3477 = vmatpush.bf16.msra.mxu1 %v7198_v1  ;;  %v10216_v51 = vld [vmem:[#allocation2 + $0x2a4] sm:$0xf0] }
 0x106   :  { %v7325_v52 = vld [vmem:[#allocation2 + $0x488] sm:$0xf]  ;;  %v7070_v57 = vor.u32 %v10216_v51, %v7069_v49 }
 0x107   :  { %3490 = vmatpush.bf16.msra.mxu2 %v7454_v2  ;;  %3465 = vmatpush.bf16.msra.mxu0 %v6910_v14  ;;  %v10280_v53 = vld [vmem:[#allocation2 + $0x4a4] sm:$0xf0] }
 0x108   :  { %v7581_v54 = vld [vmem:[#allocation2 + $0x688] sm:$0xf]  ;;  %v7326_v58 = vor.u32 %v10280_v53, %v7325_v52 }
 0x109   :  { %3503 = vmatpush.bf16.msra.mxu3 %v7710_v6  ;;  %3478 = vmatpush.bf16.msra.mxu1 %v7166_v16  ;;  %v10344_v55 = vld [vmem:[#allocation2 + $0x6a4] sm:$0xf0] }
 0x10a   :  { %v6781_v59 = vld [vmem:[#allocation2 + $0x48] sm:$0xf]  ;;  %v7582_v62 = vor.u32 %v10344_v55, %v7581_v54 }
 0x10b   :  { %3491 = vmatpush.bf16.msra.mxu2 %v7422_v17  ;;  %3466 = vmatpush.bf16.msra.mxu0 %v6878_v28  ;;  %v10144_v60 = vld [vmem:[#allocation2 + $0x64] sm:$0xf0] }
 0x10c   :  { %v7037_v61 = vld [vmem:[#allocation2 + $0x248] sm:$0xf]  ;;  %v6782_v4 = vor.u32 %v10144_v60, %v6781_v59 }
 0x10d   :  { %3504 = vmatpush.bf16.msra.mxu3 %v7678_v21  ;;  %3479 = vmatpush.bf16.msra.mxu1 %v7134_v29  ;;  %v10208_v63 = vld [vmem:[#allocation2 + $0x264] sm:$0xf0] }
 0x10e   :  { %v7293_v0 = vld [vmem:[#allocation2 + $0x448] sm:$0xf]  ;;  %v7038_v7 = vor.u32 %v10208_v63, %v7037_v61 }
 0x10f   :  { %3492 = vmatpush.bf16.msra.mxu2 %v7390_v30  ;;  %3467 = vmatpush.bf16.msra.mxu0 %v6846_v44  ;;  %v10272_v1 = vld [vmem:[#allocation2 + $0x464] sm:$0xf0] }
 0x110   :  { %v7549_v2 = vld [vmem:[#allocation2 + $0x648] sm:$0xf]  ;;  %v7294_v10 = vor.u32 %v10272_v1, %v7293_v0 }
 0x111   :  { %3505 = vmatpush.bf16.msra.mxu3 %v7646_v35  ;;  %3480 = vmatpush.bf16.msra.mxu1 %v7102_v45  ;;  %v10336_v3 = vld [vmem:[#allocation2 + $0x664] sm:$0xf0] }
 0x112   :  { %v6749_v5 = vld [vmem:[#allocation2 + $0x8] sm:$0xf]  ;;  %v7550_v14 = vor.u32 %v10336_v3, %v7549_v2 }
 0x113   :  { %3493 = vmatpush.bf16.msra.mxu2 %v7358_v46  ;;  %3468 = vmatpush.bf16.msra.mxu0 %v6814_v56  ;;  %v10136_v6 = vld [vmem:[#allocation2 + $0x24] sm:$0xf0] }
 0x114   :  { %v7005_v11 = vld [vmem:[#allocation2 + $0x208] sm:$0xf]  ;;  %v6750_v22 = vor.u32 %v10136_v6, %v6749_v5  ;;  %v11352_v6 = vld [vmem:[#allocation4] sm:$0xff] }
 0x115   :  { %3506 = vmatpush.bf16.msra.mxu3 %v7614_v50  ;;  %3481 = vmatpush.bf16.msra.mxu1 %v7070_v57  ;;  %v10200_v12 = vld [vmem:[#allocation2 + $0x224] sm:$0xf0] }
 0x116   :  { %v7261_v13 = vld [vmem:[#allocation2 + $0x408] sm:$0xf]  ;;  %v7006_v27 = vor.u32 %v10200_v12, %v7005_v11 }
 0x117   :  { %3494 = vmatpush.bf16.msra.mxu2 %v7326_v58  ;;  %v10264_v16 = vld [vmem:[#allocation2 + $0x424] sm:$0xf0]  ;;  %3469 = vmatpush.bf16.msra.mxu0 %v6782_v4 }
 0x118   :  { %v7517_v17 = vld [vmem:[#allocation2 + $0x608] sm:$0xf]  ;;  %v7262_v28 = vor.u32 %v10264_v16, %v7261_v13 }
 0x119   :  { %3507 = vmatpush.bf16.msra.mxu3 %v7582_v62  ;;  %v10328_v18 = vld [vmem:[#allocation2 + $0x624] sm:$0xf0]  ;;  %3482 = vmatpush.bf16.msra.mxu1 %v7038_v7 }
 0x11a   :  { %v7997_v19 = vld [vmem:[#allocation2 + $0x9c8] sm:$0xf]  ;;  %v7518_v31 = vor.u32 %v10328_v18, %v7517_v17  ;;  %v679_v18 = vperm.slane %v11352_v6, 0 }
 0x11b   :  { %v10448_v20 = vld [vmem:[#allocation2 + $0x9e4] sm:$0xf0]  ;;  %3495 = vmatpush.bf16.msra.mxu2 %v7294_v10  ;;  %3470 = vmatpush.bf16.msra.mxu0 %v6750_v22 }
 0x11c   :  { %v8253_v21 = vld [vmem:[#allocation2 + $0xbc8] sm:$0xf]  ;;  %v7998_v32 = vor.u32 %v10448_v20, %v7997_v19 }
 0x11d   :  { %v10512_v23 = vld [vmem:[#allocation2 + $0xbe4] sm:$0xf0]  ;;  %3508 = vmatpush.bf16.msra.mxu3 %v7550_v14  ;;  %3483 = vmatpush.bf16.msra.mxu1 %v7006_v27  ;;  %v3264_v27 = vpop.f32.mrf.mxu0 }
 0x11e   :  { %v8509_v24 = vld [vmem:[#allocation2 + $0xdc8] sm:$0xf]  ;;  %v8254_v33 = vor.u32 %v10512_v23, %v8253_v21  ;;  %3471 = vmatmul.bf16.vlgmr.msra.gmra.mxu0 %v11300_v9 }
 0x11f   :  { %v10576_v26 = vld [vmem:[#allocation2 + $0xde4] sm:$0xf0]  ;;  %3496 = vmatpush.bf16.msra.mxu2 %v7262_v28  ;;  %3515 = vmatpush.bf16.msrb.mxu0 %v7998_v32 }
 0x120   :  { %v8765_v29 = vld [vmem:[#allocation2 + $0xfc8] sm:$0xf]  ;;  %v8510_v35 = vor.u32 %v10576_v26, %v8509_v24  ;;  %3484 = vmatmul.bf16.vlgmr.msra.gmra.mxu1 %v11313_v25 }
 0x121   :  { %v10640_v30 = vld [vmem:[#allocation2 + $0xfe4] sm:$0xf0]  ;;  %3509 = vmatpush.bf16.msra.mxu3 %v7518_v31  ;;  %3528 = vmatpush.bf16.msrb.mxu1 %v8254_v33  ;;  %v3265_v33 = vadd.f32 %v3264_v27, %v679_v18  ;;  %v7743_v27 = vld [vmem:[#allocation2 + $0x7e8] sm:$0xf0] }
 0x122   :  { %v7965_v36 = vld [vmem:[#allocation2 + $0x988] sm:$0xf]  ;;  %v8766_v42 = vor.u32 %v10640_v30, %v8765_v29  ;;  %3497 = vmatmul.bf16.vlgmr.msra.gmra.mxu2 %v11298_v8 }
 0x123   :  { %v10440_v39 = vld [vmem:[#allocation2 + $0x9a4] sm:$0xf0]  ;;  %3541 = vmatpush.bf16.msrb.mxu2 %v8510_v35 }
 0x124   :  { %v8221_v41 = vld [vmem:[#allocation2 + $0xb88] sm:$0xf]  ;;  %v7966_v48 = vor.u32 %v10440_v39, %v7965_v36  ;;  %3510 = vmatmul.bf16.vlgmr.msra.gmra.mxu3 %v11305_v15 }
 0x125   :  { %v10504_v43 = vld [vmem:[#allocation2 + $0xba4] sm:$0xf0]  ;;  %3554 = vmatpush.bf16.msrb.mxu3 %v8766_v42 }
 0x126   :  { %v8477_v44 = vld [vmem:[#allocation2 + $0xd88] sm:$0xf]  ;;  %v8222_v49 = vor.u32 %v10504_v43, %v8221_v41  ;;  %3516 = vmatpush.bf16.msrb.mxu0 %v7966_v48 }
 0x127   :  { %v10568_v45 = vld [vmem:[#allocation2 + $0xda4] sm:$0xf0] }
 0x128   :  { %v8733_v46 = vld [vmem:[#allocation2 + $0xf88] sm:$0xf]  ;;  %v8478_v50 = vor.u32 %v10568_v45, %v8477_v44  ;;  %3529 = vmatpush.bf16.msrb.mxu1 %v8222_v49  ;;  %v3277_v45 = vpop.f32.mrf.mxu1 }
 0x129   :  { %v10632_v47 = vld [vmem:[#allocation2 + $0xfa4] sm:$0xf0] }
 0x12a   :  { %v7933_v51 = vld [vmem:[#allocation2 + $0x948] sm:$0xf]  ;;  %v8734_v54 = vor.u32 %v10632_v47, %v8733_v46  ;;  %3542 = vmatpush.bf16.msrb.mxu2 %v8478_v50 }
 0x12b   :  { %v10432_v52 = vld [vmem:[#allocation2 + $0x964] sm:$0xf0] }
 0x12c   :  { %v8189_v53 = vld [vmem:[#allocation2 + $0xb48] sm:$0xf]  ;;  %v7934_v60 = vor.u32 %v10432_v52, %v7933_v51  ;;  %3555 = vmatpush.bf16.msrb.mxu3 %v8734_v54  ;;  %v3278_v51 = vadd.f32 %v3277_v45, %v3265_v33  ;;  %v10180_v33 = vld [vmem:[#allocation2 + $0x18c] sm:$0xf] }
 0x12d   :  { %v10496_v55 = vld [vmem:[#allocation2 + $0xb64] sm:$0xf0]  ;;  %v10372_v45 = vld [vmem:[#allocation2 + $0x78c] sm:$0xf] }
 0x12e   :  { %v8445_v56 = vld [vmem:[#allocation2 + $0xd48] sm:$0xf]  ;;  %v8190_v62 = vor.u32 %v10496_v55, %v8189_v53  ;;  %3517 = vmatpush.bf16.msrb.mxu0 %v7934_v60  ;;  %v3303_v60 = vpop.f32.mrf.mxu3 }
 0x12f   :  { %v10560_v57 = vld [vmem:[#allocation2 + $0xd64] sm:$0xf0] }
 0x130   :  { %v8701_v58 = vld [vmem:[#allocation2 + $0xf48] sm:$0xf]  ;;  %v8446_v63 = vor.u32 %v10560_v57, %v8445_v56  ;;  %3530 = vmatpush.bf16.msrb.mxu1 %v8190_v62  ;;  %v3290_v56 = vpop.f32.mrf.mxu2 }
 0x131   :  { %v10624_v59 = vld [vmem:[#allocation2 + $0xf64] sm:$0xf0] }
 0x132   :  { %v7901_v61 = vld [vmem:[#allocation2 + $0x908] sm:$0xf]  ;;  %v8702_v3 = vor.u32 %v10624_v59, %v8701_v58  ;;  %3543 = vmatpush.bf16.msrb.mxu2 %v8446_v63  ;;  %v3291_v59 = vadd.f32 %v3290_v56, %v3278_v51  ;;  %v6911_v51 = vld [vmem:[#allocation2 + $0x168] sm:$0xf0] }
 0x133   :  { %v10424_v0 = vld [vmem:[#allocation2 + $0x924] sm:$0xf0]  ;;  %v7423_v56 = vld [vmem:[#allocation2 + $0x568] sm:$0xf0] }
 0x134   :  { %v8157_v1 = vld [vmem:[#allocation2 + $0xb08] sm:$0xf]  ;;  %v7902_v11 = vor.u32 %v10424_v0, %v7901_v61  ;;  %3556 = vmatpush.bf16.msrb.mxu3 %v8702_v3  ;;  %v3266_v0 = vpop.f32.mrf.mxu0 }
 0x135   :  { %v10488_v2 = vld [vmem:[#allocation2 + $0xb24] sm:$0xf0]  ;;  %v10228_v0 = vld [vmem:[#allocation2 + $0x30c] sm:$0xf] }
 0x136   :  { %v8413_v4 = vld [vmem:[#allocation2 + $0xd08] sm:$0xf]  ;;  %v8158_v13 = vor.u32 %v10488_v2, %v8157_v1  ;;  %3518 = vmatpush.bf16.msrb.mxu0 %v7902_v11 }
 0x137   :  { %v10552_v5 = vld [vmem:[#allocation2 + $0xd24] sm:$0xf0] }
 0x138   :  { %v8669_v7 = vld [vmem:[#allocation2 + $0xf08] sm:$0xf]  ;;  %v8414_v14 = vor.u32 %v10552_v5, %v8413_v4  ;;  %3531 = vmatpush.bf16.msrb.mxu1 %v8158_v13 }
 0x139   :  { %v10616_v10 = vld [vmem:[#allocation2 + $0xf24] sm:$0xf0] }
 0x13a   :  { %v7869_v12 = vld [vmem:[#allocation2 + $0x8c8] sm:$0xf]  ;;  %v8670_v19 = vor.u32 %v10616_v10, %v8669_v7  ;;  %3544 = vmatpush.bf16.msrb.mxu2 %v8414_v14  ;;  %v11355_v7 = vadd.f32 %v3303_v60, %v3291_v59  ;;  %v10188_v14 = vld [vmem:[#allocation2 + $0x1cc] sm:$0xf] }
 0x13b   :  { %v10416_v16 = vld [vmem:[#allocation2 + $0x8e4] sm:$0xf0] }
 0x13c   :  { %v8125_v17 = vld [vmem:[#allocation2 + $0xac8] sm:$0xf]  ;;  %v7870_v26 = vor.u32 %v10416_v16, %v7869_v12  ;;  %3557 = vmatpush.bf16.msrb.mxu3 %v8670_v19  ;;  %v6975_v16 = vld [vmem:[#allocation2 + $0x1e8] sm:$0xf0] }
 0x13d   :  { %v10480_v20 = vld [vmem:[#allocation2 + $0xae4] sm:$0xf0]  ;;  %v7231_v19 = vld [vmem:[#allocation2 + $0x3e8] sm:$0xf0] }
 0x13e   :  { %v8381_v21 = vld [vmem:[#allocation2 + $0xcc8] sm:$0xf]  ;;  %v8126_v28 = vor.u32 %v10480_v20, %v8125_v17  ;;  %3519 = vmatpush.bf16.msrb.mxu0 %v7870_v26  ;;  %v10252_v17 = vld [vmem:[#allocation2 + $0x3cc] sm:$0xf] }
 0x13f   :  { %v10544_v22 = vld [vmem:[#allocation2 + $0xce4] sm:$0xf0]  ;;  %v10316_v20 = vld [vmem:[#allocation2 + $0x5cc] sm:$0xf] }
 0x140   :  { %v8637_v23 = vld [vmem:[#allocation2 + $0xec8] sm:$0xf]  ;;  %v8382_v29 = vor.u32 %v10544_v22, %v8381_v21  ;;  %3532 = vmatpush.bf16.msrb.mxu1 %v8126_v28  ;;  %v7487_v21 = vld [vmem:[#allocation2 + $0x5e8] sm:$0xf0]  ;;  %v3279_v22 = vpop.f32.mrf.mxu1 }
 0x141   :  { %v10608_v24 = vld [vmem:[#allocation2 + $0xee4] sm:$0xf0]  ;;  %v10380_v26 = vld [vmem:[#allocation2 + $0x7cc] sm:$0xf] }
 0x142   :  { %v7837_v30 = vld [vmem:[#allocation2 + $0x888] sm:$0xf]  ;;  %v8638_v35 = vor.u32 %v10608_v24, %v8637_v23  ;;  %3545 = vmatpush.bf16.msrb.mxu2 %v8382_v29  ;;  %v6978_v29 = vor.u32 %v10188_v14, %v6975_v16  ;;  %v10156_v16 = vld [vmem:[#allocation2 + $0xcc] sm:$0xf] }
 0x143   :  { %v10408_v31 = vld [vmem:[#allocation2 + $0x8a4] sm:$0xf0]  ;;  %v7103_v22 = vld [vmem:[#allocation2 + $0x2e8] sm:$0xf0] }
 0x144   :  { %v8093_v32 = vld [vmem:[#allocation2 + $0xa88] sm:$0xf]  ;;  %v7838_v44 = vor.u32 %v10408_v31, %v7837_v30  ;;  %3558 = vmatpush.bf16.msrb.mxu3 %v8638_v35  ;;  %v3292_v30 = vpop.f32.mrf.mxu2  ;;  %v7234_v31 = vor.u32 %v10252_v17, %v7231_v19  ;;  %v6943_v35 = vld [vmem:[#allocation2 + $0x1a8] sm:$0xf0] }
 0x145   :  { %v10472_v36 = vld [vmem:[#allocation2 + $0xaa4] sm:$0xf0]  ;;  %v6847_v17 = vld [vmem:[#allocation2 + $0xe8] sm:$0xf0] }
 0x146   :  { %v8349_v39 = vld [vmem:[#allocation2 + $0xc88] sm:$0xf]  ;;  %v8094_v46 = vor.u32 %v10472_v36, %v8093_v32  ;;  %3520 = vmatpush.bf16.msrb.mxu0 %v7838_v44  ;;  %v7490_v32 = vor.u32 %v10316_v20, %v7487_v21  ;;  %v10244_v36 = vld [vmem:[#allocation2 + $0x38c] sm:$0xf] }
 0x147   :  { %v10536_v41 = vld [vmem:[#allocation2 + $0xca4] sm:$0xf0]  ;;  %v7455_v44 = vld [vmem:[#allocation2 + $0x5a8] sm:$0xf0] }
 0x148   :  { %v8605_v42 = vld [vmem:[#allocation2 + $0xe88] sm:$0xf]  ;;  %v8350_v47 = vor.u32 %v10536_v41, %v8349_v39  ;;  %3533 = vmatpush.bf16.msrb.mxu1 %v8094_v46  ;;  %v3305_v39 = vpop.f32.mrf.mxu3  ;;  %v7746_v41 = vor.u32 %v10380_v26, %v7743_v27  ;;  %v7711_v46 = vld [vmem:[#allocation2 + $0x7a8] sm:$0xf0]  ;;  %v3329_v20 = vpop.f32.mrf.mxu1 }
 0x149   :  { %v10600_v43 = vld [vmem:[#allocation2 + $0xea4] sm:$0xf0]  ;;  %v10348_v26 = vld [vmem:[#allocation2 + $0x6cc] sm:$0xf] }
 0x14a   :  { %v7805_v48 = vld [vmem:[#allocation2 + $0x848] sm:$0xf]  ;;  %v8606_v52 = vor.u32 %v10600_v43, %v8605_v42  ;;  %3546 = vmatpush.bf16.msrb.mxu2 %v8350_v47  ;;  %v7199_v42 = vld [vmem:[#allocation2 + $0x3a8] sm:$0xf0]  ;;  %v6946_v47 = vor.u32 %v10180_v33, %v6943_v35 }
 0x14b   :  { %v10400_v49 = vld [vmem:[#allocation2 + $0x864] sm:$0xf0]  ;;  %v10308_v43 = vld [vmem:[#allocation2 + $0x58c] sm:$0xf] }
 0x14c   :  { %v8061_v50 = vld [vmem:[#allocation2 + $0xa48] sm:$0xf]  ;;  %v7806_v61 = vor.u32 %v10400_v49, %v7805_v48  ;;  %3559 = vmatpush.bf16.msrb.mxu3 %v8606_v52  ;;  %v7202_v48 = vor.u32 %v10244_v36, %v7199_v42  ;;  %v7458_v49 = vor.u32 %v10308_v43, %v7455_v44  ;;  %v10236_v52 = vld [vmem:[#allocation2 + $0x34c] sm:$0xf]  ;;  %v3342_v36 = vpop.f32.mrf.mxu2 }
 0x14d   :  { %v10464_v53 = vld [vmem:[#allocation2 + $0xa64] sm:$0xf0]  ;;  %v7615_v27 = vld [vmem:[#allocation2 + $0x6e8] sm:$0xf0] }
 0x14e   :  { %v8317_v54 = vld [vmem:[#allocation2 + $0xc48] sm:$0xf]  ;;  %v8062_v1 = vor.u32 %v10464_v53, %v8061_v50  ;;  %3521 = vmatpush.bf16.msrb.mxu0 %v7806_v61  ;;  %v10172_v50 = vld [vmem:[#allocation2 + $0x14c] sm:$0xf]  ;;  %v7714_v53 = vor.u32 %v10372_v45, %v7711_v46 }
 0x14f   :  { %v10528_v55 = vld [vmem:[#allocation2 + $0xc64] sm:$0xf0]  ;;  %v6914_v59 = vor.u32 %v10172_v50, %v6911_v51  ;;  %v6815_v33 = vld [vmem:[#allocation2 + $0xa8] sm:$0xf0] }
 0x150   :  { %v8573_v57 = vld [vmem:[#allocation2 + $0xe48] sm:$0xf]  ;;  %v8318_v2 = vor.u32 %v10528_v55, %v8317_v54  ;;  %3534 = vmatpush.bf16.msrb.mxu1 %v8062_v1  ;;  %v7167_v54 = vld [vmem:[#allocation2 + $0x368] sm:$0xf0]  ;;  %v3355_v44 = vpop.f32.mrf.mxu3 }
 0x151   :  { %v10592_v58 = vld [vmem:[#allocation2 + $0xe64] sm:$0xf0]  ;;  %v10300_v55 = vld [vmem:[#allocation2 + $0x54c] sm:$0xf]  ;;  %v7170_v60 = vor.u32 %v10236_v52, %v7167_v54 }
 0x152   :  { %v7773_v62 = vld [vmem:[#allocation2 + $0x808] sm:$0xf]  ;;  %v8574_v10 = vor.u32 %v10592_v58, %v8573_v57  ;;  %3547 = vmatpush.bf16.msrb.mxu2 %v8318_v2  ;;  %v10364_v57 = vld [vmem:[#allocation2 + $0x74c] sm:$0xf]  ;;  %v7426_v61 = vor.u32 %v10300_v55, %v7423_v56  ;;  %v3331_v55 = vpop.f32.mrf.mxu1 }
 0x153   :  { %v10392_v63 = vld [vmem:[#allocation2 + $0x824] sm:$0xf0]  ;;  %v7679_v58 = vld [vmem:[#allocation2 + $0x768] sm:$0xf0] }
 0x154   :  { %v8029_v3 = vld [vmem:[#allocation2 + $0xa08] sm:$0xf]  ;;  %v7774_v18 = vor.u32 %v10392_v63, %v7773_v62  ;;  %3560 = vmatpush.bf16.msrb.mxu3 %v8574_v10  ;;  %v10164_v62 = vld [vmem:[#allocation2 + $0x10c] sm:$0xf]  ;;  %v7682_v1 = vor.u32 %v10364_v57, %v7679_v58 }
 0x155   :  { %v10456_v4 = vld [vmem:[#allocation2 + $0xa24] sm:$0xf0]  ;;  %v6879_v63 = vld [vmem:[#allocation2 + $0x128] sm:$0xf0] }
 0x156   :  { %v8285_v5 = vld [vmem:[#allocation2 + $0xc08] sm:$0xf]  ;;  %v8030_v23 = vor.u32 %v10456_v4, %v8029_v3  ;;  %3522 = vmatpush.bf16.msrb.mxu0 %v7774_v18  ;;  %v7135_v2 = vld [vmem:[#allocation2 + $0x328] sm:$0xf0] }
 0x157   :  { %v10520_v11 = vld [vmem:[#allocation2 + $0xc24] sm:$0xf0]  ;;  %v10292_v3 = vld [vmem:[#allocation2 + $0x50c] sm:$0xf] }
 0x158   :  { %v8541_v12 = vld [vmem:[#allocation2 + $0xe08] sm:$0xf]  ;;  %v8286_v24 = vor.u32 %v10520_v11, %v8285_v5  ;;  %3535 = vmatpush.bf16.msrb.mxu1 %v8030_v23  ;;  %v7391_v4 = vld [vmem:[#allocation2 + $0x528] sm:$0xf0]  ;;  %v6882_v11 = vor.u32 %v10164_v62, %v6879_v63 }
 0x159   :  { %v10584_v13 = vld [vmem:[#allocation2 + $0xe24] sm:$0xf0]  ;;  %3523 = vmatmul.bf16.vlgmr.msrb.gmra.mxu0 %v11330_v37  ;;  %v10356_v5 = vld [vmem:[#allocation2 + $0x70c] sm:$0xf]  ;;  %v7394_v14 = vor.u32 %v10292_v3, %v7391_v4 }
 0x15a   :  { %v8542_v28 = vor.u32 %v10584_v13, %v8541_v12  ;;  %3548 = vmatpush.bf16.msrb.mxu2 %v8286_v24  ;;  %3567 = vmatpush.bf16.msra.mxu0 %v6978_v29  ;;  %v7647_v10 = vld [vmem:[#allocation2 + $0x728] sm:$0xf0]  ;;  %v3316_v12 = vpop.f32.mrf.mxu0  ;;  %v7138_v13 = vor.u32 %v10228_v0, %v7135_v2  ;;  %v6850_v29 = vor.u32 %v10156_v16, %v6847_v17  ;;  %v3357_v16 = vpop.f32.mrf.mxu3 }
 0x15b   :  { %3536 = vmatmul.bf16.vlgmr.msrb.gmra.mxu1 %v11334_v40  ;;  %v10220_v18 = vld [vmem:[#allocation2 + $0x2cc] sm:$0xf]  ;;  %v3317_v19 = vadd.f32 %v3316_v12, %v11355_v7  ;;  %v7650_v21 = vor.u32 %v10356_v5, %v7647_v10  ;;  %v7618_v7 = vor.u32 %v10348_v26, %v7615_v27  ;;  %v3344_v10 = vpop.f32.mrf.mxu2 }
 0x15c   :  { %3561 = vmatpush.bf16.msrb.mxu3 %v8542_v28  ;;  %3580 = vmatpush.bf16.msra.mxu1 %v7234_v31  ;;  %v10284_v23 = vld [vmem:[#allocation2 + $0x4cc] sm:$0xf]  ;;  %v7106_v30 = vor.u32 %v10220_v18, %v7103_v22 }
 0x15d   :  { %3549 = vmatmul.bf16.vlgmr.msrb.gmra.mxu2 %v11328_v34  ;;  %v7359_v24 = vld [vmem:[#allocation2 + $0x4e8] sm:$0xf0]  ;;  %v3330_v28 = vadd.f32 %v3329_v20, %v3317_v19 }
 0x15e   :  { %3593 = vmatpush.bf16.msra.mxu2 %v7490_v32  ;;  %3568 = vmatpush.bf16.msra.mxu0 %v6946_v47  ;;  %v7362_v31 = vor.u32 %v10284_v23, %v7359_v24  ;;  %v10148_v32 = vld [vmem:[#allocation2 + $0x8c] sm:$0xf] }
 0x15f   :  { %3562 = vmatmul.bf16.vlgmr.msrb.gmra.mxu3 %v11332_v38  ;;  %v10212_v35 = vld [vmem:[#allocation2 + $0x28c] sm:$0xf]  ;;  %v3343_v43 = vadd.f32 %v3342_v36, %v3330_v28  ;;  %v6818_v47 = vor.u32 %v10148_v32, %v6815_v33 }
 0x160   :  { %3606 = vmatpush.bf16.msra.mxu3 %v7746_v41  ;;  %3581 = vmatpush.bf16.msra.mxu1 %v7202_v48  ;;  %v7071_v39 = vld [vmem:[#allocation2 + $0x2a8] sm:$0xf0] }
 0x161   :  { %v10276_v41 = vld [vmem:[#allocation2 + $0x48c] sm:$0xf]  ;;  %v11362_v48 = vadd.f32 %v3355_v44, %v3343_v43  ;;  %v7074_v50 = vor.u32 %v10212_v35, %v7071_v39 }
 0x162   :  { %3594 = vmatpush.bf16.msra.mxu2 %v7458_v49  ;;  %3569 = vmatpush.bf16.msra.mxu0 %v6914_v59  ;;  %v7327_v42 = vld [vmem:[#allocation2 + $0x4a8] sm:$0xf0]  ;;  %v3318_v49 = vpop.f32.mrf.mxu0 }
 0x163   :  { %v10340_v45 = vld [vmem:[#allocation2 + $0x68c] sm:$0xf]  ;;  %v7330_v51 = vor.u32 %v10276_v41, %v7327_v42 }
 0x164   :  { %3607 = vmatpush.bf16.msra.mxu3 %v7714_v53  ;;  %3582 = vmatpush.bf16.msra.mxu1 %v7170_v60  ;;  %v7583_v46 = vld [vmem:[#allocation2 + $0x6a8] sm:$0xf0] }
 0x165   :  { %v10140_v52 = vld [vmem:[#allocation2 + $0x4c] sm:$0xf]  ;;  %v7586_v56 = vor.u32 %v10340_v45, %v7583_v46 }
 0x166   :  { %3595 = vmatpush.bf16.msra.mxu2 %v7426_v61  ;;  %3570 = vmatpush.bf16.msra.mxu0 %v6882_v11  ;;  %v6783_v53 = vld [vmem:[#allocation2 + $0x68] sm:$0xf0] }
 0x167   :  { %v10204_v54 = vld [vmem:[#allocation2 + $0x24c] sm:$0xf]  ;;  %v6786_v62 = vor.u32 %v10140_v52, %v6783_v53 }
 0x168   :  { %3608 = vmatpush.bf16.msra.mxu3 %v7682_v1  ;;  %3583 = vmatpush.bf16.msra.mxu1 %v7138_v13  ;;  %v7039_v57 = vld [vmem:[#allocation2 + $0x268] sm:$0xf0] }
 0x169   :  { %v10268_v58 = vld [vmem:[#allocation2 + $0x44c] sm:$0xf]  ;;  %v7042_v1 = vor.u32 %v10204_v54, %v7039_v57 }
 0x16a   :  { %3596 = vmatpush.bf16.msra.mxu2 %v7394_v14  ;;  %3571 = vmatpush.bf16.msra.mxu0 %v6850_v29  ;;  %v7295_v59 = vld [vmem:[#allocation2 + $0x468] sm:$0xf0] }
 0x16b   :  { %v10332_v60 = vld [vmem:[#allocation2 + $0x64c] sm:$0xf]  ;;  %v7298_v2 = vor.u32 %v10268_v58, %v7295_v59 }
 0x16c   :  { %3609 = vmatpush.bf16.msra.mxu3 %v7650_v21  ;;  %3584 = vmatpush.bf16.msra.mxu1 %v7106_v30  ;;  %v7551_v61 = vld [vmem:[#allocation2 + $0x668] sm:$0xf0] }
 0x16d   :  { %v10132_v63 = vld [vmem:[#allocation2 + $0xc] sm:$0xf]  ;;  %v7554_v11 = vor.u32 %v10332_v60, %v7551_v61 }
 0x16e   :  { %3597 = vmatpush.bf16.msra.mxu2 %v7362_v31  ;;  %3572 = vmatpush.bf16.msra.mxu0 %v6818_v47  ;;  %v6751_v0 = vld [vmem:[#allocation2 + $0x28] sm:$0xf0] }
 0x16f   :  { %v10196_v3 = vld [vmem:[#allocation2 + $0x20c] sm:$0xf]  ;;  %v6754_v20 = vor.u32 %v10132_v63, %v6751_v0  ;;  %v680_v0 = vperm.slane %v11352_v6, 1 }
 0x170   :  { %3610 = vmatpush.bf16.msra.mxu3 %v7618_v7  ;;  %3585 = vmatpush.bf16.msra.mxu1 %v7074_v50  ;;  %v7007_v4 = vld [vmem:[#allocation2 + $0x228] sm:$0xf0] }
 0x171   :  { %v10260_v5 = vld [vmem:[#allocation2 + $0x40c] sm:$0xf]  ;;  %v7010_v24 = vor.u32 %v10196_v3, %v7007_v4 }
 0x172   :  { %3598 = vmatpush.bf16.msra.mxu2 %v7330_v51  ;;  %v7263_v12 = vld [vmem:[#allocation2 + $0x428] sm:$0xf0]  ;;  %3573 = vmatpush.bf16.msra.mxu0 %v6786_v62 }
 0x173   :  { %v10324_v13 = vld [vmem:[#allocation2 + $0x60c] sm:$0xf]  ;;  %v7266_v26 = vor.u32 %v10260_v5, %v7263_v12  ;;  %v3368_v12 = vpop.f32.mrf.mxu0 }
 0x174   :  { %3611 = vmatpush.bf16.msra.mxu3 %v7586_v56  ;;  %v7519_v14 = vld [vmem:[#allocation2 + $0x628] sm:$0xf0]  ;;  %3586 = vmatpush.bf16.msra.mxu1 %v7042_v1 }
 0x175   :  { %v10444_v17 = vld [vmem:[#allocation2 + $0x9cc] sm:$0xf]  ;;  %v7522_v29 = vor.u32 %v10324_v13, %v7519_v14 }
 0x176   :  { %v7999_v18 = vld [vmem:[#allocation2 + $0x9e8] sm:$0xf0]  ;;  %3599 = vmatpush.bf16.msra.mxu2 %v7298_v2  ;;  %3574 = vmatpush.bf16.msra.mxu0 %v6754_v20  ;;  %v3381_v20 = vpop.f32.mrf.mxu1 }
 0x177   :  { %v10508_v19 = vld [vmem:[#allocation2 + $0xbcc] sm:$0xf]  ;;  %v8002_v30 = vor.u32 %v10444_v17, %v7999_v18 }
 0x178   :  { %v8255_v21 = vld [vmem:[#allocation2 + $0xbe8] sm:$0xf0]  ;;  %3612 = vmatpush.bf16.msra.mxu3 %v7554_v11  ;;  %3587 = vmatpush.bf16.msra.mxu1 %v7010_v24 }
 0x179   :  { %v10572_v22 = vld [vmem:[#allocation2 + $0xdcc] sm:$0xf]  ;;  %v8258_v31 = vor.u32 %v10508_v19, %v8255_v21  ;;  %3575 = vmatmul.bf16.vlgmr.msra.gmra.mxu0 %v11300_v9  ;;  %v3369_v19 = vadd.f32 %v3368_v12, %v680_v0 }
 0x17a   :  { %v8511_v23 = vld [vmem:[#allocation2 + $0xde8] sm:$0xf0]  ;;  %3600 = vmatpush.bf16.msra.mxu2 %v7266_v26  ;;  %3619 = vmatpush.bf16.msrb.mxu0 %v8002_v30 }
 0x17b   :  { %v10636_v27 = vld [vmem:[#allocation2 + $0xfcc] sm:$0xf]  ;;  %v8514_v32 = vor.u32 %v10572_v22, %v8511_v23  ;;  %3588 = vmatmul.bf16.vlgmr.msra.gmra.mxu1 %v11313_v25 }
 0x17c   :  { %v8767_v28 = vld [vmem:[#allocation2 + $0xfe8] sm:$0xf0]  ;;  %3613 = vmatpush.bf16.msra.mxu3 %v7522_v29  ;;  %3632 = vmatpush.bf16.msrb.mxu1 %v8258_v31 }
 0x17d   :  { %v10436_v33 = vld [vmem:[#allocation2 + $0x98c] sm:$0xf]  ;;  %v8770_v7 = vor.u32 %v10636_v27, %v8767_v28  ;;  %3601 = vmatmul.bf16.vlgmr.msra.gmra.mxu2 %v11298_v8  ;;  %v3382_v27 = vadd.f32 %v3381_v20, %v3369_v19  ;;  %v7237_v19 = vld [vmem:[#allocation2 + $0x3d0] sm:$0xf] }
 0x17e   :  { %v7967_v35 = vld [vmem:[#allocation2 + $0x9a8] sm:$0xf0]  ;;  %3645 = vmatpush.bf16.msrb.mxu2 %v8514_v32 }
 0x17f   :  { %v10500_v36 = vld [vmem:[#allocation2 + $0xb8c] sm:$0xf]  ;;  %v7970_v45 = vor.u32 %v10436_v33, %v7967_v35  ;;  %3614 = vmatmul.bf16.vlgmr.msra.gmra.mxu3 %v11305_v15  ;;  %v3394_v35 = vpop.f32.mrf.mxu2 }
 0x180   :  { %v8223_v39 = vld [vmem:[#allocation2 + $0xba8] sm:$0xf0]  ;;  %3658 = vmatpush.bf16.msrb.mxu3 %v8770_v7 }
 0x181   :  { %v10564_v41 = vld [vmem:[#allocation2 + $0xd8c] sm:$0xf]  ;;  %v8226_v46 = vor.u32 %v10500_v36, %v8223_v39  ;;  %3620 = vmatpush.bf16.msrb.mxu0 %v7970_v45 }
 0x182   :  { %v8479_v42 = vld [vmem:[#allocation2 + $0xda8] sm:$0xf0] }
 0x183   :  { %v10628_v43 = vld [vmem:[#allocation2 + $0xf8c] sm:$0xf]  ;;  %v8482_v47 = vor.u32 %v10564_v41, %v8479_v42  ;;  %3633 = vmatpush.bf16.msrb.mxu1 %v8226_v46  ;;  %v3395_v42 = vadd.f32 %v3394_v35, %v3382_v27  ;;  %v10385_v27 = vld [vmem:[#allocation2 + $0x7ec] sm:$0xf0] }
 0x184   :  { %v8735_v44 = vld [vmem:[#allocation2 + $0xfa8] sm:$0xf0]  ;;  %v7205_v35 = vld [vmem:[#allocation2 + $0x390] sm:$0xf] }
 0x185   :  { %v10428_v49 = vld [vmem:[#allocation2 + $0x94c] sm:$0xf]  ;;  %v8738_v52 = vor.u32 %v10628_v43, %v8735_v44  ;;  %3646 = vmatpush.bf16.msrb.mxu2 %v8482_v47  ;;  %v3407_v43 = vpop.f32.mrf.mxu3 }
 0x186   :  { %v7935_v50 = vld [vmem:[#allocation2 + $0x968] sm:$0xf0]  ;;  %v11369_v47 = vadd.f32 %v3407_v43, %v3395_v42  ;;  %v7717_v42 = vld [vmem:[#allocation2 + $0x790] sm:$0xf] }
 0x187   :  { %v10492_v51 = vld [vmem:[#allocation2 + $0xb4c] sm:$0xf]  ;;  %v7938_v58 = vor.u32 %v10428_v49, %v7935_v50  ;;  %3659 = vmatpush.bf16.msrb.mxu3 %v8738_v52  ;;  %v3370_v49 = vpop.f32.mrf.mxu0  ;;  %v10377_v43 = vld [vmem:[#allocation2 + $0x7ac] sm:$0xf0] }
 0x188   :  { %v8191_v53 = vld [vmem:[#allocation2 + $0xb68] sm:$0xf0]  ;;  %v6917_v49 = vld [vmem:[#allocation2 + $0x150] sm:$0xf] }
 0x189   :  { %v10556_v54 = vld [vmem:[#allocation2 + $0xd4c] sm:$0xf]  ;;  %v8194_v60 = vor.u32 %v10492_v51, %v8191_v53  ;;  %3621 = vmatpush.bf16.msrb.mxu0 %v7938_v58 }
 0x18a   :  { %v8447_v55 = vld [vmem:[#allocation2 + $0xd68] sm:$0xf0] }
 0x18b   :  { %v10620_v56 = vld [vmem:[#allocation2 + $0xf4c] sm:$0xf]  ;;  %v8450_v61 = vor.u32 %v10556_v54, %v8447_v55  ;;  %3634 = vmatpush.bf16.msrb.mxu1 %v8194_v60  ;;  %v3383_v55 = vpop.f32.mrf.mxu1 }
 0x18c   :  { %v8703_v57 = vld [vmem:[#allocation2 + $0xf68] sm:$0xf0]  ;;  %v10305_v55 = vld [vmem:[#allocation2 + $0x56c] sm:$0xf0] }
 0x18d   :  { %v10420_v59 = vld [vmem:[#allocation2 + $0x90c] sm:$0xf]  ;;  %v8706_v1 = vor.u32 %v10620_v56, %v8703_v57  ;;  %3647 = vmatpush.bf16.msrb.mxu2 %v8450_v61 }
 0x18e   :  { %v7903_v62 = vld [vmem:[#allocation2 + $0x928] sm:$0xf0] }
 0x18f   :  { %v10484_v63 = vld [vmem:[#allocation2 + $0xb0c] sm:$0xf]  ;;  %v7906_v11 = vor.u32 %v10420_v59, %v7903_v62  ;;  %3660 = vmatpush.bf16.msrb.mxu3 %v8706_v1 }
 0x190   :  { %v8159_v2 = vld [vmem:[#allocation2 + $0xb28] sm:$0xf0] }
 0x191   :  { %v10548_v3 = vld [vmem:[#allocation2 + $0xd0c] sm:$0xf]  ;;  %v8162_v13 = vor.u32 %v10484_v63, %v8159_v2  ;;  %3622 = vmatpush.bf16.msrb.mxu0 %v7906_v11 }
 0x192   :  { %v8415_v4 = vld [vmem:[#allocation2 + $0xd28] sm:$0xf0] }
 0x193   :  { %v10612_v5 = vld [vmem:[#allocation2 + $0xf0c] sm:$0xf]  ;;  %v8418_v14 = vor.u32 %v10548_v3, %v8415_v4  ;;  %3635 = vmatpush.bf16.msrb.mxu1 %v8162_v13 }
 0x194   :  { %v8671_v10 = vld [vmem:[#allocation2 + $0xf28] sm:$0xf0] }
 0x195   :  { %v10412_v16 = vld [vmem:[#allocation2 + $0x8cc] sm:$0xf]  ;;  %v8674_v6 = vor.u32 %v10612_v5, %v8671_v10  ;;  %3648 = vmatpush.bf16.msrb.mxu2 %v8418_v14  ;;  %v3396_v10 = vpop.f32.mrf.mxu2 }
 0x196   :  { %v7871_v17 = vld [vmem:[#allocation2 + $0x8e8] sm:$0xf0] }
 0x197   :  { %v10476_v18 = vld [vmem:[#allocation2 + $0xacc] sm:$0xf]  ;;  %v7874_v28 = vor.u32 %v10412_v16, %v7871_v17  ;;  %3661 = vmatpush.bf16.msrb.mxu3 %v8674_v6  ;;  %v3409_v16 = vpop.f32.mrf.mxu3  ;;  %v6981_v17 = vld [vmem:[#allocation2 + $0x1d0] sm:$0xf] }
 0x198   :  { %v8127_v21 = vld [vmem:[#allocation2 + $0xae8] sm:$0xf0]  ;;  %v10257_v6 = vld [vmem:[#allocation2 + $0x3ec] sm:$0xf0] }
 0x199   :  { %v10540_v22 = vld [vmem:[#allocation2 + $0xccc] sm:$0xf]  ;;  %v8130_v29 = vor.u32 %v10476_v18, %v8127_v21  ;;  %3623 = vmatpush.bf16.msrb.mxu0 %v7874_v28  ;;  %v10193_v18 = vld [vmem:[#allocation2 + $0x1ec] sm:$0xf0] }
 0x19a   :  { %v8383_v23 = vld [vmem:[#allocation2 + $0xce8] sm:$0xf0]  ;;  %v7493_v21 = vld [vmem:[#allocation2 + $0x5d0] sm:$0xf] }
 0x19b   :  { %v10604_v24 = vld [vmem:[#allocation2 + $0xecc] sm:$0xf]  ;;  %v8386_v30 = vor.u32 %v10540_v22, %v8383_v23  ;;  %3636 = vmatpush.bf16.msrb.mxu1 %v8130_v29  ;;  %v10321_v22 = vld [vmem:[#allocation2 + $0x5ec] sm:$0xf0]  ;;  %v6982_v29 = vor.u32 %v10193_v18, %v6981_v17 }
 0x19c   :  { %v8639_v26 = vld [vmem:[#allocation2 + $0xee8] sm:$0xf0]  ;;  %v10161_v16 = vld [vmem:[#allocation2 + $0xec] sm:$0xf0] }
 0x19d   :  { %v10404_v31 = vld [vmem:[#allocation2 + $0x88c] sm:$0xf]  ;;  %v8642_v36 = vor.u32 %v10604_v24, %v8639_v26  ;;  %3649 = vmatpush.bf16.msrb.mxu2 %v8386_v30  ;;  %v7749_v26 = vld [vmem:[#allocation2 + $0x7d0] sm:$0xf]  ;;  %v7238_v30 = vor.u32 %v10257_v6, %v7237_v19  ;;  %v3433_v19 = vpop.f32.mrf.mxu1 }
 0x19e   :  { %v7839_v32 = vld [vmem:[#allocation2 + $0x8a8] sm:$0xf0]  ;;  %v7109_v17 = vld [vmem:[#allocation2 + $0x2d0] sm:$0xf] }
 0x19f   :  { %v10468_v33 = vld [vmem:[#allocation2 + $0xa8c] sm:$0xf]  ;;  %v7842_v46 = vor.u32 %v10404_v31, %v7839_v32  ;;  %3662 = vmatpush.bf16.msrb.mxu3 %v8642_v36  ;;  %v7494_v31 = vor.u32 %v10321_v22, %v7493_v21  ;;  %v6949_v32 = vld [vmem:[#allocation2 + $0x190] sm:$0xf]  ;;  %v7750_v36 = vor.u32 %v10385_v27, %v7749_v26 }
 0x1a0   :  { %v8095_v7 = vld [vmem:[#allocation2 + $0xaa8] sm:$0xf0]  ;;  %v10225_v6 = vld [vmem:[#allocation2 + $0x2ec] sm:$0xf0] }
 0x1a1   :  { %v10532_v39 = vld [vmem:[#allocation2 + $0xc8c] sm:$0xf]  ;;  %v8098_v50 = vor.u32 %v10468_v33, %v8095_v7  ;;  %3624 = vmatpush.bf16.msrb.mxu0 %v7842_v46  ;;  %v10185_v33 = vld [vmem:[#allocation2 + $0x1ac] sm:$0xf0] }
 0x1a2   :  { %v8351_v41 = vld [vmem:[#allocation2 + $0xca8] sm:$0xf0]  ;;  %v10249_v7 = vld [vmem:[#allocation2 + $0x3ac] sm:$0xf0] }
 0x1a3   :  { %v10596_v44 = vld [vmem:[#allocation2 + $0xe8c] sm:$0xf]  ;;  %v8354_v51 = vor.u32 %v10532_v39, %v8351_v41  ;;  %3637 = vmatpush.bf16.msrb.mxu1 %v8098_v50  ;;  %v7461_v39 = vld [vmem:[#allocation2 + $0x590] sm:$0xf] }
 0x1a4   :  { %v8607_v45 = vld [vmem:[#allocation2 + $0xea8] sm:$0xf0]  ;;  %v10313_v41 = vld [vmem:[#allocation2 + $0x5ac] sm:$0xf0] }
 0x1a5   :  { %v10396_v52 = vld [vmem:[#allocation2 + $0x84c] sm:$0xf]  ;;  %v8610_v56 = vor.u32 %v10596_v44, %v8607_v45  ;;  %3650 = vmatpush.bf16.msrb.mxu2 %v8354_v51  ;;  %v6950_v44 = vor.u32 %v10185_v33, %v6949_v32  ;;  %v7206_v45 = vor.u32 %v10249_v7, %v7205_v35  ;;  %v7462_v46 = vor.u32 %v10313_v41, %v7461_v39  ;;  %v10177_v50 = vld [vmem:[#allocation2 + $0x16c] sm:$0xf0]  ;;  %v3446_v33 = vpop.f32.mrf.mxu2  ;;  %v3459_v41 = vpop.f32.mrf.mxu3 }
 0x1a6   :  { %v7807_v53 = vld [vmem:[#allocation2 + $0x868] sm:$0xf0]  ;;  %v7173_v51 = vld [vmem:[#allocation2 + $0x350] sm:$0xf] }
 0x1a7   :  { %v10460_v54 = vld [vmem:[#allocation2 + $0xa4c] sm:$0xf]  ;;  %v7810_v62 = vor.u32 %v10396_v52, %v7807_v53  ;;  %3663 = vmatpush.bf16.msrb.mxu3 %v8610_v56  ;;  %v7718_v52 = vor.u32 %v10377_v43, %v7717_v42  ;;  %v10241_v53 = vld [vmem:[#allocation2 + $0x36c] sm:$0xf0] }
 0x1a8   :  { %v8063_v57 = vld [vmem:[#allocation2 + $0xa68] sm:$0xf0]  ;;  %v7685_v56 = vld [vmem:[#allocation2 + $0x750] sm:$0xf] }
 0x1a9   :  { %v10524_v58 = vld [vmem:[#allocation2 + $0xc4c] sm:$0xf]  ;;  %v8066_v1 = vor.u32 %v10460_v54, %v8063_v57  ;;  %3625 = vmatpush.bf16.msrb.mxu0 %v7810_v62  ;;  %v7429_v54 = vld [vmem:[#allocation2 + $0x550] sm:$0xf] }
 0x1aa   :  { %v8319_v59 = vld [vmem:[#allocation2 + $0xc68] sm:$0xf0]  ;;  %v10369_v57 = vld [vmem:[#allocation2 + $0x76c] sm:$0xf0] }
 0x1ab   :  { %v10588_v60 = vld [vmem:[#allocation2 + $0xe4c] sm:$0xf]  ;;  %v8322_v2 = vor.u32 %v10524_v58, %v8319_v59  ;;  %3638 = vmatpush.bf16.msrb.mxu1 %v8066_v1  ;;  %v6918_v58 = vor.u32 %v10177_v50, %v6917_v49  ;;  %v7174_v59 = vor.u32 %v10241_v53, %v7173_v51  ;;  %v10169_v62 = vld [vmem:[#allocation2 + $0x12c] sm:$0xf0] }
 0x1ac   :  { %v8575_v61 = vld [vmem:[#allocation2 + $0xe68] sm:$0xf0]  ;;  %v10233_v1 = vld [vmem:[#allocation2 + $0x32c] sm:$0xf0] }
 0x1ad   :  { %v10388_v63 = vld [vmem:[#allocation2 + $0x80c] sm:$0xf]  ;;  %v8578_v11 = vor.u32 %v10588_v60, %v8575_v61  ;;  %3651 = vmatpush.bf16.msrb.mxu2 %v8322_v2  ;;  %v7430_v60 = vor.u32 %v10305_v55, %v7429_v54  ;;  %v6885_v61 = vld [vmem:[#allocation2 + $0x110] sm:$0xf]  ;;  %v3435_v54 = vpop.f32.mrf.mxu1 }
 0x1ae   :  { %v7775_v0 = vld [vmem:[#allocation2 + $0x828] sm:$0xf0]  ;;  %v7397_v2 = vld [vmem:[#allocation2 + $0x510] sm:$0xf]  ;;  %v6886_v10 = vor.u32 %v10169_v62, %v6885_v61 }
 0x1af   :  { %v10452_v3 = vld [vmem:[#allocation2 + $0xa0c] sm:$0xf]  ;;  %v7778_v20 = vor.u32 %v10388_v63, %v7775_v0  ;;  %3664 = vmatpush.bf16.msrb.mxu3 %v8578_v11  ;;  %v7141_v63 = vld [vmem:[#allocation2 + $0x310] sm:$0xf]  ;;  %v7686_v0 = vor.u32 %v10369_v57, %v7685_v56  ;;  %v3420_v11 = vpop.f32.mrf.mxu0 }
 0x1b0   :  { %v8031_v4 = vld [vmem:[#allocation2 + $0xa28] sm:$0xf0]  ;;  %v3421_v18 = vadd.f32 %v3420_v11, %v11369_v47  ;;  %v7365_v21 = vld [vmem:[#allocation2 + $0x4d0] sm:$0xf] }
 0x1b1   :  { %v10516_v5 = vld [vmem:[#allocation2 + $0xc0c] sm:$0xf]  ;;  %v8034_v23 = vor.u32 %v10452_v3, %v8031_v4  ;;  %3626 = vmatpush.bf16.msrb.mxu0 %v7778_v20  ;;  %v10297_v3 = vld [vmem:[#allocation2 + $0x52c] sm:$0xf0] }
 0x1b2   :  { %v8287_v12 = vld [vmem:[#allocation2 + $0xc28] sm:$0xf0]  ;;  %v7653_v4 = vld [vmem:[#allocation2 + $0x710] sm:$0xf]  ;;  %v3434_v26 = vadd.f32 %v3433_v19, %v3421_v18 }
 0x1b3   :  { %v10580_v13 = vld [vmem:[#allocation2 + $0xe0c] sm:$0xf]  ;;  %v8290_v24 = vor.u32 %v10516_v5, %v8287_v12  ;;  %3639 = vmatpush.bf16.msrb.mxu1 %v8034_v23  ;;  %v10361_v5 = vld [vmem:[#allocation2 + $0x72c] sm:$0xf0]  ;;  %v7142_v12 = vor.u32 %v10233_v1, %v7141_v63 }
 0x1b4   :  { %v8543_v14 = vld [vmem:[#allocation2 + $0xe28] sm:$0xf0]  ;;  %3627 = vmatmul.bf16.vlgmr.msrb.gmra.mxu0 %v11330_v37  ;;  %v7654_v20 = vor.u32 %v10361_v5, %v7653_v4  ;;  %v10289_v22 = vld [vmem:[#allocation2 + $0x4ec] sm:$0xf0]  ;;  %v3447_v39 = vadd.f32 %v3446_v33, %v3434_v26  ;;  %v3448_v5 = vpop.f32.mrf.mxu2 }
 0x1b5   :  { %v8546_v28 = vor.u32 %v10580_v13, %v8543_v14  ;;  %3652 = vmatpush.bf16.msrb.mxu2 %v8290_v24  ;;  %3671 = vmatpush.bf16.msra.mxu0 %v6982_v29  ;;  %v7398_v13 = vor.u32 %v10297_v3, %v7397_v2  ;;  %v6853_v14 = vld [vmem:[#allocation2 + $0xd0] sm:$0xf]  ;;  %v7366_v29 = vor.u32 %v10289_v22, %v7365_v21 }
 0x1b6   :  { %3640 = vmatmul.bf16.vlgmr.msrb.gmra.mxu1 %v11334_v40  ;;  %v7621_v23 = vld [vmem:[#allocation2 + $0x6d0] sm:$0xf]  ;;  %v6854_v27 = vor.u32 %v10161_v16, %v6853_v14  ;;  %v3461_v14 = vpop.f32.mrf.mxu3 }
 0x1b7   :  { %3665 = vmatpush.bf16.msrb.mxu3 %v8546_v28  ;;  %3684 = vmatpush.bf16.msra.mxu1 %v7238_v30  ;;  %v10353_v24 = vld [vmem:[#allocation2 + $0x6ec] sm:$0xf0]  ;;  %v7110_v28 = vor.u32 %v10225_v6, %v7109_v17 }
 0x1b8   :  { %3653 = vmatmul.bf16.vlgmr.msrb.gmra.mxu2 %v11328_v34  ;;  %v6821_v30 = vld [vmem:[#allocation2 + $0x90] sm:$0xf]  ;;  %v7622_v47 = vor.u32 %v10353_v24, %v7621_v23 }
 0x1b9   :  { %3697 = vmatpush.bf16.msra.mxu2 %v7494_v31  ;;  %3672 = vmatpush.bf16.msra.mxu0 %v6950_v44  ;;  %v10153_v31 = vld [vmem:[#allocation2 + $0xac] sm:$0xf0] }
 0x1ba   :  { %3666 = vmatmul.bf16.vlgmr.msrb.gmra.mxu3 %v11332_v38  ;;  %v7077_v32 = vld [vmem:[#allocation2 + $0x290] sm:$0xf]  ;;  %v6822_v44 = vor.u32 %v10153_v31, %v6821_v30 }
 0x1bb   :  { %3710 = vmatpush.bf16.msra.mxu3 %v7750_v36  ;;  %3685 = vmatpush.bf16.msra.mxu1 %v7206_v45  ;;  %v10217_v35 = vld [vmem:[#allocation2 + $0x2ac] sm:$0xf0]  ;;  %v11376_v45 = vadd.f32 %v3459_v41, %v3447_v39 }
 0x1bc   :  { %v7333_v36 = vld [vmem:[#allocation2 + $0x490] sm:$0xf]  ;;  %v7078_v49 = vor.u32 %v10217_v35, %v7077_v32 }
 0x1bd   :  { %3698 = vmatpush.bf16.msra.mxu2 %v7462_v46  ;;  %3673 = vmatpush.bf16.msra.mxu0 %v6918_v58  ;;  %v10281_v7 = vld [vmem:[#allocation2 + $0x4ac] sm:$0xf0]  ;;  %v3422_v46 = vpop.f32.mrf.mxu0 }
 0x1be   :  { %v7589_v42 = vld [vmem:[#allocation2 + $0x690] sm:$0xf]  ;;  %v7334_v50 = vor.u32 %v10281_v7, %v7333_v36 }
 0x1bf   :  { %3711 = vmatpush.bf16.msra.mxu3 %v7718_v52  ;;  %3686 = vmatpush.bf16.msra.mxu1 %v7174_v59  ;;  %v10345_v43 = vld [vmem:[#allocation2 + $0x6ac] sm:$0xf0] }
 0x1c0   :  { %v6789_v51 = vld [vmem:[#allocation2 + $0x50] sm:$0xf]  ;;  %v7590_v55 = vor.u32 %v10345_v43, %v7589_v42 }
 0x1c1   :  { %3699 = vmatpush.bf16.msra.mxu2 %v7430_v60  ;;  %3674 = vmatpush.bf16.msra.mxu0 %v6886_v10  ;;  %v10145_v52 = vld [vmem:[#allocation2 + $0x6c] sm:$0xf0] }
 0x1c2   :  { %v7045_v53 = vld [vmem:[#allocation2 + $0x250] sm:$0xf]  ;;  %v6790_v61 = vor.u32 %v10145_v52, %v6789_v51 }
 0x1c3   :  { %3712 = vmatpush.bf16.msra.mxu3 %v7686_v0  ;;  %3687 = vmatpush.bf16.msra.mxu1 %v7142_v12  ;;  %v10209_v56 = vld [vmem:[#allocation2 + $0x26c] sm:$0xf0] }
 0x1c4   :  { %v7301_v57 = vld [vmem:[#allocation2 + $0x450] sm:$0xf]  ;;  %v7046_v0 = vor.u32 %v10209_v56, %v7045_v53 }
 0x1c5   :  { %3700 = vmatpush.bf16.msra.mxu2 %v7398_v13  ;;  %3675 = vmatpush.bf16.msra.mxu0 %v6854_v27  ;;  %v10273_v58 = vld [vmem:[#allocation2 + $0x46c] sm:$0xf0] }
 0x1c6   :  { %v7557_v59 = vld [vmem:[#allocation2 + $0x650] sm:$0xf]  ;;  %v7302_v1 = vor.u32 %v10273_v58, %v7301_v57 }
 0x1c7   :  { %3713 = vmatpush.bf16.msra.mxu3 %v7654_v20  ;;  %3688 = vmatpush.bf16.msra.mxu1 %v7110_v28  ;;  %v10337_v60 = vld [vmem:[#allocation2 + $0x66c] sm:$0xf0] }
 0x1c8   :  { %v6757_v62 = vld [vmem:[#allocation2 + $0x10] sm:$0xf]  ;;  %v7558_v10 = vor.u32 %v10337_v60, %v7557_v59 }
 0x1c9   :  { %3701 = vmatpush.bf16.msra.mxu2 %v7366_v29  ;;  %3676 = vmatpush.bf16.msra.mxu0 %v6822_v44  ;;  %v10137_v63 = vld [vmem:[#allocation2 + $0x2c] sm:$0xf0] }
 0x1ca   :  { %v7013_v2 = vld [vmem:[#allocation2 + $0x210] sm:$0xf]  ;;  %v6758_v19 = vor.u32 %v10137_v63, %v6757_v62  ;;  %v11382_v63 = vld [vmem:[#allocation4] sm:$0xff] }
 0x1cb   :  { %3714 = vmatpush.bf16.msra.mxu3 %v7622_v47  ;;  %3689 = vmatpush.bf16.msra.mxu1 %v7078_v49  ;;  %v10201_v3 = vld [vmem:[#allocation2 + $0x22c] sm:$0xf0] }
 0x1cc   :  { %v7269_v4 = vld [vmem:[#allocation2 + $0x410] sm:$0xf]  ;;  %v7014_v22 = vor.u32 %v10201_v3, %v7013_v2 }
 0x1cd   :  { %3702 = vmatpush.bf16.msra.mxu2 %v7334_v50  ;;  %v10265_v11 = vld [vmem:[#allocation2 + $0x42c] sm:$0xf0]  ;;  %3677 = vmatpush.bf16.msra.mxu0 %v6790_v61 }
 0x1ce   :  { %v7525_v12 = vld [vmem:[#allocation2 + $0x610] sm:$0xf]  ;;  %v7270_v23 = vor.u32 %v10265_v11, %v7269_v4 }
 0x1cf   :  { %3715 = vmatpush.bf16.msra.mxu3 %v7590_v55  ;;  %v10329_v13 = vld [vmem:[#allocation2 + $0x62c] sm:$0xf0]  ;;  %3690 = vmatpush.bf16.msra.mxu1 %v7046_v0  ;;  %v681_v0 = vperm.slane %v11382_v63, 2 }
 0x1d0   :  { %v8005_v16 = vld [vmem:[#allocation2 + $0x9d0] sm:$0xf]  ;;  %v7526_v27 = vor.u32 %v10329_v13, %v7525_v12  ;;  %v3472_v12 = vpop.f32.mrf.mxu0 }
 0x1d1   :  { %v10449_v17 = vld [vmem:[#allocation2 + $0x9ec] sm:$0xf0]  ;;  %3703 = vmatpush.bf16.msra.mxu2 %v7302_v1  ;;  %3678 = vmatpush.bf16.msra.mxu0 %v6758_v19  ;;  %v3473_v19 = vadd.f32 %v3472_v12, %v681_v0 }
 0x1d2   :  { %v8261_v18 = vld [vmem:[#allocation2 + $0xbd0] sm:$0xf]  ;;  %v8006_v28 = vor.u32 %v10449_v17, %v8005_v16 }
 0x1d3   :  { %v10513_v20 = vld [vmem:[#allocation2 + $0xbec] sm:$0xf0]  ;;  %3716 = vmatpush.bf16.msra.mxu3 %v7558_v10  ;;  %3691 = vmatpush.bf16.msra.mxu1 %v7014_v22 }
 0x1d4   :  { %v8517_v6 = vld [vmem:[#allocation2 + $0xdd0] sm:$0xf]  ;;  %v8262_v29 = vor.u32 %v10513_v20, %v8261_v18  ;;  %3679 = vmatmul.bf16.vlgmr.msra.gmra.mxu0 %v11300_v9  ;;  %v3485_v20 = vpop.f32.mrf.mxu1 }
 0x1d5   :  { %v10577_v21 = vld [vmem:[#allocation2 + $0xdec] sm:$0xf0]  ;;  %3704 = vmatpush.bf16.msra.mxu2 %v7270_v23  ;;  %3723 = vmatpush.bf16.msrb.mxu0 %v8006_v28 }
 0x1d6   :  { %v8773_v24 = vld [vmem:[#allocation2 + $0xfd0] sm:$0xf]  ;;  %v8518_v30 = vor.u32 %v10577_v21, %v8517_v6  ;;  %3692 = vmatmul.bf16.vlgmr.msra.gmra.mxu1 %v11313_v25 }
 0x1d7   :  { %v10641_v26 = vld [vmem:[#allocation2 + $0xfec] sm:$0xf0]  ;;  %3717 = vmatpush.bf16.msra.mxu3 %v7526_v27  ;;  %3736 = vmatpush.bf16.msrb.mxu1 %v8262_v29  ;;  %v3486_v27 = vadd.f32 %v3485_v20, %v3473_v19  ;;  %v10189_v19 = vld [vmem:[#allocation2 + $0x1d4] sm:$0xf] }
 0x1d8   :  { %v7973_v31 = vld [vmem:[#allocation2 + $0x990] sm:$0xf]  ;;  %v8774_v47 = vor.u32 %v10641_v26, %v8773_v24  ;;  %3705 = vmatmul.bf16.vlgmr.msra.gmra.mxu2 %v11298_v8  ;;  %v6983_v20 = vld [vmem:[#allocation2 + $0x1f0] sm:$0xf0] }
 0x1d9   :  { %v10441_v32 = vld [vmem:[#allocation2 + $0x9ac] sm:$0xf0]  ;;  %3749 = vmatpush.bf16.msrb.mxu2 %v8518_v30 }
 0x1da   :  { %v8229_v33 = vld [vmem:[#allocation2 + $0xb90] sm:$0xf]  ;;  %v7974_v42 = vor.u32 %v10441_v32, %v7973_v31  ;;  %3718 = vmatmul.bf16.vlgmr.msra.gmra.mxu3 %v11305_v15 }
 0x1db   :  { %v10505_v35 = vld [vmem:[#allocation2 + $0xbac] sm:$0xf0]  ;;  %3762 = vmatpush.bf16.msrb.mxu3 %v8774_v47  ;;  %v3498_v47 = vpop.f32.mrf.mxu2 }
 0x1dc   :  { %v8485_v36 = vld [vmem:[#allocation2 + $0xd90] sm:$0xf]  ;;  %v8230_v43 = vor.u32 %v10505_v35, %v8229_v33  ;;  %3724 = vmatpush.bf16.msrb.mxu0 %v7974_v42  ;;  %v3511_v42 = vpop.f32.mrf.mxu3 }
 0x1dd   :  { %v10569_v7 = vld [vmem:[#allocation2 + $0xdac] sm:$0xf0] }
 0x1de   :  { %v8741_v39 = vld [vmem:[#allocation2 + $0xf90] sm:$0xf]  ;;  %v8486_v44 = vor.u32 %v10569_v7, %v8485_v36  ;;  %3737 = vmatpush.bf16.msrb.mxu1 %v8230_v43 }
 0x1df   :  { %v10633_v41 = vld [vmem:[#allocation2 + $0xfac] sm:$0xf0] }
 0x1e0   :  { %v7941_v46 = vld [vmem:[#allocation2 + $0x950] sm:$0xf]  ;;  %v8742_v51 = vor.u32 %v10633_v41, %v8741_v39  ;;  %3750 = vmatpush.bf16.msrb.mxu2 %v8486_v44  ;;  %v3499_v41 = vadd.f32 %v3498_v47, %v3486_v27  ;;  %v10181_v47 = vld [vmem:[#allocation2 + $0x194] sm:$0xf] }
 0x1e1   :  { %v10433_v49 = vld [vmem:[#allocation2 + $0x96c] sm:$0xf0] }
 0x1e2   :  { %v8197_v50 = vld [vmem:[#allocation2 + $0xb50] sm:$0xf]  ;;  %v7942_v57 = vor.u32 %v10433_v49, %v7941_v46  ;;  %3763 = vmatpush.bf16.msrb.mxu3 %v8742_v51  ;;  %v11385_v49 = vadd.f32 %v3511_v42, %v3499_v41  ;;  %v10309_v41 = vld [vmem:[#allocation2 + $0x594] sm:$0xf] }
 0x1e3   :  { %v10497_v52 = vld [vmem:[#allocation2 + $0xb6c] sm:$0xf0]  ;;  %v3500_v12 = vpop.f32.mrf.mxu2  ;;  %v7463_v42 = vld [vmem:[#allocation2 + $0x5b0] sm:$0xf0] }
 0x1e4   :  { %v8453_v53 = vld [vmem:[#allocation2 + $0xd50] sm:$0xf]  ;;  %v8198_v59 = vor.u32 %v10497_v52, %v8197_v50  ;;  %3725 = vmatpush.bf16.msrb.mxu0 %v7942_v57  ;;  %v3474_v50 = vpop.f32.mrf.mxu0  ;;  %v10357_v12 = vld [vmem:[#allocation2 + $0x714] sm:$0xf] }
 0x1e5   :  { %v10561_v54 = vld [vmem:[#allocation2 + $0xd6c] sm:$0xf0] }
 0x1e6   :  { %v8709_v55 = vld [vmem:[#allocation2 + $0xf50] sm:$0xf]  ;;  %v8454_v60 = vor.u32 %v10561_v54, %v8453_v53  ;;  %3738 = vmatpush.bf16.msrb.mxu1 %v8198_v59 }
 0x1e7   :  { %v10625_v56 = vld [vmem:[#allocation2 + $0xf6c] sm:$0xf0] }
 0x1e8   :  { %v7909_v58 = vld [vmem:[#allocation2 + $0x910] sm:$0xf]  ;;  %v8710_v1 = vor.u32 %v10625_v56, %v8709_v55  ;;  %3751 = vmatpush.bf16.msrb.mxu2 %v8454_v60  ;;  %v3487_v56 = vpop.f32.mrf.mxu1 }
 0x1e9   :  { %v10425_v61 = vld [vmem:[#allocation2 + $0x92c] sm:$0xf0]  ;;  %v7175_v56 = vld [vmem:[#allocation2 + $0x370] sm:$0xf0] }
 0x1ea   :  { %v8165_v62 = vld [vmem:[#allocation2 + $0xb10] sm:$0xf]  ;;  %v7910_v11 = vor.u32 %v10425_v61, %v7909_v58  ;;  %3764 = vmatpush.bf16.msrb.mxu3 %v8710_v1 }
 0x1eb   :  { %v10489_v2 = vld [vmem:[#allocation2 + $0xb2c] sm:$0xf0] }
 0x1ec   :  { %v8421_v3 = vld [vmem:[#allocation2 + $0xd10] sm:$0xf]  ;;  %v8166_v13 = vor.u32 %v10489_v2, %v8165_v62  ;;  %3726 = vmatpush.bf16.msrb.mxu0 %v7910_v11 }
 0x1ed   :  { %v10553_v4 = vld [vmem:[#allocation2 + $0xd2c] sm:$0xf0] }
 0x1ee   :  { %v8677_v5 = vld [vmem:[#allocation2 + $0xf10] sm:$0xf]  ;;  %v8422_v14 = vor.u32 %v10553_v4, %v8421_v3  ;;  %3739 = vmatpush.bf16.msrb.mxu1 %v8166_v13 }
 0x1ef   :  { %v10617_v10 = vld [vmem:[#allocation2 + $0xf2c] sm:$0xf0] }
 0x1f0   :  { %v7877_v16 = vld [vmem:[#allocation2 + $0x8d0] sm:$0xf]  ;;  %v8678_v6 = vor.u32 %v10617_v10, %v8677_v5  ;;  %3752 = vmatpush.bf16.msrb.mxu2 %v8422_v14 }
 0x1f1   :  { %v10417_v17 = vld [vmem:[#allocation2 + $0x8ec] sm:$0xf0] }
 0x1f2   :  { %v8133_v18 = vld [vmem:[#allocation2 + $0xad0] sm:$0xf]  ;;  %v7878_v28 = vor.u32 %v10417_v17, %v7877_v16  ;;  %3765 = vmatpush.bf16.msrb.mxu3 %v8678_v6  ;;  %v10253_v6 = vld [vmem:[#allocation2 + $0x3d4] sm:$0xf] }
 0x1f3   :  { %v10481_v21 = vld [vmem:[#allocation2 + $0xaec] sm:$0xf0] }
 0x1f4   :  { %v8389_v22 = vld [vmem:[#allocation2 + $0xcd0] sm:$0xf]  ;;  %v8134_v29 = vor.u32 %v10481_v21, %v8133_v18  ;;  %3727 = vmatpush.bf16.msrb.mxu0 %v7878_v28  ;;  %v3513_v18 = vpop.f32.mrf.mxu3  ;;  %v10381_v28 = vld [vmem:[#allocation2 + $0x7d4] sm:$0xf] }
 0x1f5   :  { %v10545_v23 = vld [vmem:[#allocation2 + $0xcec] sm:$0xf0] }
 0x1f6   :  { %v8645_v24 = vld [vmem:[#allocation2 + $0xed0] sm:$0xf]  ;;  %v8390_v30 = vor.u32 %v10545_v23, %v8389_v22  ;;  %3740 = vmatpush.bf16.msrb.mxu1 %v8134_v29  ;;  %v7239_v22 = vld [vmem:[#allocation2 + $0x3f0] sm:$0xf0] }
 0x1f7   :  { %v10609_v26 = vld [vmem:[#allocation2 + $0xeec] sm:$0xf0]  ;;  %v10317_v23 = vld [vmem:[#allocation2 + $0x5d4] sm:$0xf] }
 0x1f8   :  { %v7845_v31 = vld [vmem:[#allocation2 + $0x890] sm:$0xf]  ;;  %v8646_v35 = vor.u32 %v10609_v26, %v8645_v24  ;;  %3753 = vmatpush.bf16.msrb.mxu2 %v8390_v30  ;;  %v7495_v24 = vld [vmem:[#allocation2 + $0x5f0] sm:$0xf0] }
 0x1f9   :  { %v10409_v32 = vld [vmem:[#allocation2 + $0x8ac] sm:$0xf0]  ;;  %v7751_v29 = vld [vmem:[#allocation2 + $0x7f0] sm:$0xf0] }
 0x1fa   :  { %v8101_v33 = vld [vmem:[#allocation2 + $0xa90] sm:$0xf]  ;;  %v7846_v46 = vor.u32 %v10409_v32, %v7845_v31  ;;  %3766 = vmatpush.bf16.msrb.mxu3 %v8646_v35  ;;  %v6986_v31 = vor.u32 %v10189_v19, %v6983_v20  ;;  %v7242_v32 = vor.u32 %v10253_v6, %v7239_v22  ;;  %v6951_v35 = vld [vmem:[#allocation2 + $0x1b0] sm:$0xf0]  ;;  %v3537_v22 = vpop.f32.mrf.mxu1 }
 0x1fb   :  { %v10473_v36 = vld [vmem:[#allocation2 + $0xaac] sm:$0xf0]  ;;  %v10157_v19 = vld [vmem:[#allocation2 + $0xd4] sm:$0xf] }
 0x1fc   :  { %v8357_v7 = vld [vmem:[#allocation2 + $0xc90] sm:$0xf]  ;;  %v8102_v51 = vor.u32 %v10473_v36, %v8101_v33  ;;  %3728 = vmatpush.bf16.msrb.mxu0 %v7846_v46  ;;  %v7498_v33 = vor.u32 %v10317_v23, %v7495_v24  ;;  %v10245_v36 = vld [vmem:[#allocation2 + $0x394] sm:$0xf]  ;;  %v6954_v46 = vor.u32 %v10181_v47, %v6951_v35 }
 0x1fd   :  { %v10537_v39 = vld [vmem:[#allocation2 + $0xcac] sm:$0xf0]  ;;  %v6855_v20 = vld [vmem:[#allocation2 + $0xf0] sm:$0xf0] }
 0x1fe   :  { %v8613_v43 = vld [vmem:[#allocation2 + $0xe90] sm:$0xf]  ;;  %v8358_v52 = vor.u32 %v10537_v39, %v8357_v7  ;;  %3741 = vmatpush.bf16.msrb.mxu1 %v8102_v51  ;;  %v7754_v7 = vor.u32 %v10381_v28, %v7751_v29  ;;  %v7207_v39 = vld [vmem:[#allocation2 + $0x3b0] sm:$0xf0]  ;;  %v7466_v51 = vor.u32 %v10309_v41, %v7463_v42 }
 0x1ff   :  { %v10601_v44 = vld [vmem:[#allocation2 + $0xeac] sm:$0xf0]  ;;  %v7210_v50 = vor.u32 %v10245_v36, %v7207_v39  ;;  %v10221_v6 = vld [vmem:[#allocation2 + $0x2d4] sm:$0xf] }
 0x200   :  { %v7813_v53 = vld [vmem:[#allocation2 + $0x850] sm:$0xf]  ;;  %v8614_v57 = vor.u32 %v10601_v44, %v8613_v43  ;;  %3754 = vmatpush.bf16.msrb.mxu2 %v8358_v52  ;;  %v10373_v43 = vld [vmem:[#allocation2 + $0x794] sm:$0xf] }
 0x201   :  { %v10401_v54 = vld [vmem:[#allocation2 + $0x86c] sm:$0xf0]  ;;  %v7719_v44 = vld [vmem:[#allocation2 + $0x7b0] sm:$0xf0] }
 0x202   :  { %v8069_v55 = vld [vmem:[#allocation2 + $0xa50] sm:$0xf]  ;;  %v7814_v0 = vor.u32 %v10401_v54, %v7813_v53  ;;  %3767 = vmatpush.bf16.msrb.mxu3 %v8614_v57  ;;  %v10173_v52 = vld [vmem:[#allocation2 + $0x154] sm:$0xf] }
 0x203   :  { %v10465_v58 = vld [vmem:[#allocation2 + $0xa6c] sm:$0xf0]  ;;  %v6919_v53 = vld [vmem:[#allocation2 + $0x170] sm:$0xf0] }
 0x204   :  { %v8325_v59 = vld [vmem:[#allocation2 + $0xc50] sm:$0xf]  ;;  %v8070_v3 = vor.u32 %v10465_v58, %v8069_v55  ;;  %3729 = vmatpush.bf16.msrb.mxu0 %v7814_v0  ;;  %v10237_v54 = vld [vmem:[#allocation2 + $0x354] sm:$0xf]  ;;  %v7722_v55 = vor.u32 %v10373_v43, %v7719_v44  ;;  %v3563_v44 = vpop.f32.mrf.mxu3 }
 0x205   :  { %v10529_v60 = vld [vmem:[#allocation2 + $0xc6c] sm:$0xf0]  ;;  %v10301_v57 = vld [vmem:[#allocation2 + $0x554] sm:$0xf] }
 0x206   :  { %v8581_v61 = vld [vmem:[#allocation2 + $0xe50] sm:$0xf]  ;;  %v8326_v4 = vor.u32 %v10529_v60, %v8325_v59  ;;  %3742 = vmatpush.bf16.msrb.mxu1 %v8070_v3  ;;  %v7431_v58 = vld [vmem:[#allocation2 + $0x570] sm:$0xf0] }
 0x207   :  { %v10593_v62 = vld [vmem:[#allocation2 + $0xe6c] sm:$0xf0]  ;;  %v10365_v59 = vld [vmem:[#allocation2 + $0x754] sm:$0xf]  ;;  %v7434_v0 = vor.u32 %v10301_v57, %v7431_v58 }
 0x208   :  { %v7781_v1 = vld [vmem:[#allocation2 + $0x810] sm:$0xf]  ;;  %v8582_v13 = vor.u32 %v10593_v62, %v8581_v61  ;;  %3755 = vmatpush.bf16.msrb.mxu2 %v8326_v4  ;;  %v7687_v60 = vld [vmem:[#allocation2 + $0x770] sm:$0xf0]  ;;  %v6922_v61 = vor.u32 %v10173_v52, %v6919_v53  ;;  %v7178_v62 = vor.u32 %v10237_v54, %v7175_v56 }
 0x209   :  { %v10393_v2 = vld [vmem:[#allocation2 + $0x82c] sm:$0xf0]  ;;  %v10229_v3 = vld [vmem:[#allocation2 + $0x314] sm:$0xf]  ;;  %v7690_v4 = vor.u32 %v10365_v59, %v7687_v60  ;;  %v3539_v59 = vpop.f32.mrf.mxu1 }
 0x20a   :  { %v8037_v5 = vld [vmem:[#allocation2 + $0xa10] sm:$0xf]  ;;  %v7782_v21 = vor.u32 %v10393_v2, %v7781_v1  ;;  %3768 = vmatpush.bf16.msrb.mxu3 %v8582_v13  ;;  %v10165_v1 = vld [vmem:[#allocation2 + $0x114] sm:$0xf] }
 0x20b   :  { %v10457_v10 = vld [vmem:[#allocation2 + $0xa2c] sm:$0xf0]  ;;  %v6887_v2 = vld [vmem:[#allocation2 + $0x130] sm:$0xf0] }
 0x20c   :  { %v8293_v11 = vld [vmem:[#allocation2 + $0xc10] sm:$0xf]  ;;  %v8038_v26 = vor.u32 %v10457_v10, %v8037_v5  ;;  %3730 = vmatpush.bf16.msrb.mxu0 %v7782_v21  ;;  %v7143_v5 = vld [vmem:[#allocation2 + $0x330] sm:$0xf0] }
 0x20d   :  { %v10521_v14 = vld [vmem:[#allocation2 + $0xc2c] sm:$0xf0]  ;;  %v10293_v10 = vld [vmem:[#allocation2 + $0x514] sm:$0xf] }
 0x20e   :  { %v8549_v16 = vld [vmem:[#allocation2 + $0xe10] sm:$0xf]  ;;  %v8294_v27 = vor.u32 %v10521_v14, %v8293_v11  ;;  %3743 = vmatpush.bf16.msrb.mxu1 %v8038_v26  ;;  %v7399_v11 = vld [vmem:[#allocation2 + $0x530] sm:$0xf0]  ;;  %v6890_v14 = vor.u32 %v10165_v1, %v6887_v2 }
 0x20f   :  { %v10585_v17 = vld [vmem:[#allocation2 + $0xe2c] sm:$0xf0]  ;;  %3731 = vmatmul.bf16.vlgmr.msrb.gmra.mxu0 %v11330_v37  ;;  %v7655_v13 = vld [vmem:[#allocation2 + $0x730] sm:$0xf0]  ;;  %v7402_v18 = vor.u32 %v10293_v10, %v7399_v11 }
 0x210   :  { %v8550_v30 = vor.u32 %v10585_v17, %v8549_v16  ;;  %3756 = vmatpush.bf16.msrb.mxu2 %v8294_v27  ;;  %3775 = vmatpush.bf16.msra.mxu0 %v6986_v31  ;;  %v3524_v16 = vpop.f32.mrf.mxu0  ;;  %v7146_v17 = vor.u32 %v10229_v3, %v7143_v5  ;;  %v7658_v23 = vor.u32 %v10357_v12, %v7655_v13  ;;  %v7111_v24 = vld [vmem:[#allocation2 + $0x2f0] sm:$0xf0] }
 0x211   :  { %3744 = vmatmul.bf16.vlgmr.msrb.gmra.mxu1 %v11334_v40  ;;  %v3525_v21 = vadd.f32 %v3524_v16, %v11385_v49  ;;  %v10285_v26 = vld [vmem:[#allocation2 + $0x4d4] sm:$0xf]  ;;  %v6858_v31 = vor.u32 %v10157_v19, %v6855_v20 }
 0x212   :  { %3769 = vmatpush.bf16.msrb.mxu3 %v8550_v30  ;;  %3788 = vmatpush.bf16.msra.mxu1 %v7242_v32  ;;  %v7367_v27 = vld [vmem:[#allocation2 + $0x4f0] sm:$0xf0]  ;;  %v7114_v32 = vor.u32 %v10221_v6, %v7111_v24  ;;  %v3565_v6 = vpop.f32.mrf.mxu3 }
 0x213   :  { %3757 = vmatmul.bf16.vlgmr.msrb.gmra.mxu2 %v11328_v34  ;;  %v10349_v28 = vld [vmem:[#allocation2 + $0x6d4] sm:$0xf]  ;;  %v3538_v30 = vadd.f32 %v3537_v22, %v3525_v21 }
 0x214   :  { %3801 = vmatpush.bf16.msra.mxu2 %v7498_v33  ;;  %3776 = vmatpush.bf16.msra.mxu0 %v6954_v46  ;;  %v7623_v29 = vld [vmem:[#allocation2 + $0x6f0] sm:$0xf0]  ;;  %v7370_v33 = vor.u32 %v10285_v26, %v7367_v27 }
 0x215   :  { %3770 = vmatmul.bf16.vlgmr.msrb.gmra.mxu3 %v11332_v38  ;;  %v10149_v47 = vld [vmem:[#allocation2 + $0x94] sm:$0xf]  ;;  %v7626_v49 = vor.u32 %v10349_v28, %v7623_v29 }
 0x216   :  { %3814 = vmatpush.bf16.msra.mxu3 %v7754_v7  ;;  %3789 = vmatpush.bf16.msra.mxu1 %v7210_v50  ;;  %v6823_v35 = vld [vmem:[#allocation2 + $0xb0] sm:$0xf0]  ;;  %v3550_v7 = vpop.f32.mrf.mxu2 }
 0x217   :  { %v10213_v36 = vld [vmem:[#allocation2 + $0x294] sm:$0xf]  ;;  %v3551_v43 = vadd.f32 %v3550_v7, %v3538_v30 }
 0x218   :  { %3802 = vmatpush.bf16.msra.mxu2 %v7466_v51  ;;  %3777 = vmatpush.bf16.msra.mxu0 %v6922_v61  ;;  %v7079_v39 = vld [vmem:[#allocation2 + $0x2b0] sm:$0xf0]  ;;  %v6826_v51 = vor.u32 %v10149_v47, %v6823_v35  ;;  %v3526_v53 = vpop.f32.mrf.mxu0 }
 0x219   :  { %v10277_v41 = vld [vmem:[#allocation2 + $0x494] sm:$0xf]  ;;  %v11392_v52 = vadd.f32 %v3563_v44, %v3551_v43  ;;  %v7082_v54 = vor.u32 %v10213_v36, %v7079_v39 }
 0x21a   :  { %3815 = vmatpush.bf16.msra.mxu3 %v7722_v55  ;;  %3790 = vmatpush.bf16.msra.mxu1 %v7178_v62  ;;  %v7335_v42 = vld [vmem:[#allocation2 + $0x4b0] sm:$0xf0] }
 0x21b   :  { %v10341_v46 = vld [vmem:[#allocation2 + $0x694] sm:$0xf]  ;;  %v7338_v55 = vor.u32 %v10277_v41, %v7335_v42 }
 0x21c   :  { %3803 = vmatpush.bf16.msra.mxu2 %v7434_v0  ;;  %3778 = vmatpush.bf16.msra.mxu0 %v6890_v14  ;;  %v7591_v50 = vld [vmem:[#allocation2 + $0x6b0] sm:$0xf0] }
 0x21d   :  { %v10141_v56 = vld [vmem:[#allocation2 + $0x54] sm:$0xf]  ;;  %v7594_v60 = vor.u32 %v10341_v46, %v7591_v50 }
 0x21e   :  { %3816 = vmatpush.bf16.msra.mxu3 %v7690_v4  ;;  %3791 = vmatpush.bf16.msra.mxu1 %v7146_v17  ;;  %v6791_v57 = vld [vmem:[#allocation2 + $0x70] sm:$0xf0]  ;;  %v3552_v16 = vpop.f32.mrf.mxu2 }
 0x21f   :  { %v10205_v58 = vld [vmem:[#allocation2 + $0x254] sm:$0xf]  ;;  %v6794_v3 = vor.u32 %v10141_v56, %v6791_v57 }
 0x220   :  { %3804 = vmatpush.bf16.msra.mxu2 %v7402_v18  ;;  %3779 = vmatpush.bf16.msra.mxu0 %v6858_v31  ;;  %v7047_v61 = vld [vmem:[#allocation2 + $0x270] sm:$0xf0] }
 0x221   :  { %v10269_v62 = vld [vmem:[#allocation2 + $0x454] sm:$0xf]  ;;  %v7050_v10 = vor.u32 %v10205_v58, %v7047_v61 }
 0x222   :  { %3817 = vmatpush.bf16.msra.mxu3 %v7658_v23  ;;  %3792 = vmatpush.bf16.msra.mxu1 %v7114_v32  ;;  %v7303_v0 = vld [vmem:[#allocation2 + $0x470] sm:$0xf0] }
 0x223   :  { %v10333_v1 = vld [vmem:[#allocation2 + $0x654] sm:$0xf]  ;;  %v7306_v11 = vor.u32 %v10269_v62, %v7303_v0 }
 0x224   :  { %3805 = vmatpush.bf16.msra.mxu2 %v7370_v33  ;;  %v7559_v2 = vld [vmem:[#allocation2 + $0x670] sm:$0xf0]  ;;  %3780 = vmatpush.bf16.msra.mxu0 %v6826_v51 }
 0x225   :  { %v10133_v4 = vld [vmem:[#allocation2 + $0x14] sm:$0xf]  ;;  %v7562_v17 = vor.u32 %v10333_v1, %v7559_v2 }
 0x226   :  { %3818 = vmatpush.bf16.msra.mxu3 %v7626_v49  ;;  %v6759_v5 = vld [vmem:[#allocation2 + $0x30] sm:$0xf0]  ;;  %3793 = vmatpush.bf16.msra.mxu1 %v7082_v54 }
 0x227   :  { %v10197_v12 = vld [vmem:[#allocation2 + $0x214] sm:$0xf]  ;;  %v6762_v24 = vor.u32 %v10133_v4, %v6759_v5 }
 0x228   :  { %3806 = vmatpush.bf16.msra.mxu2 %v7338_v55  ;;  %v7015_v13 = vld [vmem:[#allocation2 + $0x230] sm:$0xf0]  ;;  %3781 = vmatpush.bf16.msra.mxu0 %v6794_v3 }
 0x229   :  { %v10261_v14 = vld [vmem:[#allocation2 + $0x414] sm:$0xf]  ;;  %v7018_v29 = vor.u32 %v10197_v12, %v7015_v13 }
 0x22a   :  { %3819 = vmatpush.bf16.msra.mxu3 %v7594_v60  ;;  %v7271_v18 = vld [vmem:[#allocation2 + $0x430] sm:$0xf0]  ;;  %3794 = vmatpush.bf16.msra.mxu1 %v7050_v10 }
 0x22b   :  { %v10325_v19 = vld [vmem:[#allocation2 + $0x614] sm:$0xf]  ;;  %v7274_v30 = vor.u32 %v10261_v14, %v7271_v18 }
 0x22c   :  { %v7527_v20 = vld [vmem:[#allocation2 + $0x630] sm:$0xf0]  ;;  %3807 = vmatpush.bf16.msra.mxu2 %v7306_v11  ;;  %3782 = vmatpush.bf16.msra.mxu0 %v6762_v24  ;;  %v682_v11 = vperm.slane %v11382_v63, 3 }
 0x22d   :  { %v10445_v21 = vld [vmem:[#allocation2 + $0x9d4] sm:$0xf]  ;;  %v7530_v33 = vor.u32 %v10325_v19, %v7527_v20  ;;  %v3576_v20 = vpop.f32.mrf.mxu0 }
 0x22e   :  { %v8007_v22 = vld [vmem:[#allocation2 + $0x9f0] sm:$0xf0]  ;;  %3820 = vmatpush.bf16.msra.mxu3 %v7562_v17  ;;  %3795 = vmatpush.bf16.msra.mxu1 %v7018_v29 }
 0x22f   :  { %v10509_v23 = vld [vmem:[#allocation2 + $0xbd4] sm:$0xf]  ;;  %v8010_v47 = vor.u32 %v10445_v21, %v8007_v22  ;;  %3783 = vmatmul.bf16.vlgmr.msra.gmra.mxu0 %v11300_v9 }
 0x230   :  { %v8263_v26 = vld [vmem:[#allocation2 + $0xbf0] sm:$0xf0]  ;;  %3808 = vmatpush.bf16.msra.mxu2 %v7274_v30 }
 0x231   :  { %v10573_v27 = vld [vmem:[#allocation2 + $0xdd4] sm:$0xf]  ;;  %v8266_v35 = vor.u32 %v10509_v23, %v8263_v26  ;;  %3827 = vmatpush.bf16.msrb.mxu0 %v8010_v47  ;;  %3796 = vmatmul.bf16.vlgmr.msra.gmra.mxu1 %v11313_v25  ;;  %v3577_v26 = vadd.f32 %v3576_v20, %v682_v11 }
 0x232   :  { %v8519_v28 = vld [vmem:[#allocation2 + $0xdf0] sm:$0xf0]  ;;  %3821 = vmatpush.bf16.msra.mxu3 %v7530_v33 }
 0x233   :  { %v10637_v31 = vld [vmem:[#allocation2 + $0xfd4] sm:$0xf]  ;;  %v8522_v36 = vor.u32 %v10573_v27, %v8519_v28  ;;  %3840 = vmatpush.bf16.msrb.mxu1 %v8266_v35  ;;  %3809 = vmatmul.bf16.vlgmr.msra.gmra.mxu2 %v11298_v8  ;;  %v3589_v27 = vpop.f32.mrf.mxu1 }
 0x234   :  { %v8775_v32 = vld [vmem:[#allocation2 + $0xff0] sm:$0xf0]  ;;  %v3590_v33 = vadd.f32 %v3589_v27, %v3577_v26  ;;  %v6989_v26 = vld [vmem:[#allocation2 + $0x1d8] sm:$0xf] }
 0x235   :  { %v10437_v7 = vld [vmem:[#allocation2 + $0x994] sm:$0xf]  ;;  %v8778_v41 = vor.u32 %v10637_v31, %v8775_v32  ;;  %3853 = vmatpush.bf16.msrb.mxu2 %v8522_v36  ;;  %3822 = vmatmul.bf16.vlgmr.msra.gmra.mxu3 %v11305_v15  ;;  %v10194_v27 = vld [vmem:[#allocation2 + $0x1f4] sm:$0xf0] }
 0x236   :  { %v7975_v49 = vld [vmem:[#allocation2 + $0x9b0] sm:$0xf0] }
 0x237   :  { %v10501_v39 = vld [vmem:[#allocation2 + $0xb94] sm:$0xf]  ;;  %v7978_v51 = vor.u32 %v10437_v7, %v7975_v49  ;;  %3866 = vmatpush.bf16.msrb.mxu3 %v8778_v41  ;;  %v3602_v41 = vpop.f32.mrf.mxu2 }
 0x238   :  { %v8231_v42 = vld [vmem:[#allocation2 + $0xbb0] sm:$0xf0] }
 0x239   :  { %v10565_v43 = vld [vmem:[#allocation2 + $0xd94] sm:$0xf]  ;;  %v8234_v53 = vor.u32 %v10501_v39, %v8231_v42  ;;  %3828 = vmatpush.bf16.msrb.mxu0 %v7978_v51  ;;  %v3615_v51 = vpop.f32.mrf.mxu3 }
 0x23a   :  { %v8487_v44 = vld [vmem:[#allocation2 + $0xdb0] sm:$0xf0] }
 0x23b   :  { %v10629_v46 = vld [vmem:[#allocation2 + $0xf94] sm:$0xf]  ;;  %v8490_v54 = vor.u32 %v10565_v43, %v8487_v44  ;;  %3841 = vmatpush.bf16.msrb.mxu1 %v8234_v53 }
 0x23c   :  { %v8743_v50 = vld [vmem:[#allocation2 + $0xfb0] sm:$0xf0] }
 0x23d   :  { %v10429_v55 = vld [vmem:[#allocation2 + $0x954] sm:$0xf]  ;;  %v8746_v58 = vor.u32 %v10629_v46, %v8743_v50  ;;  %3854 = vmatpush.bf16.msrb.mxu2 %v8490_v54  ;;  %v3603_v50 = vadd.f32 %v3602_v41, %v3590_v33  ;;  %v6957_v41 = vld [vmem:[#allocation2 + $0x198] sm:$0xf] }
 0x23e   :  { %v7943_v56 = vld [vmem:[#allocation2 + $0x970] sm:$0xf0] }
 0x23f   :  { %v10493_v57 = vld [vmem:[#allocation2 + $0xb54] sm:$0xf]  ;;  %v7946_v1 = vor.u32 %v10429_v55, %v7943_v56  ;;  %3867 = vmatpush.bf16.msrb.mxu3 %v8746_v58  ;;  %v11399_v56 = vadd.f32 %v3615_v51, %v3603_v50  ;;  %v3604_v20 = vpop.f32.mrf.mxu2  ;;  %v7469_v50 = vld [vmem:[#allocation2 + $0x598] sm:$0xf] }
 0x240   :  { %v8199_v59 = vld [vmem:[#allocation2 + $0xb70] sm:$0xf0]  ;;  %v10314_v51 = vld [vmem:[#allocation2 + $0x5b4] sm:$0xf0] }
 0x241   :  { %v10557_v60 = vld [vmem:[#allocation2 + $0xd54] sm:$0xf]  ;;  %v8202_v3 = vor.u32 %v10493_v57, %v8199_v59  ;;  %3829 = vmatpush.bf16.msrb.mxu0 %v7946_v1  ;;  %v3578_v57 = vpop.f32.mrf.mxu0  ;;  %v7661_v20 = vld [vmem:[#allocation2 + $0x718] sm:$0xf] }
 0x242   :  { %v8455_v61 = vld [vmem:[#allocation2 + $0xd70] sm:$0xf0] }
 0x243   :  { %v10621_v62 = vld [vmem:[#allocation2 + $0xf54] sm:$0xf]  ;;  %v8458_v4 = vor.u32 %v10557_v60, %v8455_v61  ;;  %3842 = vmatpush.bf16.msrb.mxu1 %v8202_v3 }
 0x244   :  { %v8711_v0 = vld [vmem:[#allocation2 + $0xf70] sm:$0xf0] }
 0x245   :  { %v10421_v2 = vld [vmem:[#allocation2 + $0x914] sm:$0xf]  ;;  %v8714_v12 = vor.u32 %v10621_v62, %v8711_v0  ;;  %3855 = vmatpush.bf16.msrb.mxu2 %v8458_v4  ;;  %v3591_v0 = vpop.f32.mrf.mxu1 }
 0x246   :  { %v7911_v5 = vld [vmem:[#allocation2 + $0x930] sm:$0xf0]  ;;  %v10242_v0 = vld [vmem:[#allocation2 + $0x374] sm:$0xf0] }
 0x247   :  { %v10485_v10 = vld [vmem:[#allocation2 + $0xb14] sm:$0xf]  ;;  %v7914_v19 = vor.u32 %v10421_v2, %v7911_v5  ;;  %3868 = vmatpush.bf16.msrb.mxu3 %v8714_v12 }
 0x248   :  { %v8167_v13 = vld [vmem:[#allocation2 + $0xb30] sm:$0xf0] }
 0x249   :  { %v10549_v14 = vld [vmem:[#allocation2 + $0xd14] sm:$0xf]  ;;  %v8170_v6 = vor.u32 %v10485_v10, %v8167_v13  ;;  %3830 = vmatpush.bf16.msrb.mxu0 %v7914_v19 }
 0x24a   :  { %v8423_v16 = vld [vmem:[#allocation2 + $0xd30] sm:$0xf0] }
 0x24b   :  { %v10613_v17 = vld [vmem:[#allocation2 + $0xf14] sm:$0xf]  ;;  %v8426_v21 = vor.u32 %v10549_v14, %v8423_v16  ;;  %3843 = vmatpush.bf16.msrb.mxu1 %v8170_v6 }
 0x24c   :  { %v8679_v18 = vld [vmem:[#allocation2 + $0xf30] sm:$0xf0] }
 0x24d   :  { %v10413_v22 = vld [vmem:[#allocation2 + $0x8d4] sm:$0xf]  ;;  %v8682_v63 = vor.u32 %v10613_v17, %v8679_v18  ;;  %3856 = vmatpush.bf16.msrb.mxu2 %v8426_v21 }
 0x24e   :  { %v7879_v23 = vld [vmem:[#allocation2 + $0x8f0] sm:$0xf0] }
 0x24f   :  { %v10477_v24 = vld [vmem:[#allocation2 + $0xad4] sm:$0xf]  ;;  %v7882_v47 = vor.u32 %v10413_v22, %v7879_v23  ;;  %3869 = vmatpush.bf16.msrb.mxu3 %v8682_v63  ;;  %v7245_v63 = vld [vmem:[#allocation2 + $0x3d8] sm:$0xf] }
 0x250   :  { %v8135_v28 = vld [vmem:[#allocation2 + $0xaf0] sm:$0xf0] }
 0x251   :  { %v10541_v29 = vld [vmem:[#allocation2 + $0xcd4] sm:$0xf]  ;;  %v8138_v35 = vor.u32 %v10477_v24, %v8135_v28  ;;  %3831 = vmatpush.bf16.msrb.mxu0 %v7882_v47  ;;  %v3617_v24 = vpop.f32.mrf.mxu3  ;;  %v7757_v47 = vld [vmem:[#allocation2 + $0x7d8] sm:$0xf] }
 0x252   :  { %v8391_v30 = vld [vmem:[#allocation2 + $0xcf0] sm:$0xf0] }
 0x253   :  { %v10605_v31 = vld [vmem:[#allocation2 + $0xed4] sm:$0xf]  ;;  %v8394_v36 = vor.u32 %v10541_v29, %v8391_v30  ;;  %3844 = vmatpush.bf16.msrb.mxu1 %v8138_v35  ;;  %v10258_v29 = vld [vmem:[#allocation2 + $0x3f4] sm:$0xf0] }
 0x254   :  { %v8647_v32 = vld [vmem:[#allocation2 + $0xef0] sm:$0xf0]  ;;  %v7501_v30 = vld [vmem:[#allocation2 + $0x5d8] sm:$0xf] }
 0x255   :  { %v10405_v7 = vld [vmem:[#allocation2 + $0x894] sm:$0xf]  ;;  %v8650_v42 = vor.u32 %v10605_v31, %v8647_v32  ;;  %3857 = vmatpush.bf16.msrb.mxu2 %v8394_v36  ;;  %v10322_v31 = vld [vmem:[#allocation2 + $0x5f4] sm:$0xf0] }
 0x256   :  { %v7847_v49 = vld [vmem:[#allocation2 + $0x8b0] sm:$0xf0]  ;;  %v10386_v35 = vld [vmem:[#allocation2 + $0x7f4] sm:$0xf0] }
 0x257   :  { %v10469_v39 = vld [vmem:[#allocation2 + $0xa94] sm:$0xf]  ;;  %v7850_v55 = vor.u32 %v10405_v7, %v7847_v49  ;;  %3870 = vmatpush.bf16.msrb.mxu3 %v8650_v42  ;;  %v6990_v7 = vor.u32 %v10194_v27, %v6989_v26  ;;  %v7246_v49 = vor.u32 %v10258_v29, %v7245_v63  ;;  %v10186_v42 = vld [vmem:[#allocation2 + $0x1b4] sm:$0xf0]  ;;  %v3641_v29 = vpop.f32.mrf.mxu1 }
 0x258   :  { %v8103_v43 = vld [vmem:[#allocation2 + $0xab0] sm:$0xf0]  ;;  %v6861_v26 = vld [vmem:[#allocation2 + $0xd8] sm:$0xf] }
 0x259   :  { %v10533_v44 = vld [vmem:[#allocation2 + $0xc94] sm:$0xf]  ;;  %v8106_v58 = vor.u32 %v10469_v39, %v8103_v43  ;;  %3832 = vmatpush.bf16.msrb.mxu0 %v7850_v55  ;;  %v7502_v39 = vor.u32 %v10322_v31, %v7501_v30  ;;  %v7213_v43 = vld [vmem:[#allocation2 + $0x398] sm:$0xf]  ;;  %v6958_v55 = vor.u32 %v10186_v42, %v6957_v41 }
 0x25a   :  { %v8359_v46 = vld [vmem:[#allocation2 + $0xcb0] sm:$0xf0]  ;;  %v10162_v27 = vld [vmem:[#allocation2 + $0xf4] sm:$0xf0] }
 0x25b   :  { %v10597_v53 = vld [vmem:[#allocation2 + $0xe94] sm:$0xf]  ;;  %v8362_v59 = vor.u32 %v10533_v44, %v8359_v46  ;;  %3845 = vmatpush.bf16.msrb.mxu1 %v8106_v58  ;;  %v7758_v44 = vor.u32 %v10386_v35, %v7757_v47  ;;  %v10250_v46 = vld [vmem:[#allocation2 + $0x3b4] sm:$0xf0]  ;;  %v7470_v58 = vor.u32 %v10314_v51, %v7469_v50 }
 0x25c   :  { %v8615_v54 = vld [vmem:[#allocation2 + $0xeb0] sm:$0xf0]  ;;  %v7214_v57 = vor.u32 %v10250_v46, %v7213_v43  ;;  %v7117_v63 = vld [vmem:[#allocation2 + $0x2d8] sm:$0xf] }
 0x25d   :  { %v10397_v60 = vld [vmem:[#allocation2 + $0x854] sm:$0xf]  ;;  %v8618_v1 = vor.u32 %v10597_v53, %v8615_v54  ;;  %3858 = vmatpush.bf16.msrb.mxu2 %v8362_v59  ;;  %v7725_v53 = vld [vmem:[#allocation2 + $0x798] sm:$0xf] }
 0x25e   :  { %v7815_v61 = vld [vmem:[#allocation2 + $0x870] sm:$0xf0]  ;;  %v10378_v54 = vld [vmem:[#allocation2 + $0x7b4] sm:$0xf0] }
 0x25f   :  { %v10461_v62 = vld [vmem:[#allocation2 + $0xa54] sm:$0xf]  ;;  %v7818_v11 = vor.u32 %v10397_v60, %v7815_v61  ;;  %3871 = vmatpush.bf16.msrb.mxu3 %v8618_v1  ;;  %v6925_v59 = vld [vmem:[#allocation2 + $0x158] sm:$0xf] }
 0x260   :  { %v8071_v2 = vld [vmem:[#allocation2 + $0xa70] sm:$0xf0]  ;;  %v10178_v60 = vld [vmem:[#allocation2 + $0x174] sm:$0xf0] }
 0x261   :  { %v10525_v3 = vld [vmem:[#allocation2 + $0xc54] sm:$0xf]  ;;  %v8074_v14 = vor.u32 %v10461_v62, %v8071_v2  ;;  %3833 = vmatpush.bf16.msrb.mxu0 %v7818_v11  ;;  %v7181_v61 = vld [vmem:[#allocation2 + $0x358] sm:$0xf]  ;;  %v7726_v62 = vor.u32 %v10378_v54, %v7725_v53  ;;  %v3667_v54 = vpop.f32.mrf.mxu3 }
 0x262   :  { %v8327_v4 = vld [vmem:[#allocation2 + $0xc70] sm:$0xf0]  ;;  %v7437_v1 = vld [vmem:[#allocation2 + $0x558] sm:$0xf] }
 0x263   :  { %v10589_v5 = vld [vmem:[#allocation2 + $0xe54] sm:$0xf]  ;;  %v8330_v16 = vor.u32 %v10525_v3, %v8327_v4  ;;  %3846 = vmatpush.bf16.msrb.mxu1 %v8074_v14  ;;  %v10306_v2 = vld [vmem:[#allocation2 + $0x574] sm:$0xf0] }
 0x264   :  { %v8583_v10 = vld [vmem:[#allocation2 + $0xe70] sm:$0xf0]  ;;  %v7693_v3 = vld [vmem:[#allocation2 + $0x758] sm:$0xf]  ;;  %v7438_v11 = vor.u32 %v10306_v2, %v7437_v1 }
 0x265   :  { %v10389_v12 = vld [vmem:[#allocation2 + $0x814] sm:$0xf]  ;;  %v8586_v6 = vor.u32 %v10589_v5, %v8583_v10  ;;  %3859 = vmatpush.bf16.msrb.mxu2 %v8330_v16  ;;  %v10370_v4 = vld [vmem:[#allocation2 + $0x774] sm:$0xf0]  ;;  %v6926_v5 = vor.u32 %v10178_v60, %v6925_v59  ;;  %v7182_v10 = vor.u32 %v10242_v0, %v7181_v61 }
 0x266   :  { %v7783_v13 = vld [vmem:[#allocation2 + $0x830] sm:$0xf0]  ;;  %v7149_v14 = vld [vmem:[#allocation2 + $0x318] sm:$0xf]  ;;  %v7694_v16 = vor.u32 %v10370_v4, %v7693_v3  ;;  %v3643_v3 = vpop.f32.mrf.mxu1 }
 0x267   :  { %v10453_v17 = vld [vmem:[#allocation2 + $0xa14] sm:$0xf]  ;;  %v7786_v28 = vor.u32 %v10389_v12, %v7783_v13  ;;  %3872 = vmatpush.bf16.msrb.mxu3 %v8586_v6  ;;  %v6893_v12 = vld [vmem:[#allocation2 + $0x118] sm:$0xf] }
 0x268   :  { %v8039_v18 = vld [vmem:[#allocation2 + $0xa30] sm:$0xf0]  ;;  %v10170_v13 = vld [vmem:[#allocation2 + $0x134] sm:$0xf0] }
 0x269   :  { %v10517_v19 = vld [vmem:[#allocation2 + $0xc14] sm:$0xf]  ;;  %v8042_v32 = vor.u32 %v10453_v17, %v8039_v18  ;;  %3834 = vmatpush.bf16.msrb.mxu0 %v7786_v28  ;;  %v10234_v17 = vld [vmem:[#allocation2 + $0x334] sm:$0xf0] }
 0x26a   :  { %v8295_v21 = vld [vmem:[#allocation2 + $0xc30] sm:$0xf0]  ;;  %v7405_v18 = vld [vmem:[#allocation2 + $0x518] sm:$0xf] }
 0x26b   :  { %v10581_v22 = vld [vmem:[#allocation2 + $0xe14] sm:$0xf]  ;;  %v8298_v33 = vor.u32 %v10517_v19, %v8295_v21  ;;  %3847 = vmatpush.bf16.msrb.mxu1 %v8042_v32  ;;  %v10298_v19 = vld [vmem:[#allocation2 + $0x534] sm:$0xf0]  ;;  %v6894_v21 = vor.u32 %v10170_v13, %v6893_v12 }
 0x26c   :  { %v8551_v23 = vld [vmem:[#allocation2 + $0xe30] sm:$0xf0]  ;;  %3835 = vmatmul.bf16.vlgmr.msrb.gmra.mxu0 %v11330_v37  ;;  %v10362_v6 = vld [vmem:[#allocation2 + $0x734] sm:$0xf0]  ;;  %v7406_v24 = vor.u32 %v10298_v19, %v7405_v18 }
 0x26d   :  { %v8554_v36 = vor.u32 %v10581_v22, %v8551_v23  ;;  %3860 = vmatpush.bf16.msrb.mxu2 %v8298_v33  ;;  %3879 = vmatpush.bf16.msra.mxu0 %v6990_v7  ;;  %v3628_v22 = vpop.f32.mrf.mxu0  ;;  %v7150_v23 = vor.u32 %v10234_v17, %v7149_v14  ;;  %v7662_v30 = vor.u32 %v10362_v6, %v7661_v20  ;;  %v10226_v31 = vld [vmem:[#allocation2 + $0x2f4] sm:$0xf0] }
 0x26e   :  { %3848 = vmatmul.bf16.vlgmr.msrb.gmra.mxu1 %v11334_v40  ;;  %v3629_v28 = vadd.f32 %v3628_v22, %v11399_v56  ;;  %v7373_v32 = vld [vmem:[#allocation2 + $0x4d8] sm:$0xf]  ;;  %v6862_v7 = vor.u32 %v10162_v27, %v6861_v26 }
 0x26f   :  { %3873 = vmatpush.bf16.msrb.mxu3 %v8554_v36  ;;  %3892 = vmatpush.bf16.msra.mxu1 %v7246_v49  ;;  %v10290_v33 = vld [vmem:[#allocation2 + $0x4f4] sm:$0xf0]  ;;  %v7118_v49 = vor.u32 %v10226_v31, %v7117_v63  ;;  %v3669_v63 = vpop.f32.mrf.mxu3 }
 0x270   :  { %3861 = vmatmul.bf16.vlgmr.msrb.gmra.mxu2 %v11328_v34  ;;  %v7629_v47 = vld [vmem:[#allocation2 + $0x6d8] sm:$0xf]  ;;  %v3642_v36 = vadd.f32 %v3641_v29, %v3629_v28 }
 0x271   :  { %3905 = vmatpush.bf16.msra.mxu2 %v7502_v39  ;;  %3880 = vmatpush.bf16.msra.mxu0 %v6958_v55  ;;  %v10354_v35 = vld [vmem:[#allocation2 + $0x6f4] sm:$0xf0]  ;;  %v7374_v39 = vor.u32 %v10290_v33, %v7373_v32 }
 0x272   :  { %3874 = vmatmul.bf16.vlgmr.msrb.gmra.mxu3 %v11332_v38  ;;  %v6829_v41 = vld [vmem:[#allocation2 + $0x98] sm:$0xf]  ;;  %v7630_v56 = vor.u32 %v10354_v35, %v7629_v47 }
 0x273   :  { %3918 = vmatpush.bf16.msra.mxu3 %v7758_v44  ;;  %3893 = vmatpush.bf16.msra.mxu1 %v7214_v57  ;;  %v10154_v42 = vld [vmem:[#allocation2 + $0xb4] sm:$0xf0]  ;;  %v3654_v44 = vpop.f32.mrf.mxu2 }
 0x274   :  { %v7085_v43 = vld [vmem:[#allocation2 + $0x298] sm:$0xf]  ;;  %v3655_v53 = vadd.f32 %v3654_v44, %v3642_v36 }
 0x275   :  { %3906 = vmatpush.bf16.msra.mxu2 %v7470_v58  ;;  %3881 = vmatpush.bf16.msra.mxu0 %v6926_v5  ;;  %v10218_v46 = vld [vmem:[#allocation2 + $0x2b4] sm:$0xf0]  ;;  %v6830_v58 = vor.u32 %v10154_v42, %v6829_v41  ;;  %v3630_v60 = vpop.f32.mrf.mxu0 }
 0x276   :  { %v7341_v50 = vld [vmem:[#allocation2 + $0x498] sm:$0xf]  ;;  %v11406_v59 = vadd.f32 %v3667_v54, %v3655_v53  ;;  %v7086_v61 = vor.u32 %v10218_v46, %v7085_v43 }
 0x277   :  { %3919 = vmatpush.bf16.msra.mxu3 %v7726_v62  ;;  %3894 = vmatpush.bf16.msra.mxu1 %v7182_v10  ;;  %v10282_v51 = vld [vmem:[#allocation2 + $0x4b4] sm:$0xf0] }
 0x278   :  { %v7597_v55 = vld [vmem:[#allocation2 + $0x698] sm:$0xf]  ;;  %v7342_v62 = vor.u32 %v10282_v51, %v7341_v50 }
 0x279   :  { %3907 = vmatpush.bf16.msra.mxu2 %v7438_v11  ;;  %3882 = vmatpush.bf16.msra.mxu0 %v6894_v21  ;;  %v10346_v57 = vld [vmem:[#allocation2 + $0x6b4] sm:$0xf0] }
 0x27a   :  { %v6797_v0 = vld [vmem:[#allocation2 + $0x58] sm:$0xf]  ;;  %v7598_v4 = vor.u32 %v10346_v57, %v7597_v55 }
 0x27b   :  { %3920 = vmatpush.bf16.msra.mxu3 %v7694_v16  ;;  %3895 = vmatpush.bf16.msra.mxu1 %v7150_v23  ;;  %v10146_v1 = vld [vmem:[#allocation2 + $0x74] sm:$0xf0]  ;;  %v3656_v22 = vpop.f32.mrf.mxu2 }
 0x27c   :  { %v7053_v2 = vld [vmem:[#allocation2 + $0x258] sm:$0xf]  ;;  %v6798_v14 = vor.u32 %v10146_v1, %v6797_v0 }
 0x27d   :  { %3908 = vmatpush.bf16.msra.mxu2 %v7406_v24  ;;  %3883 = vmatpush.bf16.msra.mxu0 %v6862_v7  ;;  %v10210_v5 = vld [vmem:[#allocation2 + $0x274] sm:$0xf0]  ;;  %v3680_v63 = vpop.f32.mrf.mxu0 }
 0x27e   :  { %v7309_v10 = vld [vmem:[#allocation2 + $0x458] sm:$0xf]  ;;  %v7054_v18 = vor.u32 %v10210_v5, %v7053_v2 }
 0x27f   :  { %3921 = vmatpush.bf16.msra.mxu3 %v7662_v30  ;;  %3896 = vmatpush.bf16.msra.mxu1 %v7118_v49  ;;  %v10274_v11 = vld [vmem:[#allocation2 + $0x474] sm:$0xf0] }
 0x280   :  { %v7565_v12 = vld [vmem:[#allocation2 + $0x658] sm:$0xf]  ;;  %v7310_v19 = vor.u32 %v10274_v11, %v7309_v10 }
 0x281   :  { %3909 = vmatpush.bf16.msra.mxu2 %v7374_v39  ;;  %v10338_v13 = vld [vmem:[#allocation2 + $0x674] sm:$0xf0]  ;;  %3884 = vmatpush.bf16.msra.mxu0 %v6830_v58 }
 0x282   :  { %v6765_v16 = vld [vmem:[#allocation2 + $0x18] sm:$0xf]  ;;  %v7566_v23 = vor.u32 %v10338_v13, %v7565_v12 }
 0x283   :  { %3922 = vmatpush.bf16.msra.mxu3 %v7630_v56  ;;  %v10138_v17 = vld [vmem:[#allocation2 + $0x34] sm:$0xf0]  ;;  %3897 = vmatpush.bf16.msra.mxu1 %v7086_v61 }
 0x284   :  { %v7021_v20 = vld [vmem:[#allocation2 + $0x218] sm:$0xf]  ;;  %v6766_v31 = vor.u32 %v10138_v17, %v6765_v16 }
 0x285   :  { %3910 = vmatpush.bf16.msra.mxu2 %v7342_v62  ;;  %v10202_v6 = vld [vmem:[#allocation2 + $0x234] sm:$0xf0]  ;;  %3885 = vmatpush.bf16.msra.mxu0 %v6798_v14 }
 0x286   :  { %v7277_v21 = vld [vmem:[#allocation2 + $0x418] sm:$0xf]  ;;  %v7022_v35 = vor.u32 %v10202_v6, %v7021_v20 }
 0x287   :  { %3923 = vmatpush.bf16.msra.mxu3 %v7598_v4  ;;  %v10266_v24 = vld [vmem:[#allocation2 + $0x434] sm:$0xf0]  ;;  %3898 = vmatpush.bf16.msra.mxu1 %v7054_v18 }
 0x288   :  { %v7533_v26 = vld [vmem:[#allocation2 + $0x618] sm:$0xf]  ;;  %v7278_v36 = vor.u32 %v10266_v24, %v7277_v21 }
 0x289   :  { %v10330_v27 = vld [vmem:[#allocation2 + $0x634] sm:$0xf0]  ;;  %3911 = vmatpush.bf16.msra.mxu2 %v7310_v19  ;;  %3886 = vmatpush.bf16.msra.mxu0 %v6766_v31  ;;  %v11412_v19 = vld [vmem:[#allocation4] sm:$0xff] }
 0x28a   :  { %v8013_v28 = vld [vmem:[#allocation2 + $0x9d8] sm:$0xf]  ;;  %v7534_v39 = vor.u32 %v10330_v27, %v7533_v26  ;;  %v683_v20 = vperm.slane %v11412_v19, 4 }
 0x28b   :  { %v10450_v29 = vld [vmem:[#allocation2 + $0x9f4] sm:$0xf0]  ;;  %3924 = vmatpush.bf16.msra.mxu3 %v7566_v23  ;;  %3899 = vmatpush.bf16.msra.mxu1 %v7022_v35 }
 0x28c   :  { %v8269_v30 = vld [vmem:[#allocation2 + $0xbd8] sm:$0xf]  ;;  %v8014_v41 = vor.u32 %v10450_v29, %v8013_v28  ;;  %3887 = vmatmul.bf16.vlgmr.msra.gmra.mxu0 %v11300_v9 }
 0x28d   :  { %v10514_v32 = vld [vmem:[#allocation2 + $0xbf4] sm:$0xf0]  ;;  %3912 = vmatpush.bf16.msra.mxu2 %v7278_v36 }
 0x28e   :  { %v8525_v33 = vld [vmem:[#allocation2 + $0xdd8] sm:$0xf]  ;;  %v8270_v42 = vor.u32 %v10514_v32, %v8269_v30  ;;  %3931 = vmatpush.bf16.msrb.mxu0 %v8014_v41  ;;  %3900 = vmatmul.bf16.vlgmr.msra.gmra.mxu1 %v11313_v25 }
 0x28f   :  { %v10578_v47 = vld [vmem:[#allocation2 + $0xdf4] sm:$0xf0]  ;;  %3925 = vmatpush.bf16.msra.mxu3 %v7534_v39 }
 0x290   :  { %v8781_v7 = vld [vmem:[#allocation2 + $0xfd8] sm:$0xf]  ;;  %v8526_v43 = vor.u32 %v10578_v47, %v8525_v33  ;;  %3944 = vmatpush.bf16.msrb.mxu1 %v8270_v42  ;;  %3913 = vmatmul.bf16.vlgmr.msra.gmra.mxu2 %v11298_v8  ;;  %v3681_v33 = vadd.f32 %v3680_v63, %v683_v20  ;;  %v3693_v47 = vpop.f32.mrf.mxu1 }
 0x291   :  { %v10642_v49 = vld [vmem:[#allocation2 + $0xff4] sm:$0xf0] }
 0x292   :  { %v7981_v44 = vld [vmem:[#allocation2 + $0x998] sm:$0xf]  ;;  %v8782_v50 = vor.u32 %v10642_v49, %v8781_v7  ;;  %3957 = vmatpush.bf16.msrb.mxu2 %v8526_v43  ;;  %3926 = vmatmul.bf16.vlgmr.msra.gmra.mxu3 %v11305_v15  ;;  %v3694_v42 = vadd.f32 %v3693_v47, %v3681_v33 }
 0x293   :  { %v10442_v56 = vld [vmem:[#allocation2 + $0x9b4] sm:$0xf0] }
 0x294   :  { %v8237_v46 = vld [vmem:[#allocation2 + $0xb98] sm:$0xf]  ;;  %v7982_v58 = vor.u32 %v10442_v56, %v7981_v44  ;;  %3970 = vmatpush.bf16.msrb.mxu3 %v8782_v50 }
 0x295   :  { %v10506_v51 = vld [vmem:[#allocation2 + $0xbb4] sm:$0xf0] }
 0x296   :  { %v8493_v53 = vld [vmem:[#allocation2 + $0xd98] sm:$0xf]  ;;  %v8238_v60 = vor.u32 %v10506_v51, %v8237_v46  ;;  %3932 = vmatpush.bf16.msrb.mxu0 %v7982_v58 }
 0x297   :  { %v10570_v54 = vld [vmem:[#allocation2 + $0xdb4] sm:$0xf0] }
 0x298   :  { %v8749_v55 = vld [vmem:[#allocation2 + $0xf98] sm:$0xf]  ;;  %v8494_v61 = vor.u32 %v10570_v54, %v8493_v53  ;;  %3945 = vmatpush.bf16.msrb.mxu1 %v8238_v60  ;;  %v3706_v53 = vpop.f32.mrf.mxu2 }
 0x299   :  { %v10634_v57 = vld [vmem:[#allocation2 + $0xfb4] sm:$0xf0]  ;;  %v3707_v60 = vadd.f32 %v3706_v53, %v3694_v42  ;;  %v7503_v42 = vld [vmem:[#allocation2 + $0x5f8] sm:$0xf0] }
 0x29a   :  { %v7949_v62 = vld [vmem:[#allocation2 + $0x958] sm:$0xf]  ;;  %v8750_v2 = vor.u32 %v10634_v57, %v8749_v55  ;;  %3958 = vmatpush.bf16.msrb.mxu2 %v8494_v61  ;;  %v3719_v61 = vpop.f32.mrf.mxu3 }
 0x29b   :  { %v10434_v0 = vld [vmem:[#allocation2 + $0x974] sm:$0xf0] }
 0x29c   :  { %v8205_v1 = vld [vmem:[#allocation2 + $0xb58] sm:$0xf]  ;;  %v7950_v12 = vor.u32 %v10434_v0, %v7949_v62  ;;  %3971 = vmatpush.bf16.msrb.mxu3 %v8750_v2  ;;  %v11415_v2 = vadd.f32 %v3719_v61, %v3707_v60  ;;  %v7215_v61 = vld [vmem:[#allocation2 + $0x3b8] sm:$0xf0] }
 0x29d   :  { %v10498_v3 = vld [vmem:[#allocation2 + $0xb74] sm:$0xf0] }
 0x29e   :  { %v8461_v4 = vld [vmem:[#allocation2 + $0xd58] sm:$0xf]  ;;  %v8206_v14 = vor.u32 %v10498_v3, %v8205_v1  ;;  %3933 = vmatpush.bf16.msrb.mxu0 %v7950_v12  ;;  %v3682_v3 = vpop.f32.mrf.mxu0 }
 0x29f   :  { %v10562_v5 = vld [vmem:[#allocation2 + $0xd74] sm:$0xf0]  ;;  %v7727_v3 = vld [vmem:[#allocation2 + $0x7b8] sm:$0xf0] }
 0x2a0   :  { %v8717_v10 = vld [vmem:[#allocation2 + $0xf58] sm:$0xf]  ;;  %v8462_v16 = vor.u32 %v10562_v5, %v8461_v4  ;;  %3946 = vmatpush.bf16.msrb.mxu1 %v8206_v14 }
 0x2a1   :  { %v10626_v11 = vld [vmem:[#allocation2 + $0xf74] sm:$0xf0] }
 0x2a2   :  { %v7917_v13 = vld [vmem:[#allocation2 + $0x918] sm:$0xf]  ;;  %v8718_v6 = vor.u32 %v10626_v11, %v8717_v10  ;;  %3959 = vmatpush.bf16.msrb.mxu2 %v8462_v16  ;;  %v3721_v47 = vpop.f32.mrf.mxu3 }
 0x2a3   :  { %v10426_v17 = vld [vmem:[#allocation2 + $0x934] sm:$0xf0] }
 0x2a4   :  { %v8173_v18 = vld [vmem:[#allocation2 + $0xb18] sm:$0xf]  ;;  %v7918_v27 = vor.u32 %v10426_v17, %v7917_v13  ;;  %3972 = vmatpush.bf16.msrb.mxu3 %v8718_v6  ;;  %v3695_v13 = vpop.f32.mrf.mxu1 }
 0x2a5   :  { %v10490_v21 = vld [vmem:[#allocation2 + $0xb34] sm:$0xf0]  ;;  %v10238_v13 = vld [vmem:[#allocation2 + $0x35c] sm:$0xf] }
 0x2a6   :  { %v8429_v22 = vld [vmem:[#allocation2 + $0xd18] sm:$0xf]  ;;  %v8174_v28 = vor.u32 %v10490_v21, %v8173_v18  ;;  %3934 = vmatpush.bf16.msrb.mxu0 %v7918_v27  ;;  %v3732_v47 = vpop.f32.mrf.mxu0 }
 0x2a7   :  { %v10554_v23 = vld [vmem:[#allocation2 + $0xd34] sm:$0xf0] }
 0x2a8   :  { %v8685_v24 = vld [vmem:[#allocation2 + $0xf18] sm:$0xf]  ;;  %v8430_v29 = vor.u32 %v10554_v23, %v8429_v22  ;;  %3947 = vmatpush.bf16.msrb.mxu1 %v8174_v28 }
 0x2a9   :  { %v10618_v26 = vld [vmem:[#allocation2 + $0xf34] sm:$0xf0] }
 0x2aa   :  { %v7885_v30 = vld [vmem:[#allocation2 + $0x8d8] sm:$0xf]  ;;  %v8686_v35 = vor.u32 %v10618_v26, %v8685_v24  ;;  %3960 = vmatpush.bf16.msrb.mxu2 %v8430_v29  ;;  %v3708_v29 = vpop.f32.mrf.mxu2 }
 0x2ab   :  { %v10418_v31 = vld [vmem:[#allocation2 + $0x8f4] sm:$0xf0]  ;;  %v10294_v29 = vld [vmem:[#allocation2 + $0x51c] sm:$0xf] }
 0x2ac   :  { %v8141_v32 = vld [vmem:[#allocation2 + $0xad8] sm:$0xf]  ;;  %v7886_v43 = vor.u32 %v10418_v31, %v7885_v30  ;;  %3973 = vmatpush.bf16.msrb.mxu3 %v8686_v35  ;;  %v10190_v35 = vld [vmem:[#allocation2 + $0x1dc] sm:$0xf] }
 0x2ad   :  { %v10482_v36 = vld [vmem:[#allocation2 + $0xaf4] sm:$0xf0] }
 0x2ae   :  { %v8397_v7 = vld [vmem:[#allocation2 + $0xcd8] sm:$0xf]  ;;  %v8142_v44 = vor.u32 %v10482_v36, %v8141_v32  ;;  %3935 = vmatpush.bf16.msrb.mxu0 %v7886_v43  ;;  %v6991_v36 = vld [vmem:[#allocation2 + $0x1f8] sm:$0xf0] }
 0x2af   :  { %v10546_v49 = vld [vmem:[#allocation2 + $0xcf4] sm:$0xf0] }
 0x2b0   :  { %v8653_v39 = vld [vmem:[#allocation2 + $0xed8] sm:$0xf]  ;;  %v8398_v56 = vor.u32 %v10546_v49, %v8397_v7  ;;  %3948 = vmatpush.bf16.msrb.mxu1 %v8142_v44  ;;  %v10254_v7 = vld [vmem:[#allocation2 + $0x3dc] sm:$0xf] }
 0x2b1   :  { %v10610_v41 = vld [vmem:[#allocation2 + $0xef4] sm:$0xf0] }
 0x2b2   :  { %v7853_v46 = vld [vmem:[#allocation2 + $0x898] sm:$0xf]  ;;  %v8654_v54 = vor.u32 %v10610_v41, %v8653_v39  ;;  %3961 = vmatpush.bf16.msrb.mxu2 %v8398_v56  ;;  %v7247_v39 = vld [vmem:[#allocation2 + $0x3f8] sm:$0xf0] }
 0x2b3   :  { %v10410_v50 = vld [vmem:[#allocation2 + $0x8b4] sm:$0xf0]  ;;  %v10318_v41 = vld [vmem:[#allocation2 + $0x5dc] sm:$0xf]  ;;  %v7250_v53 = vor.u32 %v10254_v7, %v7247_v39 }
 0x2b4   :  { %v8109_v51 = vld [vmem:[#allocation2 + $0xa98] sm:$0xf]  ;;  %v7854_v1 = vor.u32 %v10410_v50, %v7853_v46  ;;  %3974 = vmatpush.bf16.msrb.mxu3 %v8654_v54  ;;  %v10382_v56 = vld [vmem:[#allocation2 + $0x7dc] sm:$0xf]  ;;  %v7506_v54 = vor.u32 %v10318_v41, %v7503_v42  ;;  %v3733_v41 = vadd.f32 %v3732_v47, %v11415_v2  ;;  %v3745_v42 = vpop.f32.mrf.mxu1 }
 0x2b5   :  { %v10474_v55 = vld [vmem:[#allocation2 + $0xab4] sm:$0xf0]  ;;  %v7759_v46 = vld [vmem:[#allocation2 + $0x7f8] sm:$0xf0] }
 0x2b6   :  { %v8365_v57 = vld [vmem:[#allocation2 + $0xc98] sm:$0xf]  ;;  %v8110_v4 = vor.u32 %v10474_v55, %v8109_v51  ;;  %3936 = vmatpush.bf16.msrb.mxu0 %v7854_v1  ;;  %v6994_v51 = vor.u32 %v10190_v35, %v6991_v36  ;;  %v10182_v55 = vld [vmem:[#allocation2 + $0x19c] sm:$0xf]  ;;  %v7762_v60 = vor.u32 %v10382_v56, %v7759_v46 }
 0x2b7   :  { %v10538_v58 = vld [vmem:[#allocation2 + $0xcb4] sm:$0xf0]  ;;  %v10374_v1 = vld [vmem:[#allocation2 + $0x79c] sm:$0xf] }
 0x2b8   :  { %v8621_v62 = vld [vmem:[#allocation2 + $0xe98] sm:$0xf]  ;;  %v8366_v5 = vor.u32 %v10538_v58, %v8365_v57  ;;  %3949 = vmatpush.bf16.msrb.mxu1 %v8110_v4  ;;  %v6959_v57 = vld [vmem:[#allocation2 + $0x1b8] sm:$0xf0] }
 0x2b9   :  { %v10602_v0 = vld [vmem:[#allocation2 + $0xeb4] sm:$0xf0]  ;;  %v10246_v58 = vld [vmem:[#allocation2 + $0x39c] sm:$0xf]  ;;  %v6962_v4 = vor.u32 %v10182_v55, %v6959_v57 }
 0x2ba   :  { %v7821_v10 = vld [vmem:[#allocation2 + $0x858] sm:$0xf]  ;;  %v8622_v14 = vor.u32 %v10602_v0, %v8621_v62  ;;  %3962 = vmatpush.bf16.msrb.mxu2 %v8366_v5  ;;  %v10310_v62 = vld [vmem:[#allocation2 + $0x59c] sm:$0xf]  ;;  %v7218_v5 = vor.u32 %v10246_v58, %v7215_v61 }
 0x2bb   :  { %v10402_v11 = vld [vmem:[#allocation2 + $0x874] sm:$0xf0]  ;;  %v7471_v0 = vld [vmem:[#allocation2 + $0x5b8] sm:$0xf0] }
 0x2bc   :  { %v8077_v12 = vld [vmem:[#allocation2 + $0xa58] sm:$0xf]  ;;  %v7822_v21 = vor.u32 %v10402_v11, %v7821_v10  ;;  %3975 = vmatpush.bf16.msrb.mxu3 %v8622_v14  ;;  %v7474_v10 = vor.u32 %v10310_v62, %v7471_v0  ;;  %v10174_v11 = vld [vmem:[#allocation2 + $0x15c] sm:$0xf]  ;;  %v7730_v14 = vor.u32 %v10374_v1, %v7727_v3  ;;  %v3758_v62 = vpop.f32.mrf.mxu2 }
 0x2bd   :  { %v10466_v16 = vld [vmem:[#allocation2 + $0xa74] sm:$0xf0]  ;;  %v10158_v7 = vld [vmem:[#allocation2 + $0xdc] sm:$0xf] }
 0x2be   :  { %v8333_v17 = vld [vmem:[#allocation2 + $0xc58] sm:$0xf]  ;;  %v8078_v24 = vor.u32 %v10466_v16, %v8077_v12  ;;  %3937 = vmatpush.bf16.msrb.mxu0 %v7822_v21  ;;  %v6927_v12 = vld [vmem:[#allocation2 + $0x178] sm:$0xf0] }
 0x2bf   :  { %v10530_v18 = vld [vmem:[#allocation2 + $0xc74] sm:$0xf0]  ;;  %v7183_v16 = vld [vmem:[#allocation2 + $0x378] sm:$0xf0]  ;;  %v6930_v21 = vor.u32 %v10174_v11, %v6927_v12 }
 0x2c0   :  { %v8589_v20 = vld [vmem:[#allocation2 + $0xe58] sm:$0xf]  ;;  %v8334_v26 = vor.u32 %v10530_v18, %v8333_v17  ;;  %3950 = vmatpush.bf16.msrb.mxu1 %v8078_v24  ;;  %v10302_v17 = vld [vmem:[#allocation2 + $0x55c] sm:$0xf] }
 0x2c1   :  { %v10594_v6 = vld [vmem:[#allocation2 + $0xe74] sm:$0xf0]  ;;  %v7439_v18 = vld [vmem:[#allocation2 + $0x578] sm:$0xf0] }
 0x2c2   :  { %v7789_v22 = vld [vmem:[#allocation2 + $0x818] sm:$0xf]  ;;  %v8590_v30 = vor.u32 %v10594_v6, %v8589_v20  ;;  %3963 = vmatpush.bf16.msrb.mxu2 %v8334_v26  ;;  %v10366_v20 = vld [vmem:[#allocation2 + $0x75c] sm:$0xf] }
 0x2c3   :  { %v10394_v23 = vld [vmem:[#allocation2 + $0x834] sm:$0xf0]  ;;  %v7695_v6 = vld [vmem:[#allocation2 + $0x778] sm:$0xf0] }
 0x2c4   :  { %v8045_v27 = vld [vmem:[#allocation2 + $0xa18] sm:$0xf]  ;;  %v7790_v49 = vor.u32 %v10394_v23, %v7789_v22  ;;  %3976 = vmatpush.bf16.msrb.mxu3 %v8590_v30  ;;  %v7186_v22 = vor.u32 %v10238_v13, %v7183_v16  ;;  %v7442_v23 = vor.u32 %v10302_v17, %v7439_v18  ;;  %v10166_v24 = vld [vmem:[#allocation2 + $0x11c] sm:$0xf] }
 0x2c5   :  { %v10458_v63 = vld [vmem:[#allocation2 + $0xa34] sm:$0xf0]  ;;  %v6895_v26 = vld [vmem:[#allocation2 + $0x138] sm:$0xf0] }
 0x2c6   :  { %v8301_v28 = vld [vmem:[#allocation2 + $0xc18] sm:$0xf]  ;;  %v8046_v43 = vor.u32 %v10458_v63, %v8045_v27  ;;  %3938 = vmatpush.bf16.msrb.mxu0 %v7790_v49  ;;  %v10230_v27 = vld [vmem:[#allocation2 + $0x31c] sm:$0xf]  ;;  %v7698_v63 = vor.u32 %v10366_v20, %v7695_v6 }
 0x2c7   :  { %v10522_v31 = vld [vmem:[#allocation2 + $0xc34] sm:$0xf0]  ;;  %v7407_v30 = vld [vmem:[#allocation2 + $0x538] sm:$0xf0] }
 0x2c8   :  { %v8557_v32 = vld [vmem:[#allocation2 + $0xe18] sm:$0xf]  ;;  %v8302_v44 = vor.u32 %v10522_v31, %v8301_v28  ;;  %3951 = vmatpush.bf16.msrb.mxu1 %v8046_v43  ;;  %v7151_v28 = vld [vmem:[#allocation2 + $0x338] sm:$0xf0]  ;;  %v7410_v36 = vor.u32 %v10294_v29, %v7407_v30 }
 0x2c9   :  { %v10586_v33 = vld [vmem:[#allocation2 + $0xe34] sm:$0xf0]  ;;  %3939 = vmatmul.bf16.vlgmr.msrb.gmra.mxu0 %v11330_v37  ;;  %v10358_v31 = vld [vmem:[#allocation2 + $0x71c] sm:$0xf]  ;;  %v7154_v35 = vor.u32 %v10230_v27, %v7151_v28 }
 0x2ca   :  { %v8558_v50 = vor.u32 %v10586_v33, %v8557_v32  ;;  %3964 = vmatpush.bf16.msrb.mxu2 %v8302_v44  ;;  %3983 = vmatpush.bf16.msra.mxu0 %v6994_v51  ;;  %v7663_v32 = vld [vmem:[#allocation2 + $0x738] sm:$0xf0]  ;;  %v6898_v33 = vor.u32 %v10166_v24, %v6895_v26 }
 0x2cb   :  { %3952 = vmatmul.bf16.vlgmr.msrb.gmra.mxu1 %v11334_v40  ;;  %v6863_v49 = vld [vmem:[#allocation2 + $0xf8] sm:$0xf0]  ;;  %v7666_v43 = vor.u32 %v10358_v31, %v7663_v32 }
 0x2cc   :  { %3977 = vmatpush.bf16.msrb.mxu3 %v8558_v50  ;;  %3996 = vmatpush.bf16.msra.mxu1 %v7250_v53  ;;  %v10222_v39 = vld [vmem:[#allocation2 + $0x2dc] sm:$0xf]  ;;  %v3746_v53 = vadd.f32 %v3745_v42, %v3733_v41 }
 0x2cd   :  { %3965 = vmatmul.bf16.vlgmr.msrb.gmra.mxu2 %v11328_v34  ;;  %v7119_v44 = vld [vmem:[#allocation2 + $0x2f8] sm:$0xf0] }
 0x2ce   :  { %4009 = vmatpush.bf16.msra.mxu2 %v7506_v54  ;;  %3984 = vmatpush.bf16.msra.mxu0 %v6962_v4  ;;  %v10286_v56 = vld [vmem:[#allocation2 + $0x4dc] sm:$0xf]  ;;  %v6866_v54 = vor.u32 %v10158_v7, %v6863_v49  ;;  %v7122_v55 = vor.u32 %v10222_v39, %v7119_v44  ;;  %v3759_v4 = vadd.f32 %v3758_v62, %v3746_v53 }
 0x2cf   :  { %3978 = vmatmul.bf16.vlgmr.msrb.gmra.mxu3 %v11332_v38  ;;  %v7375_v46 = vld [vmem:[#allocation2 + $0x4f8] sm:$0xf0] }
 0x2d0   :  { %4022 = vmatpush.bf16.msra.mxu3 %v7762_v60  ;;  %3997 = vmatpush.bf16.msra.mxu1 %v7218_v5  ;;  %v10350_v50 = vld [vmem:[#allocation2 + $0x6dc] sm:$0xf]  ;;  %v7378_v57 = vor.u32 %v10286_v56, %v7375_v46  ;;  %v3771_v5 = vpop.f32.mrf.mxu3 }
 0x2d1   :  { %v7631_v51 = vld [vmem:[#allocation2 + $0x6f8] sm:$0xf0]  ;;  %v11422_v13 = vadd.f32 %v3771_v5, %v3759_v4 }
 0x2d2   :  { %4010 = vmatpush.bf16.msra.mxu2 %v7474_v10  ;;  %3985 = vmatpush.bf16.msra.mxu0 %v6930_v21  ;;  %v10150_v58 = vld [vmem:[#allocation2 + $0x9c] sm:$0xf]  ;;  %v7634_v2 = vor.u32 %v10350_v50, %v7631_v51  ;;  %v3747_v21 = vpop.f32.mrf.mxu1 }
 0x2d3   :  { %v6831_v60 = vld [vmem:[#allocation2 + $0xb8] sm:$0xf0] }
 0x2d4   :  { %4023 = vmatpush.bf16.msra.mxu3 %v7730_v14  ;;  %3998 = vmatpush.bf16.msra.mxu1 %v7186_v22  ;;  %v10214_v61 = vld [vmem:[#allocation2 + $0x29c] sm:$0xf]  ;;  %v6834_v12 = vor.u32 %v10150_v58, %v6831_v60  ;;  %v3734_v14 = vpop.f32.mrf.mxu0 }
 0x2d5   :  { %v7087_v0 = vld [vmem:[#allocation2 + $0x2b8] sm:$0xf0] }
 0x2d6   :  { %4011 = vmatpush.bf16.msra.mxu2 %v7442_v23  ;;  %3986 = vmatpush.bf16.msra.mxu0 %v6898_v33  ;;  %v10278_v1 = vld [vmem:[#allocation2 + $0x49c] sm:$0xf]  ;;  %v7090_v16 = vor.u32 %v10214_v61, %v7087_v0 }
 0x2d7   :  { %v7343_v3 = vld [vmem:[#allocation2 + $0x4b8] sm:$0xf0] }
 0x2d8   :  { %4024 = vmatpush.bf16.msra.mxu3 %v7698_v63  ;;  %3999 = vmatpush.bf16.msra.mxu1 %v7154_v35  ;;  %v10342_v10 = vld [vmem:[#allocation2 + $0x69c] sm:$0xf]  ;;  %v7346_v17 = vor.u32 %v10278_v1, %v7343_v3  ;;  %v3773_v42 = vpop.f32.mrf.mxu3 }
 0x2d9   :  { %v7599_v11 = vld [vmem:[#allocation2 + $0x6b8] sm:$0xf0] }
 0x2da   :  { %4012 = vmatpush.bf16.msra.mxu2 %v7410_v36  ;;  %3987 = vmatpush.bf16.msra.mxu0 %v6866_v54  ;;  %v10142_v18 = vld [vmem:[#allocation2 + $0x5c] sm:$0xf]  ;;  %v7602_v22 = vor.u32 %v10342_v10, %v7599_v11  ;;  %v3760_v36 = vpop.f32.mrf.mxu2 }
 0x2db   :  { %v6799_v20 = vld [vmem:[#allocation2 + $0x78] sm:$0xf0] }
 0x2dc   :  { %4025 = vmatpush.bf16.msra.mxu3 %v7666_v43  ;;  %4000 = vmatpush.bf16.msra.mxu1 %v7122_v55  ;;  %v10206_v6 = vld [vmem:[#allocation2 + $0x25c] sm:$0xf]  ;;  %v6802_v28 = vor.u32 %v10142_v18, %v6799_v20 }
 0x2dd   :  { %v7055_v23 = vld [vmem:[#allocation2 + $0x278] sm:$0xf0] }
 0x2de   :  { %4013 = vmatpush.bf16.msra.mxu2 %v7378_v57  ;;  %v10270_v24 = vld [vmem:[#allocation2 + $0x45c] sm:$0xf]  ;;  %3988 = vmatpush.bf16.msra.mxu0 %v6834_v12  ;;  %v7058_v31 = vor.u32 %v10206_v6, %v7055_v23 }
 0x2df   :  { %v7311_v26 = vld [vmem:[#allocation2 + $0x478] sm:$0xf0] }
 0x2e0   :  { %4026 = vmatpush.bf16.msra.mxu3 %v7634_v2  ;;  %v10334_v27 = vld [vmem:[#allocation2 + $0x65c] sm:$0xf]  ;;  %4001 = vmatpush.bf16.msra.mxu1 %v7090_v16  ;;  %v7314_v32 = vor.u32 %v10270_v24, %v7311_v26 }
 0x2e1   :  { %v7567_v63 = vld [vmem:[#allocation2 + $0x678] sm:$0xf0] }
 0x2e2   :  { %v10134_v29 = vld [vmem:[#allocation2 + $0x1c] sm:$0xf]  ;;  %4014 = vmatpush.bf16.msra.mxu2 %v7346_v17  ;;  %v7570_v7 = vor.u32 %v10334_v27, %v7567_v63  ;;  %3989 = vmatpush.bf16.msra.mxu0 %v6802_v28 }
 0x2e3   :  { %v6767_v30 = vld [vmem:[#allocation2 + $0x38] sm:$0xf0] }
 0x2e4   :  { %v10198_v33 = vld [vmem:[#allocation2 + $0x21c] sm:$0xf]  ;;  %4027 = vmatpush.bf16.msra.mxu3 %v7602_v22  ;;  %v6770_v46 = vor.u32 %v10134_v29, %v6767_v30  ;;  %4002 = vmatpush.bf16.msra.mxu1 %v7058_v31 }
 0x2e5   :  { %v7023_v47 = vld [vmem:[#allocation2 + $0x238] sm:$0xf0] }
 0x2e6   :  { %v10262_v35 = vld [vmem:[#allocation2 + $0x41c] sm:$0xf]  ;;  %4015 = vmatpush.bf16.msra.mxu2 %v7314_v32  ;;  %v7026_v54 = vor.u32 %v10198_v33, %v7023_v47  ;;  %3990 = vmatpush.bf16.msra.mxu0 %v6770_v46 }
 0x2e7   :  { %v7279_v49 = vld [vmem:[#allocation2 + $0x438] sm:$0xf0] }
 0x2e8   :  { %v10326_v39 = vld [vmem:[#allocation2 + $0x61c] sm:$0xf]  ;;  %v7282_v55 = vor.u32 %v10262_v35, %v7279_v49  ;;  %4028 = vmatpush.bf16.msra.mxu3 %v7570_v7  ;;  %4003 = vmatpush.bf16.msra.mxu1 %v7026_v54  ;;  %v11428_v49 = vpop.f32.mrf.mxu0 }
 0x2e9   :  { %v7535_v41 = vld [vmem:[#allocation2 + $0x638] sm:$0xf0]  ;;  %3991 = vmatmul.bf16.vlgmr.msra.gmra.mxu0 %v11300_v9 }
 0x2ea   :  { %v10446_v43 = vld [vmem:[#allocation2 + $0x9dc] sm:$0xf]  ;;  %v7538_v60 = vor.u32 %v10326_v39, %v7535_v41  ;;  %4016 = vmatpush.bf16.msra.mxu2 %v7282_v55 }
 0x2eb   :  { %v8015_v44 = vld [vmem:[#allocation2 + $0x9f8] sm:$0xf0]  ;;  %4004 = vmatmul.bf16.vlgmr.msra.gmra.mxu1 %v11313_v25 }
 0x2ec   :  { %v10510_v56 = vld [vmem:[#allocation2 + $0xbdc] sm:$0xf]  ;;  %v8018_v61 = vor.u32 %v10446_v43, %v8015_v44  ;;  %4029 = vmatpush.bf16.msra.mxu3 %v7538_v60  ;;  %v11430_v44 = vpop.f32.mrf.mxu1 }
 0x2ed   :  { %v8271_v50 = vld [vmem:[#allocation2 + $0xbf8] sm:$0xf0]  ;;  %4017 = vmatmul.bf16.vlgmr.msra.gmra.mxu2 %v11298_v8 }
 0x2ee   :  { %v10574_v51 = vld [vmem:[#allocation2 + $0xddc] sm:$0xf]  ;;  %v8274_v62 = vor.u32 %v10510_v56, %v8271_v50  ;;  %4035 = vmatpush.bf16.msrb.mxu0 %v8018_v61 }
 0x2ef   :  { %v8527_v53 = vld [vmem:[#allocation2 + $0xdf8] sm:$0xf0]  ;;  %4030 = vmatmul.bf16.vlgmr.msra.gmra.mxu3 %v11305_v15 }
 0x2f0   :  { %v10638_v57 = vld [vmem:[#allocation2 + $0xfdc] sm:$0xf]  ;;  %v8530_v2 = vor.u32 %v10574_v51, %v8527_v53  ;;  %4048 = vmatpush.bf16.msrb.mxu1 %v8274_v62 }
 0x2f1   :  { %v8783_v58 = vld [vmem:[#allocation2 + $0xff8] sm:$0xf0] }
 0x2f2   :  { %v10438_v0 = vld [vmem:[#allocation2 + $0x99c] sm:$0xf]  ;;  %v8786_v4 = vor.u32 %v10638_v57, %v8783_v58  ;;  %4061 = vmatpush.bf16.msrb.mxu2 %v8530_v2  ;;  %v11432_v2 = vpop.f32.mrf.mxu2 }
 0x2f3   :  { %v7983_v1 = vld [vmem:[#allocation2 + $0x9b8] sm:$0xf0] }
 0x2f4   :  { %v10502_v3 = vld [vmem:[#allocation2 + $0xb9c] sm:$0xf]  ;;  %v7986_v16 = vor.u32 %v10438_v0, %v7983_v1  ;;  %4074 = vmatpush.bf16.msrb.mxu3 %v8786_v4 }
 0x2f5   :  { %v8239_v5 = vld [vmem:[#allocation2 + $0xbb8] sm:$0xf0] }
 0x2f6   :  { %v10566_v10 = vld [vmem:[#allocation2 + $0xd9c] sm:$0xf]  ;;  %v8242_v17 = vor.u32 %v10502_v3, %v8239_v5  ;;  %4036 = vmatpush.bf16.msrb.mxu0 %v7986_v16  ;;  %v11434_v5 = vpop.f32.mrf.mxu3 }
 0x2f7   :  { %v8495_v11 = vld [vmem:[#allocation2 + $0xdb8] sm:$0xf0] }
 0x2f8   :  { %v10630_v12 = vld [vmem:[#allocation2 + $0xf9c] sm:$0xf]  ;;  %v8498_v18 = vor.u32 %v10566_v10, %v8495_v11  ;;  %4049 = vmatpush.bf16.msrb.mxu1 %v8242_v17 }
 0x2f9   :  { %v8751_v14 = vld [vmem:[#allocation2 + $0xfb8] sm:$0xf0] }
 0x2fa   :  { %v10430_v20 = vld [vmem:[#allocation2 + $0x95c] sm:$0xf]  ;;  %v8754_v22 = vor.u32 %v10630_v12, %v8751_v14  ;;  %4062 = vmatpush.bf16.msrb.mxu2 %v8498_v18  ;;  %v3786_v14 = vpop.f32.mrf.mxu0 }
 0x2fb   :  { %v7951_v6 = vld [vmem:[#allocation2 + $0x978] sm:$0xf0]  ;;  %v10765_v14 = vld [vmem:[#allocation6 + $0x3cc] sm:$0xf0] }
 0x2fc   :  { %v10494_v21 = vld [vmem:[#allocation2 + $0xb5c] sm:$0xf]  ;;  %v7954_v28 = vor.u32 %v10430_v20, %v7951_v6  ;;  %4075 = vmatpush.bf16.msrb.mxu3 %v8754_v22 }
 0x2fd   :  { %v8207_v23 = vld [vmem:[#allocation2 + $0xb78] sm:$0xf0] }
 0x2fe   :  { %v10558_v24 = vld [vmem:[#allocation2 + $0xd5c] sm:$0xf]  ;;  %v8210_v29 = vor.u32 %v10494_v21, %v8207_v23  ;;  %4037 = vmatpush.bf16.msrb.mxu0 %v7954_v28  ;;  %v3799_v21 = vpop.f32.mrf.mxu1 }
 0x2ff   :  { %v8463_v26 = vld [vmem:[#allocation2 + $0xd78] sm:$0xf0]  ;;  %v8997_v21 = vld [vmem:[#allocation6 + $0x1a0] sm:$0xf] }
 0x300   :  { %v10622_v27 = vld [vmem:[#allocation2 + $0xf5c] sm:$0xf]  ;;  %v8466_v30 = vor.u32 %v10558_v24, %v8463_v26  ;;  %4050 = vmatpush.bf16.msrb.mxu1 %v8210_v29 }
 0x301   :  { %v8719_v63 = vld [vmem:[#allocation2 + $0xf78] sm:$0xf0] }
 0x302   :  { %v10422_v31 = vld [vmem:[#allocation2 + $0x91c] sm:$0xf]  ;;  %v8722_v33 = vor.u32 %v10622_v27, %v8719_v63  ;;  %4063 = vmatpush.bf16.msrb.mxu2 %v8466_v30 }
 0x303   :  { %v7919_v32 = vld [vmem:[#allocation2 + $0x938] sm:$0xf0] }
 0x304   :  { %v10486_v8 = vld [vmem:[#allocation2 + $0xb1c] sm:$0xf]  ;;  %v7922_v15 = vor.u32 %v10422_v31, %v7919_v32  ;;  %4076 = vmatpush.bf16.msrb.mxu3 %v8722_v33 }
 0x305   :  { %v8175_v47 = vld [vmem:[#allocation2 + $0xb38] sm:$0xf0] }
 0x306   :  { %v10550_v35 = vld [vmem:[#allocation2 + $0xd1c] sm:$0xf]  ;;  %v8178_v25 = vor.u32 %v10486_v8, %v8175_v47  ;;  %4038 = vmatpush.bf16.msrb.mxu0 %v7922_v15 }
 0x307   :  { %v8431_v36 = vld [vmem:[#allocation2 + $0xd38] sm:$0xf0] }
 0x308   :  { %v10614_v7 = vld [vmem:[#allocation2 + $0xf1c] sm:$0xf]  ;;  %v8434_v39 = vor.u32 %v10550_v35, %v8431_v36  ;;  %4051 = vmatpush.bf16.msrb.mxu1 %v8178_v25  ;;  %v3812_v35 = vpop.f32.mrf.mxu2  ;;  %v3825_v25 = vpop.f32.mrf.mxu3 }
 0x309   :  { %v8687_v9 = vld [vmem:[#allocation2 + $0xf38] sm:$0xf0]  ;;  %v9237_v35 = vld [vmem:[#allocation6 + $0x380] sm:$0xf]  ;;  %v10657_v25 = vld [vmem:[#allocation6 + $0x6c] sm:$0xf0] }
 0x30a   :  { %v10414_v41 = vld [vmem:[#allocation2 + $0x8dc] sm:$0xf]  ;;  %v8690_v56 = vor.u32 %v10614_v7, %v8687_v9  ;;  %4064 = vmatpush.bf16.msrb.mxu2 %v8434_v39  ;;  %v8901_v39 = vld [vmem:[#allocation6 + $0xe0] sm:$0xf] }
 0x30b   :  { %v7887_v42 = vld [vmem:[#allocation2 + $0x8f8] sm:$0xf0] }
 0x30c   :  { %v10478_v43 = vld [vmem:[#allocation2 + $0xadc] sm:$0xf]  ;;  %v7890_v55 = vor.u32 %v10414_v41, %v7887_v42  ;;  %4077 = vmatpush.bf16.msrb.mxu3 %v8690_v56  ;;  %v10673_v41 = vld [vmem:[#allocation6 + $0xec] sm:$0xf0]  ;;  %v9029_v42 = vld [vmem:[#allocation6 + $0x1e0] sm:$0xf] }
 0x30d   :  { %v8143_v46 = vld [vmem:[#allocation2 + $0xaf8] sm:$0xf0]  ;;  %v10705_v56 = vld [vmem:[#allocation6 + $0x1ec] sm:$0xf0] }
 0x30e   :  { %v10542_v50 = vld [vmem:[#allocation2 + $0xcdc] sm:$0xf]  ;;  %v8146_v57 = vor.u32 %v10478_v43, %v8143_v46  ;;  %4039 = vmatpush.bf16.msrb.mxu0 %v7890_v55  ;;  %v9157_v46 = vld [vmem:[#allocation6 + $0x2e0] sm:$0xf]  ;;  %v10769_v55 = vld [vmem:[#allocation6 + $0x3ec] sm:$0xf0] }
 0x30f   :  { %v8399_v51 = vld [vmem:[#allocation2 + $0xcf8] sm:$0xf0] }
 0x310   :  { %v10606_v53 = vld [vmem:[#allocation2 + $0xedc] sm:$0xf]  ;;  %v8402_v58 = vor.u32 %v10542_v50, %v8399_v51  ;;  %4052 = vmatpush.bf16.msrb.mxu1 %v8146_v57  ;;  %v10737_v50 = vld [vmem:[#allocation6 + $0x2ec] sm:$0xf0] }
 0x311   :  { %v8655_v54 = vld [vmem:[#allocation2 + $0xef8] sm:$0xf0] }
 0x312   :  { %v10406_v60 = vld [vmem:[#allocation2 + $0x89c] sm:$0xf]  ;;  %v8658_v0 = vor.u32 %v10606_v53, %v8655_v54  ;;  %4065 = vmatpush.bf16.msrb.mxu2 %v8402_v58  ;;  %v9285_v54 = vld [vmem:[#allocation6 + $0x3e0] sm:$0xf]  ;;  %v8902_v58 = vor.u32 %v10673_v41, %v8901_v39  ;;  %v11442_v41 = vpop.f32.mrf.mxu1 }
 0x313   :  { %v7855_v61 = vld [vmem:[#allocation2 + $0x8b8] sm:$0xf0]  ;;  %v8965_v39 = vld [vmem:[#allocation6 + $0x160] sm:$0xf] }
 0x314   :  { %v10470_v62 = vld [vmem:[#allocation2 + $0xa9c] sm:$0xf]  ;;  %v7858_v12 = vor.u32 %v10406_v60, %v7855_v61  ;;  %4078 = vmatpush.bf16.msrb.mxu3 %v8658_v0  ;;  %v9030_v60 = vor.u32 %v10705_v56, %v9029_v42  ;;  %v9158_v61 = vor.u32 %v10737_v50, %v9157_v46  ;;  %v10669_v0 = vld [vmem:[#allocation6 + $0xcc] sm:$0xf0]  ;;  %v9093_v56 = vld [vmem:[#allocation6 + $0x260] sm:$0xf] }
 0x315   :  { %v8111_v1 = vld [vmem:[#allocation2 + $0xab8] sm:$0xf0]  ;;  %v10721_v46 = vld [vmem:[#allocation6 + $0x26c] sm:$0xf0]  ;;  %v9221_v50 = vld [vmem:[#allocation6 + $0x360] sm:$0xf] }
 0x316   :  { %v10534_v3 = vld [vmem:[#allocation2 + $0xc9c] sm:$0xf]  ;;  %v8114_v16 = vor.u32 %v10470_v62, %v8111_v1  ;;  %4040 = vmatpush.bf16.msrb.mxu0 %v7858_v12  ;;  %v8885_v62 = vld [vmem:[#allocation6 + $0xc0] sm:$0xf] }
 0x317   :  { %v8367_v4 = vld [vmem:[#allocation2 + $0xcb8] sm:$0xf0]  ;;  %v9013_v1 = vld [vmem:[#allocation6 + $0x1c0] sm:$0xf] }
 0x318   :  { %v10598_v10 = vld [vmem:[#allocation2 + $0xe9c] sm:$0xf]  ;;  %v8370_v17 = vor.u32 %v10534_v3, %v8367_v4  ;;  %4053 = vmatpush.bf16.msrb.mxu1 %v8114_v16  ;;  %v9286_v3 = vor.u32 %v10769_v55, %v9285_v54  ;;  %v10701_v4 = vld [vmem:[#allocation6 + $0x1cc] sm:$0xf0]  ;;  %v9269_v12 = vld [vmem:[#allocation6 + $0x3c0] sm:$0xf]  ;;  %v8886_v16 = vor.u32 %v10669_v0, %v8885_v62  ;;  %v9094_v55 = vor.u32 %v10721_v46, %v9093_v56 }
 0x319   :  { %v8623_v11 = vld [vmem:[#allocation2 + $0xeb8] sm:$0xf0]  ;;  %v10685_v0 = vld [vmem:[#allocation6 + $0x14c] sm:$0xf0]  ;;  %v9669_v56 = vld [vmem:[#allocation6 + $0x6e0] sm:$0xf] }
 0x31a   :  { %v10398_v18 = vld [vmem:[#allocation2 + $0x85c] sm:$0xf]  ;;  %v8626_v22 = vor.u32 %v10598_v10, %v8623_v11  ;;  %4066 = vmatpush.bf16.msrb.mxu2 %v8370_v17  ;;  %v9141_v10 = vld [vmem:[#allocation6 + $0x2c0] sm:$0xf]  ;;  %v10733_v11 = vld [vmem:[#allocation6 + $0x2cc] sm:$0xf0]  ;;  %v9014_v17 = vor.u32 %v10701_v4, %v9013_v1  ;;  %v11446_v4 = vpop.f32.mrf.mxu3 }
 0x31b   :  { %v7823_v20 = vld [vmem:[#allocation2 + $0x878] sm:$0xf0]  ;;  %v9077_v1 = vld [vmem:[#allocation6 + $0x240] sm:$0xf]  ;;  %v10865_v46 = vld [vmem:[#allocation6 + $0x6ec] sm:$0xf0] }
 0x31c   :  { %v10462_v6 = vld [vmem:[#allocation2 + $0xa5c] sm:$0xf]  ;;  %v7826_v28 = vor.u32 %v10398_v18, %v7823_v20  ;;  %4079 = vmatpush.bf16.msrb.mxu3 %v8626_v22  ;;  %v9142_v18 = vor.u32 %v10733_v11, %v9141_v10  ;;  %v8869_v20 = vld [vmem:[#allocation6 + $0xa0] sm:$0xf]  ;;  %v9270_v22 = vor.u32 %v10765_v14, %v9269_v12  ;;  %v10749_v11 = vld [vmem:[#allocation6 + $0x34c] sm:$0xf0] }
 0x31d   :  { %v8079_v23 = vld [vmem:[#allocation2 + $0xa78] sm:$0xf0]  ;;  %v9205_v10 = vld [vmem:[#allocation6 + $0x340] sm:$0xf] }
 0x31e   :  { %v10526_v24 = vld [vmem:[#allocation2 + $0xc5c] sm:$0xf]  ;;  %v8082_v31 = vor.u32 %v10462_v6, %v8079_v23  ;;  %4041 = vmatpush.bf16.msrb.mxu0 %v7826_v28  ;;  %v10665_v6 = vld [vmem:[#allocation6 + $0xac] sm:$0xf0] }
 0x31f   :  { %v8335_v26 = vld [vmem:[#allocation2 + $0xc78] sm:$0xf0]  ;;  %v10697_v23 = vld [vmem:[#allocation6 + $0x1ac] sm:$0xf0]  ;;  %v8870_v28 = vor.u32 %v10665_v6, %v8869_v20  ;;  %v8933_v6 = vld [vmem:[#allocation6 + $0x120] sm:$0xf] }
 0x320   :  { %v10590_v27 = vld [vmem:[#allocation2 + $0xe5c] sm:$0xf]  ;;  %v8338_v32 = vor.u32 %v10526_v24, %v8335_v26  ;;  %4054 = vmatpush.bf16.msrb.mxu1 %v8082_v31  ;;  %v9125_v24 = vld [vmem:[#allocation6 + $0x2a0] sm:$0xf]  ;;  %v10729_v26 = vld [vmem:[#allocation6 + $0x2ac] sm:$0xf0] }
 0x321   :  { %v8591_v63 = vld [vmem:[#allocation2 + $0xe78] sm:$0xf0]  ;;  %v8853_v31 = vld [vmem:[#allocation6 + $0x80] sm:$0xf]  ;;  %v10649_v20 = vld [vmem:[#allocation6 + $0x2c] sm:$0xf0] }
 0x322   :  { %v10390_v29 = vld [vmem:[#allocation2 + $0x81c] sm:$0xf]  ;;  %v8594_v36 = vor.u32 %v10590_v27, %v8591_v63  ;;  %4067 = vmatpush.bf16.msrb.mxu2 %v8338_v32  ;;  %v9253_v27 = vld [vmem:[#allocation6 + $0x3a0] sm:$0xf]  ;;  %v10761_v63 = vld [vmem:[#allocation6 + $0x3ac] sm:$0xf0] }
 0x323   :  { %v7791_v30 = vld [vmem:[#allocation2 + $0x838] sm:$0xf0]  ;;  %v8981_v32 = vld [vmem:[#allocation6 + $0x180] sm:$0xf] }
 0x324   :  { %v10454_v8 = vld [vmem:[#allocation2 + $0xa1c] sm:$0xf]  ;;  %v7794_v43 = vor.u32 %v10390_v29, %v7791_v30  ;;  %4080 = vmatpush.bf16.msrb.mxu3 %v8594_v36  ;;  %v8998_v29 = vor.u32 %v10697_v23, %v8997_v21  ;;  %v9126_v30 = vor.u32 %v10729_v26, %v9125_v24  ;;  %v3851_v21 = vpop.f32.mrf.mxu1  ;;  %v10681_v23 = vld [vmem:[#allocation6 + $0x12c] sm:$0xf0]  ;;  %v9061_v24 = vld [vmem:[#allocation6 + $0x220] sm:$0xf] }
 0x325   :  { %v8047_v33 = vld [vmem:[#allocation2 + $0xa38] sm:$0xf0]  ;;  %v10713_v26 = vld [vmem:[#allocation6 + $0x22c] sm:$0xf0]  ;;  %v9509_v21 = vld [vmem:[#allocation6 + $0x5a0] sm:$0xf] }
 0x326   :  { %v10518_v47 = vld [vmem:[#allocation2 + $0xc1c] sm:$0xf]  ;;  %v8050_v51 = vor.u32 %v10454_v8, %v8047_v33  ;;  %4042 = vmatpush.bf16.msrb.mxu0 %v7794_v43  ;;  %v9254_v8 = vor.u32 %v10761_v63, %v9253_v27  ;;  %v10693_v33 = vld [vmem:[#allocation6 + $0x18c] sm:$0xf0]  ;;  %v684_v27 = vperm.slane %v11412_v19, 5  ;;  %v3877_v19 = vpop.f32.mrf.mxu3 }
 0x327   :  { %v8303_v7 = vld [vmem:[#allocation2 + $0xc38] sm:$0xf0]  ;;  %v10689_v43 = vld [vmem:[#allocation6 + $0x16c] sm:$0xf0]  ;;  %v9189_v63 = vld [vmem:[#allocation6 + $0x320] sm:$0xf] }
 0x328   :  { %v10582_v9 = vld [vmem:[#allocation2 + $0xe1c] sm:$0xf]  ;;  %v8306_v53 = vor.u32 %v10518_v47, %v8303_v7  ;;  %4055 = vmatpush.bf16.msrb.mxu1 %v8050_v51  ;;  %v9109_v47 = vld [vmem:[#allocation6 + $0x280] sm:$0xf]  ;;  %v11440_v7 = vpop.f32.mrf.mxu0  ;;  %v10753_v51 = vld [vmem:[#allocation6 + $0x36c] sm:$0xf0]  ;;  %v8966_v54 = vor.u32 %v10689_v43, %v8965_v39 }
 0x329   :  { %v8559_v15 = vld [vmem:[#allocation2 + $0xe38] sm:$0xf0]  ;;  %4043 = vmatmul.bf16.vlgmr.msrb.gmra.mxu0 %v11330_v37  ;;  %v10661_v37 = vld [vmem:[#allocation6 + $0x8c] sm:$0xf0]  ;;  %v9222_v62 = vor.u32 %v10753_v51, %v9221_v50  ;;  %v9541_v39 = vld [vmem:[#allocation6 + $0x5e0] sm:$0xf] }
 0x32a   :  { %v8562_v57 = vor.u32 %v10582_v9, %v8559_v15  ;;  %4068 = vmatpush.bf16.msrb.mxu2 %v8306_v53  ;;  %5649 = vmatpush.bf16.msra.mxu0 %v8902_v58  ;;  %v8854_v36 = vor.u32 %v10661_v37, %v8853_v31  ;;  %v8837_v15 = vld [vmem:[#allocation6 + $0x60] sm:$0xf]  ;;  %v10653_v58 = vld [vmem:[#allocation6 + $0x4c] sm:$0xf0]  ;;  %v8934_v37 = vor.u32 %v10681_v23, %v8933_v6  ;;  %v4087_v50 = vmax.f32 %v11362_v48, 0.0 }
 0x32b   :  { %4056 = vmatmul.bf16.vlgmr.msrb.gmra.mxu1 %v11334_v40  ;;  %v10725_v40 = vld [vmem:[#allocation6 + $0x28c] sm:$0xf0]  ;;  %v8838_v53 = vor.u32 %v10657_v25, %v8837_v15  ;;  %v9413_v15 = vld [vmem:[#allocation6 + $0x4e0] sm:$0xf]  ;;  %v4088_v51 = vmax.f32 %v11376_v45, 0.0 }
 0x32c   :  { %4081 = vmatpush.bf16.msrb.mxu3 %v8562_v57  ;;  %5662 = vmatpush.bf16.msra.mxu1 %v9030_v60  ;;  %v9110_v9 = vor.u32 %v10725_v40, %v9109_v47  ;;  %v8821_v57 = vld [vmem:[#allocation6 + $0x40] sm:$0xf]  ;;  %v10645_v31 = vld [vmem:[#allocation6 + $0xc] sm:$0xf0] }
 0x32d   :  { %4069 = vmatmul.bf16.vlgmr.msrb.gmra.mxu2 %v11328_v34  ;;  %v10757_v34 = vld [vmem:[#allocation6 + $0x38c] sm:$0xf0]  ;;  %v8949_v60 = vld [vmem:[#allocation6 + $0x140] sm:$0xf]  ;;  %v8822_v12 = vor.u32 %v10653_v58, %v8821_v57 }
 0x32e   :  { %5675 = vmatpush.bf16.msra.mxu2 %v9158_v61  ;;  %5650 = vmatpush.bf16.msra.mxu0 %v8886_v16  ;;  %v9238_v42 = vor.u32 %v10757_v34, %v9237_v35  ;;  %v11444_v61 = vpop.f32.mrf.mxu2  ;;  %v8950_v16 = vor.u32 %v10685_v0, %v8949_v60  ;;  %v9045_v47 = vld [vmem:[#allocation6 + $0x200] sm:$0xf]  ;;  %v10709_v34 = vld [vmem:[#allocation6 + $0x20c] sm:$0xf0]  ;;  %v9670_v0 = vor.u32 %v10865_v46, %v9669_v56 }
 0x32f   :  { %4082 = vmatmul.bf16.vlgmr.msrb.gmra.mxu3 %v11332_v38  ;;  %v8982_v38 = vor.u32 %v10693_v33, %v8981_v32  ;;  %v9062_v32 = vor.u32 %v10713_v26, %v9061_v24  ;;  %v10677_v33 = vld [vmem:[#allocation6 + $0x10c] sm:$0xf0]  ;;  %v9525_v48 = vld [vmem:[#allocation6 + $0x5c0] sm:$0xf] }
 0x330   :  { %5688 = vmatpush.bf16.msra.mxu3 %v9286_v3  ;;  %5663 = vmatpush.bf16.msra.mxu1 %v9014_v17  ;;  %v10717_v3 = vld [vmem:[#allocation6 + $0x24c] sm:$0xf0]  ;;  %v3838_v14 = vpop.f32.mrf.mxu0  ;;  %v9637_v23 = vld [vmem:[#allocation6 + $0x6a0] sm:$0xf] }
 0x331   :  { %v9078_v17 = vor.u32 %v10717_v3, %v9077_v1  ;;  %v10801_v25 = vld [vmem:[#allocation6 + $0x4ec] sm:$0xf0]  ;;  %v9397_v1 = vld [vmem:[#allocation6 + $0x4c0] sm:$0xf]  ;;  %v11457_v14 = vpack.c.bf16 %v4088_v51, %v4088_v51 }
 0x332   :  { %5676 = vmatpush.bf16.msra.mxu2 %v9142_v18  ;;  %5651 = vmatpush.bf16.msra.mxu0 %v8870_v28  ;;  %v8805_v18 = vld [vmem:[#allocation6 + $0x20] sm:$0xf]  ;;  %v10745_v28 = vld [vmem:[#allocation6 + $0x32c] sm:$0xf0]  ;;  %v9414_v58 = vor.u32 %v10801_v25, %v9413_v15 }
 0x333   :  { %v9190_v35 = vor.u32 %v10745_v28, %v9189_v63  ;;  %v10833_v43 = vld [vmem:[#allocation6 + $0x5ec] sm:$0xf0]  ;;  %v9365_v28 = vld [vmem:[#allocation6 + $0x480] sm:$0xf] }
 0x334   :  { %5689 = vmatpush.bf16.msra.mxu3 %v9270_v22  ;;  %5664 = vmatpush.bf16.msra.mxu1 %v8998_v29  ;;  %v9206_v22 = vor.u32 %v10749_v11, %v9205_v10  ;;  %v8806_v29 = vor.u32 %v10649_v20, %v8805_v18  ;;  %v10797_v3 = vld [vmem:[#allocation6 + $0x4cc] sm:$0xf0]  ;;  %v9653_v10 = vld [vmem:[#allocation6 + $0x6c0] sm:$0xf] }
 0x335   :  { %v10829_v45 = vld [vmem:[#allocation6 + $0x5cc] sm:$0xf0]  ;;  %v9381_v20 = vld [vmem:[#allocation6 + $0x4a0] sm:$0xf] }
 0x336   :  { %5677 = vmatpush.bf16.msra.mxu2 %v9126_v30  ;;  %5652 = vmatpush.bf16.msra.mxu0 %v8854_v36  ;;  %v8789_v30 = vld [vmem:[#allocation6] sm:$0xf]  ;;  %v3864_v40 = vpop.f32.mrf.mxu2  ;;  %v10861_v11 = vld [vmem:[#allocation6 + $0x6cc] sm:$0xf0] }
 0x337   :  { %v9173_v36 = vld [vmem:[#allocation6 + $0x300] sm:$0xf]  ;;  %v9654_v18 = vor.u32 %v10861_v11, %v9653_v10  ;;  %v10793_v6 = vld [vmem:[#allocation6 + $0x4ac] sm:$0xf0]  ;;  %v11480_v11 = vld [vmem:[#allocation4] sm:$0xff] }
 0x338   :  { %5690 = vmatpush.bf16.msra.mxu3 %v9254_v8  ;;  %5665 = vmatpush.bf16.msra.mxu1 %v8982_v38  ;;  %v8917_v8 = vld [vmem:[#allocation6 + $0x100] sm:$0xf]  ;;  %v10741_v38 = vld [vmem:[#allocation6 + $0x30c] sm:$0xf0] }
 0x339   :  { %v9174_v57 = vor.u32 %v10741_v38, %v9173_v36  ;;  %v10857_v24 = vld [vmem:[#allocation6 + $0x6ac] sm:$0xf0]  ;;  %v9477_v36 = vld [vmem:[#allocation6 + $0x560] sm:$0xf]  ;;  %v11472_v38 = vpop.f32.mrf.mxu1 }
 0x33a   :  { %5678 = vmatpush.bf16.msra.mxu2 %v9110_v9  ;;  %5653 = vmatpush.bf16.msra.mxu0 %v8838_v53  ;;  %v3785_v9 = vadd.f32 %v11428_v49, %v684_v27  ;;  %v8918_v53 = vor.u32 %v10677_v33, %v8917_v8  ;;  %v4090_v49 = vmax.f32 %v11406_v59, 0.0  ;;  %v9638_v63 = vor.u32 %v10857_v24, %v9637_v23  ;;  %v11469_v33 = vpop.f32.mrf.mxu0  ;;  %v10817_v19 = vld [vmem:[#allocation6 + $0x56c] sm:$0xf0]  ;;  %v9461_v46 = vld [vmem:[#allocation6 + $0x540] sm:$0xf] }
 0x33b   :  { %v10849_v15 = vld [vmem:[#allocation6 + $0x66c] sm:$0xf0]  ;;  %v9557_v23 = vld [vmem:[#allocation6 + $0x600] sm:$0xf] }
 0x33c   :  { %5691 = vmatpush.bf16.msra.mxu3 %v9238_v42  ;;  %5666 = vmatpush.bf16.msra.mxu1 %v8966_v54  ;;  %v8790_v42 = vor.u32 %v10645_v31, %v8789_v30  ;;  %v9046_v54 = vor.u32 %v10709_v34, %v9045_v47  ;;  %v3798_v60 = vadd.f32 %v11430_v44, %v3785_v9  ;;  %v9493_v30 = vld [vmem:[#allocation6 + $0x580] sm:$0xf]  ;;  %v10821_v31 = vld [vmem:[#allocation6 + $0x58c] sm:$0xf0] }
 0x33d   :  { %v11461_v59 = vpack.c.bf16 %v4090_v49, %v4090_v49  ;;  %v9398_v44 = vor.u32 %v10797_v3, %v9397_v1  ;;  %v9494_v40 = vor.u32 %v10821_v31, %v9493_v30  ;;  %v10785_v34 = vld [vmem:[#allocation6 + $0x46c] sm:$0xf0]  ;;  %v9605_v9 = vld [vmem:[#allocation6 + $0x660] sm:$0xf]  ;;  %v8903_v30 = vld [vmem:[#allocation6 + $0xf0] sm:$0xf0] }
 0x33e   :  { %5679 = vmatpush.bf16.msra.mxu2 %v9094_v55  ;;  %5654 = vmatpush.bf16.msra.mxu0 %v8822_v12  ;;  %v4089_v55 = vmax.f32 %v11392_v52, 0.0  ;;  %v11455_v12 = vpack.c.bf16 %v4087_v50, %v4087_v50  ;;  %v10781_v56 = vld [vmem:[#allocation6 + $0x44c] sm:$0xf0]  ;;  %v11475_v50 = vpop.f32.mrf.mxu2  ;;  %v9445_v1 = vld [vmem:[#allocation6 + $0x520] sm:$0xf] }
 0x33f   :  { %v10813_v51 = vld [vmem:[#allocation6 + $0x54c] sm:$0xf0]  ;;  %v10703_v31 = vld [vmem:[#allocation6 + $0x1e4] sm:$0xf] }
 0x340   :  { %5692 = vmatpush.bf16.msra.mxu3 %v9222_v62  ;;  %5667 = vmatpush.bf16.msra.mxu1 %v8950_v16  ;;  %v9542_v62 = vor.u32 %v10833_v43, %v9541_v39  ;;  %v11459_v52 = vpack.c.bf16 %v4089_v55, %v4089_v55  ;;  %v3811_v16 = vadd.f32 %v11432_v2, %v3798_v60  ;;  %v9333_v43 = vld [vmem:[#allocation6 + $0x440] sm:$0xf]  ;;  %v11477_v55 = vpop.f32.mrf.mxu3  ;;  %v10841_v10 = vld [vmem:[#allocation6 + $0x62c] sm:$0xf0] }
 0x341   :  { %v9382_v2 = vor.u32 %v10793_v6, %v9381_v20  ;;  %v9334_v49 = vor.u32 %v10781_v56, %v9333_v43  ;;  %v3903_v3 = vpop.f32.mrf.mxu1  ;;  %v10837_v24 = vld [vmem:[#allocation6 + $0x60c] sm:$0xf0]  ;;  %v10731_v56 = vld [vmem:[#allocation6 + $0x2c4] sm:$0xf] }
 0x342   :  { %5680 = vmatpush.bf16.msra.mxu2 %v9078_v17  ;;  %5655 = vmatpush.bf16.msra.mxu0 %v8806_v29  ;;  %v9526_v17 = vor.u32 %v10829_v45, %v9525_v48  ;;  %v3824_v26 = vadd.f32 %v11434_v5, %v3811_v16  ;;  %v10789_v29 = vld [vmem:[#allocation6 + $0x48c] sm:$0xf0]  ;;  %v9573_v45 = vld [vmem:[#allocation6 + $0x620] sm:$0xf]  ;;  %v10727_v3 = vld [vmem:[#allocation6 + $0x2a4] sm:$0xf] }
 0x343   :  { %v9366_v8 = vor.u32 %v10789_v29, %v9365_v28  ;;  %v10809_v48 = vld [vmem:[#allocation6 + $0x52c] sm:$0xf0] }
 0x344   :  { %5693 = vmatpush.bf16.msra.mxu3 %v9206_v22  ;;  %5668 = vmatpush.bf16.msra.mxu1 %v8934_v37  ;;  %v10825_v22 = vld [vmem:[#allocation6 + $0x5ac] sm:$0xf0]  ;;  %v9621_v37 = vld [vmem:[#allocation6 + $0x680] sm:$0xf]  ;;  %v3837_v47 = vadd.f32 %v11440_v7, %v3824_v26  ;;  %v9606_v7 = vor.u32 %v10849_v15, %v9605_v9  ;;  %v9446_v6 = vor.u32 %v10809_v48, %v9445_v1  ;;  %v10671_v26 = vld [vmem:[#allocation6 + $0xe4] sm:$0xf] }
 0x345   :  { %v9510_v27 = vor.u32 %v10825_v22, %v9509_v21  ;;  %v9574_v21 = vor.u32 %v10841_v10, %v9573_v45  ;;  %v10805_v22 = vld [vmem:[#allocation6 + $0x50c] sm:$0xf0]  ;;  %v10667_v9 = vld [vmem:[#allocation6 + $0xc4] sm:$0xf]  ;;  %v8887_v15 = vld [vmem:[#allocation6 + $0xd0] sm:$0xf0] }
 0x346   :  { %5681 = vmatpush.bf16.msra.mxu2 %v9062_v32  ;;  %5656 = vmatpush.bf16.msra.mxu0 %v8790_v42  ;;  %v10853_v32 = vld [vmem:[#allocation6 + $0x68c] sm:$0xf0]  ;;  %v3850_v39 = vadd.f32 %v11442_v41, %v3837_v47  ;;  %v9478_v42 = vor.u32 %v10817_v19, %v9477_v36  ;;  %v9462_v41 = vor.u32 %v10813_v51, %v9461_v46  ;;  %v9159_v47 = vld [vmem:[#allocation6 + $0x2f0] sm:$0xf0] }
 0x347   :  { %v9622_v5 = vor.u32 %v10853_v32, %v9621_v37  ;;  %v10897_v28 = vld [vmem:[#allocation6 + $0x7ec] sm:$0xf0]  ;;  %v9031_v37 = vld [vmem:[#allocation6 + $0x1f0] sm:$0xf0]  ;;  %v8906_v36 = vor.u32 %v10671_v26, %v8903_v30 }
 0x348   :  { %5694 = vmatpush.bf16.msra.mxu3 %v9190_v35  ;;  %5669 = vmatpush.bf16.msra.mxu1 %v8918_v53  ;;  %v9349_v35 = vld [vmem:[#allocation6 + $0x460] sm:$0xf]  ;;  %v9034_v19 = vor.u32 %v10703_v31, %v9031_v37  ;;  %v10893_v43 = vld [vmem:[#allocation6 + $0x7cc] sm:$0xf0]  ;;  %v9127_v48 = vld [vmem:[#allocation6 + $0x2b0] sm:$0xf0] }
 0x349   :  { %5657 = vmatmul.bf16.vlgmr.msra.gmra.mxu0 %v11455_v12  ;;  %v9350_v25 = vor.u32 %v10785_v34, %v9349_v35  ;;  %v9589_v53 = vld [vmem:[#allocation6 + $0x640] sm:$0xf]  ;;  %v9558_v34 = vor.u32 %v10837_v24, %v9557_v23  ;;  %v10889_v1 = vld [vmem:[#allocation6 + $0x7ac] sm:$0xf0]  ;;  %v9111_v23 = vld [vmem:[#allocation6 + $0x290] sm:$0xf0]  ;;  %v3953_v31 = vpop.f32.mrf.mxu1 }
 0x34a   :  { %5682 = vmatpush.bf16.msra.mxu2 %v9046_v54  ;;  %5701 = vmatpush.bf16.msrb.mxu0 %v9414_v58  ;;  %v10845_v54 = vld [vmem:[#allocation6 + $0x64c] sm:$0xf0]  ;;  %v3863_v58 = vadd.f32 %v11444_v61, %v3850_v39  ;;  %v9429_v61 = vld [vmem:[#allocation6 + $0x500] sm:$0xf]  ;;  %v8839_v37 = vld [vmem:[#allocation6 + $0x70] sm:$0xf0] }
 0x34b   :  { %5670 = vmatmul.bf16.vlgmr.msra.gmra.mxu1 %v11457_v14  ;;  %v9590_v60 = vor.u32 %v10845_v54, %v9589_v53  ;;  %v9430_v35 = vor.u32 %v10805_v22, %v9429_v61  ;;  %v8890_v54 = vor.u32 %v10667_v9, %v8887_v15  ;;  %v9130_v61 = vor.u32 %v10727_v3, %v9127_v48  ;;  %v10723_v22 = vld [vmem:[#allocation6 + $0x284] sm:$0xf]  ;;  %v10877_v9 = vld [vmem:[#allocation6 + $0x74c] sm:$0xf0]  ;;  %v8935_v3 = vld [vmem:[#allocation6 + $0x130] sm:$0xf0] }
 0x34c   :  { %5695 = vmatpush.bf16.msra.mxu3 %v9174_v57  ;;  %5714 = vmatpush.bf16.msrb.mxu1 %v9542_v62  ;;  %v3890_v57 = vpop.f32.mrf.mxu0  ;;  %v9317_v62 = vld [vmem:[#allocation6 + $0x420] sm:$0xf]  ;;  %v3876_v20 = vadd.f32 %v11446_v4, %v3863_v58  ;;  %v10695_v58 = vld [vmem:[#allocation6 + $0x1a4] sm:$0xf]  ;;  %v9114_v30 = vor.u32 %v10723_v22, %v9111_v23 }
 0x34d   :  { %5683 = vmatmul.bf16.vlgmr.msra.gmra.mxu2 %v11459_v52  ;;  %v10663_v57 = vld [vmem:[#allocation6 + $0xa4] sm:$0xf]  ;;  %v9685_v23 = vld [vmem:[#allocation6 + $0x700] sm:$0xf] }
 0x34e   :  { %5727 = vmatpush.bf16.msrb.mxu2 %v9670_v0  ;;  %5702 = vmatpush.bf16.msrb.mxu0 %v9398_v44  ;;  %v10777_v0 = vld [vmem:[#allocation6 + $0x42c] sm:$0xf0]  ;;  %v685_v44 = vperm.slane %v11480_v11, 6  ;;  %v10707_v22 = vld [vmem:[#allocation6 + $0x204] sm:$0xf] }
 0x34f   :  { %5696 = vmatmul.bf16.vlgmr.msra.gmra.mxu3 %v11461_v59  ;;  %v9318_v16 = vor.u32 %v10777_v0, %v9317_v62  ;;  %v8999_v62 = vld [vmem:[#allocation6 + $0x1b0] sm:$0xf0]  ;;  %v9765_v0 = vld [vmem:[#allocation6 + $0x7a0] sm:$0xf] }
 0x350   :  { %5715 = vmatpush.bf16.msrb.mxu1 %v9526_v17  ;;  %v9301_v17 = vld [vmem:[#allocation6 + $0x400] sm:$0xf]  ;;  %v3889_v29 = vadd.f32 %v11469_v33, %v685_v44  ;;  %v10699_v33 = vld [vmem:[#allocation6 + $0x1c4] sm:$0xf]  ;;  %v9766_v45 = vor.u32 %v10889_v1, %v9765_v0  ;;  %v9002_v44 = vor.u32 %v10695_v58, %v8999_v62  ;;  %v8807_v0 = vld [vmem:[#allocation6 + $0x30] sm:$0xf0] }
 0x351   :  { %v10679_v1 = vld [vmem:[#allocation6 + $0x124] sm:$0xf]  ;;  %v3955_v48 = vpop.f32.mrf.mxu1 }
 0x352   :  { %5728 = vmatpush.bf16.msrb.mxu2 %v9654_v18  ;;  %5703 = vmatpush.bf16.msrb.mxu0 %v9382_v2  ;;  %v10773_v18 = vld [vmem:[#allocation6 + $0x40c] sm:$0xf0]  ;;  %v3916_v2 = vpop.f32.mrf.mxu2  ;;  %v10787_v48 = vld [vmem:[#allocation6 + $0x484] sm:$0xf] }
 0x353   :  { %v9302_v4 = vor.u32 %v10773_v18, %v9301_v17  ;;  %v9749_v17 = vld [vmem:[#allocation6 + $0x780] sm:$0xf]  ;;  %v10885_v18 = vld [vmem:[#allocation6 + $0x78c] sm:$0xf0] }
 0x354   :  { %5716 = vmatpush.bf16.msrb.mxu1 %v9510_v27  ;;  %v3929_v27 = vpop.f32.mrf.mxu3  ;;  %v9750_v24 = vor.u32 %v10885_v18, %v9749_v17  ;;  %v10643_v17 = vld [vmem:[#allocation6 + $0x4] sm:$0xf]  ;;  %v8791_v18 = vld [vmem:[#allocation6 + $0x10] sm:$0xf0] }
 0x355   :  { %v3940_v27 = vpop.f32.mrf.mxu0 }
 0x356   :  { %5729 = vmatpush.bf16.msrb.mxu2 %v9638_v63  ;;  %5704 = vmatpush.bf16.msrb.mxu0 %v9366_v8  ;;  %v9797_v63 = vld [vmem:[#allocation6 + $0x7e0] sm:$0xf]  ;;  %v10735_v8 = vld [vmem:[#allocation6 + $0x2e4] sm:$0xf] }
 0x357   :  { %v9798_v32 = vor.u32 %v10897_v28, %v9797_v63  ;;  %v9162_v39 = vor.u32 %v10735_v8, %v9159_v47  ;;  %v10655_v63 = vld [vmem:[#allocation6 + $0x64] sm:$0xf]  ;;  %v9733_v28 = vld [vmem:[#allocation6 + $0x760] sm:$0xf]  ;;  %v9095_v47 = vld [vmem:[#allocation6 + $0x270] sm:$0xf0] }
 0x358   :  { %5717 = vmatpush.bf16.msrb.mxu1 %v9494_v40  ;;  %v4091_v40 = vmax.f32 %v11422_v13, 0.0  ;;  %v9143_v13 = vld [vmem:[#allocation6 + $0x2d0] sm:$0xf0]  ;;  %v10719_v8 = vld [vmem:[#allocation6 + $0x264] sm:$0xf] }
 0x359   :  { %5740 = vmatpush.bf16.msrb.mxu3 %v9798_v32  ;;  %v10687_v32 = vld [vmem:[#allocation6 + $0x164] sm:$0xf]  ;;  %v9098_v15 = vor.u32 %v10719_v8, %v9095_v47  ;;  %v9671_v8 = vld [vmem:[#allocation6 + $0x6f0] sm:$0xf0] }
 0x35a   :  { %5730 = vmatpush.bf16.msrb.mxu2 %v9622_v5  ;;  %5705 = vmatpush.bf16.msrb.mxu0 %v9350_v25  ;;  %v4092_v5 = vmax.f32 %v3876_v20, 0.0  ;;  %v3902_v25 = vadd.f32 %v11472_v38, %v3889_v29  ;;  %v11487_v51 = vpack.c.bf16 %v4091_v40, %v4091_v40  ;;  %v8871_v38 = vld [vmem:[#allocation6 + $0xb0] sm:$0xf0]  ;;  %v10881_v29 = vld [vmem:[#allocation6 + $0x76c] sm:$0xf0] }
 0x35b   :  { %v8874_v10 = vor.u32 %v10663_v57, %v8871_v38  ;;  %v8855_v20 = vld [vmem:[#allocation6 + $0x90] sm:$0xf0]  ;;  %v9734_v40 = vor.u32 %v10881_v29, %v9733_v28  ;;  %v10647_v38 = vld [vmem:[#allocation6 + $0x24] sm:$0xf] }
 0x35c   :  { %5718 = vmatpush.bf16.msrb.mxu1 %v9478_v42  ;;  %v9015_v42 = vld [vmem:[#allocation6 + $0x1d0] sm:$0xf0]  ;;  %v11489_v53 = vpack.c.bf16 %v4092_v5, %v4092_v5  ;;  %v10799_v29 = vld [vmem:[#allocation6 + $0x4e4] sm:$0xf] }
 0x35d   :  { %v3942_v58 = vpop.f32.mrf.mxu0  ;;  %v9287_v28 = vld [vmem:[#allocation6 + $0x3f0] sm:$0xf0] }
 0x35e   :  { %5731 = vmatpush.bf16.msrb.mxu2 %v9606_v7  ;;  %5706 = vmatpush.bf16.msrb.mxu0 %v9334_v49  ;;  %v9781_v7 = vld [vmem:[#allocation6 + $0x7c0] sm:$0xf]  ;;  %v9018_v49 = vor.u32 %v10699_v33, %v9015_v42  ;;  %v3966_v33 = vpop.f32.mrf.mxu2  ;;  %v8951_v42 = vld [vmem:[#allocation6 + $0x150] sm:$0xf0] }
 0x35f   :  { %v9782_v46 = vor.u32 %v10893_v43, %v9781_v7  ;;  %v3979_v43 = vpop.f32.mrf.mxu3  ;;  %v9511_v58 = vld [vmem:[#allocation6 + $0x5b0] sm:$0xf0] }
 0x360   :  { %5719 = vmatpush.bf16.msrb.mxu1 %v9462_v41  ;;  %v3915_v41 = vadd.f32 %v11475_v50, %v3902_v25  ;;  %v8823_v25 = vld [vmem:[#allocation6 + $0x50] sm:$0xf0] }
 0x361   :  { %5741 = vmatpush.bf16.msrb.mxu3 %v9782_v46 }
 0x362   :  { %5732 = vmatpush.bf16.msrb.mxu2 %v9590_v60  ;;  %5707 = vmatpush.bf16.msrb.mxu0 %v9318_v16  ;;  %v9146_v60 = vor.u32 %v10731_v56, %v9143_v13  ;;  %v10659_v16 = vld [vmem:[#allocation6 + $0x84] sm:$0xf]  ;;  %v3928_v50 = vadd.f32 %v11477_v55, %v3915_v41  ;;  %v9079_v13 = vld [vmem:[#allocation6 + $0x250] sm:$0xf0]  ;;  %v9701_v41 = vld [vmem:[#allocation6 + $0x720] sm:$0xf] }
 0x363   :  { %v8858_v2 = vor.u32 %v10659_v16, %v8855_v20  ;;  %v10715_v56 = vld [vmem:[#allocation6 + $0x244] sm:$0xf] }
 0x364   :  { %5720 = vmatpush.bf16.msrb.mxu1 %v9446_v6  ;;  %v10691_v6 = vld [vmem:[#allocation6 + $0x184] sm:$0xf]  ;;  %v3941_v55 = vadd.f32 %v3940_v27, %v3928_v50  ;;  %v9082_v62 = vor.u32 %v10715_v56, %v9079_v13 }
 0x365   :  { %5742 = vmatpush.bf16.msrb.mxu3 %v9766_v45  ;;  %v10675_v50 = vld [vmem:[#allocation6 + $0x104] sm:$0xf] }
 0x366   :  { %5733 = vmatpush.bf16.msrb.mxu2 %v9574_v21  ;;  %5708 = vmatpush.bf16.msrb.mxu0 %v9302_v4  ;;  %v8983_v21 = vld [vmem:[#allocation6 + $0x190] sm:$0xf0]  ;;  %v3954_v5 = vadd.f32 %v3953_v31, %v3941_v55  ;;  %v3968_v27 = vpop.f32.mrf.mxu2  ;;  %v10831_v55 = vld [vmem:[#allocation6 + $0x5e4] sm:$0xf] }
 0x367   :  { %v8986_v26 = vor.u32 %v10691_v6, %v8983_v21  ;;  %v8967_v4 = vld [vmem:[#allocation6 + $0x170] sm:$0xf0]  ;;  %v8810_v6 = vor.u32 %v10647_v38, %v8807_v0  ;;  %v8938_v21 = vor.u32 %v10679_v1, %v8935_v3  ;;  %v3981_v31 = vpop.f32.mrf.mxu3  ;;  %v10823_v38 = vld [vmem:[#allocation6 + $0x5a4] sm:$0xf] }
 0x368   :  { %5721 = vmatpush.bf16.msrb.mxu1 %v9430_v35  ;;  %v8842_v35 = vor.u32 %v10655_v63, %v8839_v37  ;;  %v3967_v7 = vadd.f32 %v3966_v33, %v3954_v5  ;;  %v10767_v63 = vld [vmem:[#allocation6 + $0x3e4] sm:$0xf]  ;;  %v9255_v0 = vld [vmem:[#allocation6 + $0x3b0] sm:$0xf0] }
 0x369   :  { %5709 = vmatmul.bf16.vlgmr.msrb.gmra.mxu0 %v11487_v51  ;;  %5743 = vmatpush.bf16.msrb.mxu3 %v9750_v24  ;;  %v10869_v24 = vld [vmem:[#allocation6 + $0x70c] sm:$0xf0]  ;;  %v9290_v47 = vor.u32 %v10767_v63, %v9287_v28  ;;  %v10827_v33 = vld [vmem:[#allocation6 + $0x5c4] sm:$0xf]  ;;  %v9479_v63 = vld [vmem:[#allocation6 + $0x570] sm:$0xf0] }
 0x36a   :  { %5734 = vmatpush.bf16.msrb.mxu2 %v9558_v34  ;;  %5753 = vmatpush.bf16.msra.mxu0 %v8906_v36  ;;  %v8970_v34 = vor.u32 %v10687_v32, %v8967_v4  ;;  %v10651_v36 = vld [vmem:[#allocation6 + $0x44] sm:$0xf]  ;;  %v9686_v37 = vor.u32 %v10869_v24, %v9685_v23  ;;  %v9543_v32 = vld [vmem:[#allocation6 + $0x5f0] sm:$0xf0] }
 0x36b   :  { %5722 = vmatmul.bf16.vlgmr.msrb.gmra.mxu1 %v11489_v53  ;;  %v10863_v4 = vld [vmem:[#allocation6 + $0x6e4] sm:$0xf]  ;;  %v9351_v24 = vld [vmem:[#allocation6 + $0x470] sm:$0xf0] }
 0x36c   :  { %5766 = vmatpush.bf16.msra.mxu1 %v9034_v19  ;;  %v9717_v19 = vld [vmem:[#allocation6 + $0x740] sm:$0xf]  ;;  %v10783_v23 = vld [vmem:[#allocation6 + $0x464] sm:$0xf] }
 0x36d   :  { %5744 = vmatpush.bf16.msrb.mxu3 %v9734_v40  ;;  %v9718_v46 = vor.u32 %v10877_v9, %v9717_v19  ;;  %v8794_v40 = vor.u32 %v10643_v17, %v8791_v18  ;;  %v9399_v19 = vld [vmem:[#allocation6 + $0x4d0] sm:$0xf0]  ;;  %v9546_v9 = vor.u32 %v10831_v55, %v9543_v32  ;;  %v10755_v17 = vld [vmem:[#allocation6 + $0x384] sm:$0xf]  ;;  %v11503_v55 = vpop.f32.mrf.mxu1 }
 0x36e   :  { %5779 = vmatpush.bf16.msra.mxu2 %v9162_v39  ;;  %5754 = vmatpush.bf16.msra.mxu0 %v8890_v54  ;;  %v10683_v39 = vld [vmem:[#allocation6 + $0x144] sm:$0xf]  ;;  %v3980_v54 = vadd.f32 %v3979_v43, %v3967_v7  ;;  %v9655_v43 = vld [vmem:[#allocation6 + $0x6d0] sm:$0xf0] }
 0x36f   :  { %v8954_v57 = vor.u32 %v10683_v39, %v8951_v42  ;;  %v9271_v39 = vld [vmem:[#allocation6 + $0x3d0] sm:$0xf0]  ;;  %v10859_v7 = vld [vmem:[#allocation6 + $0x6c4] sm:$0xf] }
 0x370   :  { %5767 = vmatpush.bf16.msra.mxu1 %v9018_v49  ;;  %v8826_v49 = vor.u32 %v10651_v36, %v8823_v25  ;;  %v4093_v45 = vmax.f32 %v3980_v54, 0.0  ;;  %v10795_v36 = vld [vmem:[#allocation6 + $0x4c4] sm:$0xf]  ;;  %v9527_v42 = vld [vmem:[#allocation6 + $0x5d0] sm:$0xf0] }
 0x371   :  { %5745 = vmatpush.bf16.msrb.mxu3 %v9718_v46  ;;  %v10763_v25 = vld [vmem:[#allocation6 + $0x3c4] sm:$0xf]  ;;  %v9402_v13 = vor.u32 %v10795_v36, %v9399_v19  ;;  %v9383_v54 = vld [vmem:[#allocation6 + $0x4b0] sm:$0xf0] }
 0x372   :  { %5780 = vmatpush.bf16.msra.mxu2 %v9146_v60  ;;  %5755 = vmatpush.bf16.msra.mxu0 %v8874_v10  ;;  %v10873_v60 = vld [vmem:[#allocation6 + $0x72c] sm:$0xf0]  ;;  %v10711_v10 = vld [vmem:[#allocation6 + $0x224] sm:$0xf]  ;;  %v11495_v20 = vpack.c.bf16 %v4093_v45, %v4093_v45  ;;  %v9274_v56 = vor.u32 %v10763_v25, %v9271_v39  ;;  %v9367_v45 = vld [vmem:[#allocation6 + $0x490] sm:$0xf0]  ;;  %v11507_v25 = vpop.f32.mrf.mxu3 }
 0x373   :  { %v9702_v16 = vor.u32 %v10873_v60, %v9701_v41  ;;  %v10791_v46 = vld [vmem:[#allocation6 + $0x4a4] sm:$0xf]  ;;  %v9639_v60 = vld [vmem:[#allocation6 + $0x6b0] sm:$0xf0] }
 0x374   :  { %5768 = vmatpush.bf16.msra.mxu1 %v9002_v44  ;;  %v9063_v44 = vld [vmem:[#allocation6 + $0x230] sm:$0xf0]  ;;  %5735 = vmatmul.bf16.vlgmr.msrb.gmra.mxu2 %v11495_v20  ;;  %v10855_v41 = vld [vmem:[#allocation6 + $0x6a4] sm:$0xf]  ;;  %v9386_v3 = vor.u32 %v10791_v46, %v9383_v54 }
 0x375   :  { %5746 = vmatpush.bf16.msrb.mxu3 %v9702_v16  ;;  %v10819_v16 = vld [vmem:[#allocation6 + $0x584] sm:$0xf]  ;;  %v9239_v18 = vld [vmem:[#allocation6 + $0x390] sm:$0xf0] }
 0x376   :  { %5781 = vmatpush.bf16.msra.mxu2 %v9130_v61  ;;  %5756 = vmatpush.bf16.msra.mxu0 %v8858_v2  ;;  %v8919_v61 = vld [vmem:[#allocation6 + $0x110] sm:$0xf0]  ;;  %v9066_v2 = vor.u32 %v10711_v10, %v9063_v44  ;;  %v9514_v10 = vor.u32 %v10823_v38, %v9511_v58  ;;  %v9642_v44 = vor.u32 %v10855_v41, %v9639_v60  ;;  %v10815_v27 = vld [vmem:[#allocation6 + $0x564] sm:$0xf]  ;;  %v4007_v58 = vpop.f32.mrf.mxu1 }
 0x377   :  { %v8922_v5 = vor.u32 %v10675_v50, %v8919_v61  ;;  %v9495_v50 = vld [vmem:[#allocation6 + $0x590] sm:$0xf0]  ;;  %v10851_v61 = vld [vmem:[#allocation6 + $0x684] sm:$0xf]  ;;  %v10694_v58 = vld [vmem:[#allocation6 + $0x194] sm:$0xf0] }
 0x378   :  { %5769 = vmatpush.bf16.msra.mxu1 %v8986_v26  ;;  %v9047_v26 = vld [vmem:[#allocation6 + $0x210] sm:$0xf0]  ;;  %v10847_v28 = vld [vmem:[#allocation6 + $0x664] sm:$0xf] }
 0x379   :  { %5747 = vmatpush.bf16.msrb.mxu3 %v9686_v37  ;;  %v10751_v31 = vld [vmem:[#allocation6 + $0x364] sm:$0xf]  ;;  %v9223_v37 = vld [vmem:[#allocation6 + $0x370] sm:$0xf0] }
 0x37a   :  { %5782 = vmatpush.bf16.msra.mxu2 %v9114_v30  ;;  %5757 = vmatpush.bf16.msra.mxu0 %v8842_v35  ;;  %v9415_v30 = vld [vmem:[#allocation6 + $0x4f0] sm:$0xf0]  ;;  %v9050_v35 = vor.u32 %v10707_v22, %v9047_v26  ;;  %v9370_v22 = vor.u32 %v10787_v48, %v9367_v45  ;;  %v9226_v32 = vor.u32 %v10751_v31, %v9223_v37  ;;  %v10807_v46 = vld [vmem:[#allocation6 + $0x524] sm:$0xf] }
 0x37b   :  { %v9207_v36 = vld [vmem:[#allocation6 + $0x350] sm:$0xf0]  ;;  %v10743_v41 = vld [vmem:[#allocation6 + $0x324] sm:$0xf] }
 0x37c   :  { %5770 = vmatpush.bf16.msra.mxu1 %v8970_v34  ;;  %v9418_v34 = vor.u32 %v10799_v29, %v9415_v30  ;;  %v11500_v29 = vpop.f32.mrf.mxu0  ;;  %v9607_v30 = vld [vmem:[#allocation6 + $0x670] sm:$0xf0]  ;;  %v10803_v45 = vld [vmem:[#allocation6 + $0x504] sm:$0xf] }
 0x37d   :  { %5792 = vmatpush.bf16.msra.mxu3 %v9290_v47  ;;  %v9335_v47 = vld [vmem:[#allocation6 + $0x450] sm:$0xf0] }
 0x37e   :  { %5783 = vmatpush.bf16.msra.mxu2 %v9098_v15  ;;  %5758 = vmatpush.bf16.msra.mxu0 %v8826_v49  ;;  %v9674_v15 = vor.u32 %v10863_v4, %v9671_v8  ;;  %v9530_v49 = vor.u32 %v10827_v33, %v9527_v42  ;;  %v9354_v4 = vor.u32 %v10783_v23, %v9351_v24  ;;  %v10779_v8 = vld [vmem:[#allocation6 + $0x444] sm:$0xf]  ;;  %v9463_v19 = vld [vmem:[#allocation6 + $0x550] sm:$0xf0]  ;;  %v11505_v33 = vpop.f32.mrf.mxu2  ;;  %v10706_v23 = vld [vmem:[#allocation6 + $0x1f4] sm:$0xf0]  ;;  %v4033_v24 = vpop.f32.mrf.mxu3 }
 0x37f   :  { %v9338_v42 = vor.u32 %v10779_v8, %v9335_v47  ;;  %v9447_v54 = vld [vmem:[#allocation6 + $0x530] sm:$0xf0]  ;;  %v10670_v47 = vld [vmem:[#allocation6 + $0xd4] sm:$0xf0] }
 0x380   :  { %5771 = vmatpush.bf16.msra.mxu1 %v8954_v57  ;;  %v9658_v57 = vor.u32 %v10859_v7, %v9655_v43  ;;  %v10775_v7 = vld [vmem:[#allocation6 + $0x424] sm:$0xf]  ;;  %v9319_v43 = vld [vmem:[#allocation6 + $0x430] sm:$0xf0] }
 0x381   :  { %5793 = vmatpush.bf16.msra.mxu3 %v9274_v56  ;;  %v9575_v38 = vld [vmem:[#allocation6 + $0x630] sm:$0xf0] }
 0x382   :  { %5784 = vmatpush.bf16.msra.mxu2 %v9082_v62  ;;  %5759 = vmatpush.bf16.msra.mxu0 %v8810_v6  ;;  %v10759_v62 = vld [vmem:[#allocation6 + $0x3a4] sm:$0xf]  ;;  %v9623_v6 = vld [vmem:[#allocation6 + $0x690] sm:$0xf0] }
 0x383   :  { %v9258_v1 = vor.u32 %v10759_v62, %v9255_v0  ;;  %v9626_v26 = vor.u32 %v10851_v61, %v9623_v6  ;;  %v9191_v60 = vld [vmem:[#allocation6 + $0x330] sm:$0xf0]  ;;  %v686_v62 = vperm.slane %v11480_v11, 7  ;;  %v10739_v6 = vld [vmem:[#allocation6 + $0x304] sm:$0xf] }
 0x384   :  { %5772 = vmatpush.bf16.msra.mxu1 %v8938_v21  ;;  %v9242_v21 = vor.u32 %v10755_v17, %v9239_v18  ;;  %v9194_v0 = vor.u32 %v10743_v41, %v9191_v60  ;;  %v9303_v48 = vld [vmem:[#allocation6 + $0x410] sm:$0xf0]  ;;  %v10835_v17 = vld [vmem:[#allocation6 + $0x604] sm:$0xf]  ;;  %v9037_v11 = vld [vmem:[#allocation6 + $0x1e8] sm:$0xf] }
 0x385   :  { %5794 = vmatpush.bf16.msra.mxu3 %v9258_v1  ;;  %v9322_v1 = vor.u32 %v10775_v7, %v9319_v43  ;;  %v9559_v18 = vld [vmem:[#allocation6 + $0x610] sm:$0xf0]  ;;  %v3993_v31 = vadd.f32 %v11500_v29, %v686_v62  ;;  %v8877_v29 = vld [vmem:[#allocation6 + $0xa8] sm:$0xf]  ;;  %v10698_v7 = vld [vmem:[#allocation6 + $0x1b4] sm:$0xf0] }
 0x386   :  { %5785 = vmatpush.bf16.msra.mxu2 %v9066_v2  ;;  %5760 = vmatpush.bf16.msra.mxu0 %v8794_v40  ;;  %v9498_v2 = vor.u32 %v10819_v16, %v9495_v50  ;;  %v9482_v40 = vor.u32 %v10815_v27, %v9479_v63  ;;  %v9431_v16 = vld [vmem:[#allocation6 + $0x510] sm:$0xf0]  ;;  %v8909_v50 = vld [vmem:[#allocation6 + $0xe8] sm:$0xf]  ;;  %v4020_v61 = vpop.f32.mrf.mxu2  ;;  %v10738_v63 = vld [vmem:[#allocation6 + $0x2f4] sm:$0xf0] }
 0x387   :  { %v9165_v27 = vld [vmem:[#allocation6 + $0x2e8] sm:$0xf]  ;;  %v10726_v60 = vld [vmem:[#allocation6 + $0x294] sm:$0xf0] }
 0x388   :  { %5773 = vmatpush.bf16.msra.mxu1 %v8922_v5  ;;  %v9610_v5 = vor.u32 %v10847_v28, %v9607_v30  ;;  %v9434_v28 = vor.u32 %v10803_v45, %v9431_v16  ;;  %v9562_v30 = vor.u32 %v10835_v17, %v9559_v18  ;;  %v9166_v8 = vor.u32 %v10738_v63, %v9165_v27  ;;  %v9133_v43 = vld [vmem:[#allocation6 + $0x2a8] sm:$0xf]  ;;  %v10690_v16 = vld [vmem:[#allocation6 + $0x174] sm:$0xf0] }
 0x389   :  { %5761 = vmatmul.bf16.vlgmr.msra.gmra.mxu0 %v11455_v12  ;;  %5795 = vmatpush.bf16.msra.mxu3 %v9242_v21  ;;  %v9175_v21 = vld [vmem:[#allocation6 + $0x310] sm:$0xf0]  ;;  %v9117_v41 = vld [vmem:[#allocation6 + $0x288] sm:$0xf] }
 0x38a   :  { %5786 = vmatpush.bf16.msra.mxu2 %v9050_v35  ;;  %5805 = vmatpush.bf16.msrb.mxu0 %v9418_v34  ;;  %v10811_v35 = vld [vmem:[#allocation6 + $0x544] sm:$0xf]  ;;  %v9118_v45 = vor.u32 %v10726_v60, %v9117_v41  ;;  %v9101_v18 = vld [vmem:[#allocation6 + $0x268] sm:$0xf]  ;;  %v10834_v60 = vld [vmem:[#allocation6 + $0x5f4] sm:$0xf0] }
 0x38b   :  { %5774 = vmatmul.bf16.vlgmr.msra.gmra.mxu1 %v11457_v14  ;;  %v10747_v34 = vld [vmem:[#allocation6 + $0x344] sm:$0xf]  ;;  %v9466_v56 = vor.u32 %v10811_v35, %v9463_v19  ;;  %v9149_v35 = vld [vmem:[#allocation6 + $0x2c8] sm:$0xf] }
 0x38c   :  { %5818 = vmatpush.bf16.msrb.mxu1 %v9546_v9  ;;  %v10843_v9 = vld [vmem:[#allocation6 + $0x644] sm:$0xf]  ;;  %v9210_v39 = vor.u32 %v10747_v34, %v9207_v36  ;;  %v10734_v34 = vld [vmem:[#allocation6 + $0x2d4] sm:$0xf0]  ;;  %v4006_v36 = vadd.f32 %v11503_v55, %v3993_v31 }
 0x38d   :  { %5787 = vmatmul.bf16.vlgmr.msra.gmra.mxu2 %v11459_v52  ;;  %5796 = vmatpush.bf16.msra.mxu3 %v9226_v32  ;;  %v9038_v32 = vor.u32 %v10706_v23, %v9037_v11  ;;  %v8957_v11 = vld [vmem:[#allocation6 + $0x148] sm:$0xf]  ;;  %v10686_v23 = vld [vmem:[#allocation6 + $0x154] sm:$0xf0] }
 0x38e   :  { %5831 = vmatpush.bf16.msrb.mxu2 %v9674_v15  ;;  %5806 = vmatpush.bf16.msrb.mxu0 %v9402_v13  ;;  %v9591_v15 = vld [vmem:[#allocation6 + $0x650] sm:$0xf0]  ;;  %v4019_v55 = vadd.f32 %v11505_v33, %v4006_v36  ;;  %v8845_v33 = vld [vmem:[#allocation6 + $0x68] sm:$0xf]  ;;  %v10714_v36 = vld [vmem:[#allocation6 + $0x234] sm:$0xf0] }
 0x38f   :  { %v9594_v13 = vor.u32 %v10843_v9, %v9591_v15  ;;  %v9150_v15 = vor.u32 %v10734_v34, %v9149_v35  ;;  %v9069_v34 = vld [vmem:[#allocation6 + $0x228] sm:$0xf] }
 0x390   :  { %5819 = vmatpush.bf16.msrb.mxu1 %v9530_v49  ;;  %v10839_v49 = vld [vmem:[#allocation6 + $0x624] sm:$0xf]  ;;  %v4032_v62 = vadd.f32 %v11507_v25, %v4019_v55  ;;  %v8829_v25 = vld [vmem:[#allocation6 + $0x48] sm:$0xf]  ;;  %v10678_v55 = vld [vmem:[#allocation6 + $0x114] sm:$0xf0] }
 0x391   :  { %5797 = vmatpush.bf16.msra.mxu3 %v9210_v39  ;;  %v10666_v39 = vld [vmem:[#allocation6 + $0xb4] sm:$0xf0] }
 0x392   :  { %5832 = vmatpush.bf16.msrb.mxu2 %v9658_v57  ;;  %5807 = vmatpush.bf16.msrb.mxu0 %v9386_v3  ;;  %v3994_v57 = vpop.f32.mrf.mxu0  ;;  %v10771_v3 = vld [vmem:[#allocation6 + $0x404] sm:$0xf] }
 0x393   :  { %v10662_v57 = vld [vmem:[#allocation6 + $0x94] sm:$0xf0] }
 0x394   :  { %5820 = vmatpush.bf16.msrb.mxu1 %v9514_v10  ;;  %v9450_v10 = vor.u32 %v10807_v46, %v9447_v54  ;;  %v8861_v54 = vld [vmem:[#allocation6 + $0x88] sm:$0xf] }
 0x395   :  { %5798 = vmatpush.bf16.msra.mxu3 %v9194_v0 }
 0x396   :  { %5833 = vmatpush.bf16.msrb.mxu2 %v9642_v44  ;;  %5808 = vmatpush.bf16.msrb.mxu0 %v9370_v22  ;;  %v9578_v44 = vor.u32 %v10839_v49, %v9575_v38  ;;  %v10674_v22 = vld [vmem:[#allocation6 + $0xf4] sm:$0xf0]  ;;  %v8989_v38 = vld [vmem:[#allocation6 + $0x188] sm:$0xf] }
 0x397   :  { %v8910_v37 = vor.u32 %v10674_v22, %v8909_v50  ;;  %v10722_v50 = vld [vmem:[#allocation6 + $0x274] sm:$0xf0] }
 0x398   :  { %5821 = vmatpush.bf16.msrb.mxu1 %v9498_v2  ;;  %v9178_v2 = vor.u32 %v10739_v6, %v9175_v21  ;;  %v9102_v21 = vor.u32 %v10722_v50, %v9101_v18  ;;  %v10654_v22 = vld [vmem:[#allocation6 + $0x54] sm:$0xf0]  ;;  %v9405_v18 = vld [vmem:[#allocation6 + $0x4c8] sm:$0xf] }
 0x399   :  { %v8830_v31 = vor.u32 %v10654_v22, %v8829_v25  ;;  %v10798_v50 = vld [vmem:[#allocation6 + $0x4d4] sm:$0xf0] }
 0x39a   :  { %5834 = vmatpush.bf16.msrb.mxu2 %v9626_v26  ;;  %5809 = vmatpush.bf16.msrb.mxu0 %v9354_v4  ;;  %v9306_v26 = vor.u32 %v10771_v3, %v9303_v48  ;;  %v8893_v4 = vld [vmem:[#allocation6 + $0xc8] sm:$0xf]  ;;  %v8990_v3 = vor.u32 %v10694_v58, %v8989_v38  ;;  %v10802_v38 = vld [vmem:[#allocation6 + $0x4f4] sm:$0xf0] }
 0x39b   :  { %5799 = vmatpush.bf16.msra.mxu3 %v9178_v2  ;;  %v8894_v19 = vor.u32 %v10670_v47, %v8893_v4  ;;  %v9085_v2 = vld [vmem:[#allocation6 + $0x248] sm:$0xf]  ;;  %v10650_v47 = vld [vmem:[#allocation6 + $0x34] sm:$0xf0] }
 0x39c   :  { %5822 = vmatpush.bf16.msrb.mxu1 %v9482_v40  ;;  %v9021_v40 = vld [vmem:[#allocation6 + $0x1c8] sm:$0xf]  ;;  %v10830_v25 = vld [vmem:[#allocation6 + $0x5d4] sm:$0xf0] }
 0x39d   :  { %v9549_v58 = vld [vmem:[#allocation6 + $0x5e8] sm:$0xf]  ;;  %v10862_v22 = vld [vmem:[#allocation6 + $0x6d4] sm:$0xf0] }
 0x39e   :  { %5835 = vmatpush.bf16.msrb.mxu2 %v9610_v5  ;;  %5810 = vmatpush.bf16.msrb.mxu0 %v9338_v42  ;;  %v10702_v5 = vld [vmem:[#allocation6 + $0x1d4] sm:$0xf0]  ;;  %v9005_v42 = vld [vmem:[#allocation6 + $0x1a8] sm:$0xf] }
 0x39f   :  { %v9022_v9 = vor.u32 %v10702_v5, %v9021_v40  ;;  %v9006_v46 = vor.u32 %v10698_v7, %v9005_v42  ;;  %v8941_v40 = vld [vmem:[#allocation6 + $0x128] sm:$0xf]  ;;  %v10682_v5 = vld [vmem:[#allocation6 + $0x134] sm:$0xf0] }
 0x3a0   :  { %5823 = vmatpush.bf16.msrb.mxu1 %v9466_v56  ;;  %v10730_v56 = vld [vmem:[#allocation6 + $0x2b4] sm:$0xf0]  ;;  %v8942_v42 = vor.u32 %v10682_v5, %v8941_v40  ;;  %v9373_v5 = vld [vmem:[#allocation6 + $0x488] sm:$0xf] }
 0x3a1   :  { %v9134_v49 = vor.u32 %v10730_v56, %v9133_v43  ;;  %v10646_v7 = vld [vmem:[#allocation6 + $0x14] sm:$0xf0]  ;;  %v8925_v43 = vld [vmem:[#allocation6 + $0x108] sm:$0xf]  ;;  %v9070_v56 = vor.u32 %v10714_v36, %v9069_v34 }
 0x3a2   :  { %5836 = vmatpush.bf16.msrb.mxu2 %v9594_v13  ;;  %5811 = vmatpush.bf16.msrb.mxu0 %v9322_v1  ;;  %v8878_v13 = vor.u32 %v10666_v39, %v8877_v29  ;;  %v8862_v1 = vor.u32 %v10662_v57, %v8861_v54  ;;  %v8797_v29 = vld [vmem:[#allocation6 + $0x8] sm:$0xf] }
 0x3a3   :  { %v9421_v57 = vld [vmem:[#allocation6 + $0x4e8] sm:$0xf] }
 0x3a4   :  { %5824 = vmatpush.bf16.msrb.mxu1 %v9450_v10  ;;  %v10658_v10 = vld [vmem:[#allocation6 + $0x74] sm:$0xf0] }
 0x3a5   :  { %v8846_v61 = vor.u32 %v10658_v10, %v8845_v33  ;;  %v8926_v33 = vor.u32 %v10678_v55, %v8925_v43  ;;  %v9735_v43 = vld [vmem:[#allocation6 + $0x770] sm:$0xf0] }
 0x3a6   :  { %5837 = vmatpush.bf16.msrb.mxu2 %v9578_v44  ;;  %5812 = vmatpush.bf16.msrb.mxu0 %v9306_v26  ;;  %v4044_v0 = vpop.f32.mrf.mxu0  ;;  %v8973_v44 = vld [vmem:[#allocation6 + $0x168] sm:$0xf]  ;;  %v10718_v26 = vld [vmem:[#allocation6 + $0x254] sm:$0xf0] }
 0x3a7   :  { %v4045_v17 = vadd.f32 %v4044_v0, %v4032_v62  ;;  %v8974_v6 = vor.u32 %v10690_v16, %v8973_v44  ;;  %v9677_v62 = vld [vmem:[#allocation6 + $0x6e8] sm:$0xf]  ;;  %v10866_v0 = vld [vmem:[#allocation6 + $0x6f4] sm:$0xf0]  ;;  %v9422_v44 = vor.u32 %v10802_v38, %v9421_v57  ;;  %v9550_v16 = vor.u32 %v10834_v60, %v9549_v58 }
 0x3a8   :  { %5825 = vmatpush.bf16.msrb.mxu1 %v9434_v28  ;;  %v4057_v48 = vpop.f32.mrf.mxu1  ;;  %v9357_v57 = vld [vmem:[#allocation6 + $0x468] sm:$0xf]  ;;  %v10786_v38 = vld [vmem:[#allocation6 + $0x474] sm:$0xf0] }
 0x3a9   :  { %5813 = vmatmul.bf16.vlgmr.msrb.gmra.mxu0 %v11487_v51  ;;  %v4058_v24 = vadd.f32 %v4057_v48, %v4045_v17  ;;  %v10891_v48 = vld [vmem:[#allocation6 + $0x7c4] sm:$0xf]  ;;  %v9678_v17 = vor.u32 %v10866_v0, %v9677_v62  ;;  %v9485_v58 = vld [vmem:[#allocation6 + $0x568] sm:$0xf]  ;;  %v10818_v62 = vld [vmem:[#allocation6 + $0x574] sm:$0xf0] }
 0x3aa   :  { %5838 = vmatpush.bf16.msrb.mxu2 %v9562_v30  ;;  %5857 = vmatpush.bf16.msra.mxu0 %v8910_v37  ;;  %v8958_v37 = vor.u32 %v10686_v23, %v8957_v11  ;;  %v10887_v11 = vld [vmem:[#allocation6 + $0x7a4] sm:$0xf]  ;;  %v9767_v23 = vld [vmem:[#allocation6 + $0x7b0] sm:$0xf0]  ;;  %v9613_v0 = vld [vmem:[#allocation6 + $0x668] sm:$0xf] }
 0x3ab   :  { %5826 = vmatmul.bf16.vlgmr.msrb.gmra.mxu1 %v11489_v53 }
 0x3ac   :  { %5870 = vmatpush.bf16.msra.mxu1 %v9038_v32  ;;  %v8813_v32 = vld [vmem:[#allocation6 + $0x28] sm:$0xf] }
 0x3ad   :  { %5839 = vmatmul.bf16.vlgmr.msrb.gmra.mxu2 %v11495_v20  ;;  %v8814_v39 = vor.u32 %v10650_v47, %v8813_v32  ;;  %v10858_v32 = vld [vmem:[#allocation6 + $0x6b4] sm:$0xf0]  ;;  %v9751_v47 = vld [vmem:[#allocation6 + $0x790] sm:$0xf0] }
 0x3ae   :  { %5883 = vmatpush.bf16.msra.mxu2 %v9166_v8  ;;  %5858 = vmatpush.bf16.msra.mxu0 %v8894_v19  ;;  %v4046_v30 = vpop.f32.mrf.mxu0  ;;  %v9086_v8 = vor.u32 %v10718_v26, %v9085_v2  ;;  %v10895_v19 = vld [vmem:[#allocation6 + $0x7e4] sm:$0xf]  ;;  %v9389_v2 = vld [vmem:[#allocation6 + $0x4a8] sm:$0xf] }
 0x3af   :  { %v10826_v30 = vld [vmem:[#allocation6 + $0x5b4] sm:$0xf0] }
 0x3b0   :  { %5871 = vmatpush.bf16.msra.mxu1 %v9022_v9  ;;  %v4070_v27 = vpop.f32.mrf.mxu2  ;;  %v4059_v4 = vpop.f32.mrf.mxu1  ;;  %v9799_v9 = vld [vmem:[#allocation6 + $0x7f0] sm:$0xf0] }
 0x3b1   :  { %v4071_v63 = vadd.f32 %v4070_v27, %v4058_v24  ;;  %v9406_v24 = vor.u32 %v10798_v50, %v9405_v18  ;;  %v11521_v4 = vld [vmem:[#allocation7] sm:$0xf]  ;;  %v9469_v18 = vld [vmem:[#allocation6 + $0x548] sm:$0xf] }
 0x3b2   :  { %5884 = vmatpush.bf16.msra.mxu2 %v9150_v15  ;;  %5859 = vmatpush.bf16.msra.mxu0 %v8878_v13  ;;  %v4083_v28 = vpop.f32.mrf.mxu3  ;;  %v9053_v13 = vld [vmem:[#allocation6 + $0x208] sm:$0xf]  ;;  %v4361_v36 = vperm.slane %v11521_v4, 0 }
 0x3b3   :  { %v4084_v35 = vadd.f32 %v4083_v28, %v4071_v63  ;;  %v10794_v63 = vld [vmem:[#allocation6 + $0x4b4] sm:$0xf0]  ;;  %v9517_v28 = vld [vmem:[#allocation6 + $0x5a8] sm:$0xf] }
 0x3b4   :  { %5872 = vmatpush.bf16.msra.mxu1 %v9006_v46  ;;  %v10710_v46 = vld [vmem:[#allocation6 + $0x214] sm:$0xf0]  ;;  %v9390_v40 = vor.u32 %v10794_v63, %v9389_v2 }
 0x3b5   :  { %v4094_v15 = vmax.f32 %v4084_v35, 0.0  ;;  %v9054_v10 = vor.u32 %v10710_v46, %v9053_v13  ;;  %v9518_v35 = vor.u32 %v10826_v30, %v9517_v28  ;;  %v9325_v30 = vld [vmem:[#allocation6 + $0x428] sm:$0xf] }
 0x3b6   :  { %5885 = vmatpush.bf16.msra.mxu2 %v9134_v49  ;;  %5860 = vmatpush.bf16.msra.mxu0 %v8862_v1  ;;  %v9802_v49 = vor.u32 %v10895_v19, %v9799_v9  ;;  %v10790_v19 = vld [vmem:[#allocation6 + $0x494] sm:$0xf0]  ;;  %v9501_v9 = vld [vmem:[#allocation6 + $0x588] sm:$0xf] }
 0x3b7   :  { %v11517_v54 = vpack.c.bf16 %v4094_v15, %v4094_v15  ;;  %v10822_v15 = vld [vmem:[#allocation6 + $0x594] sm:$0xf0] }
 0x3b8   :  { %5873 = vmatpush.bf16.msra.mxu1 %v8990_v3  ;;  %v4072_v41 = vpop.f32.mrf.mxu2  ;;  %v8798_v3 = vor.u32 %v10646_v7, %v8797_v29  ;;  %v10879_v7 = vld [vmem:[#allocation6 + $0x764] sm:$0xf]  ;;  %v9502_v46 = vor.u32 %v10822_v15, %v9501_v9  ;;  %v10770_v9 = vld [vmem:[#allocation6 + $0x3f4] sm:$0xf0] }
 0x3b9   :  { %5748 = vmatmul.bf16.vlgmr.msrb.gmra.mxu3 %v11517_v54  ;;  %v9738_v60 = vor.u32 %v10879_v7, %v9735_v43  ;;  %v9437_v7 = vld [vmem:[#allocation6 + $0x508] sm:$0xf] }
 0x3ba   :  { %5886 = vmatpush.bf16.msra.mxu2 %v9118_v45  ;;  %5861 = vmatpush.bf16.msra.mxu0 %v8846_v61  ;;  %v4085_v1 = vpop.f32.mrf.mxu3  ;;  %v9783_v45 = vld [vmem:[#allocation6 + $0x7d0] sm:$0xf0]  ;;  %v9533_v61 = vld [vmem:[#allocation6 + $0x5c8] sm:$0xf] }
 0x3bb   :  { %5844 = vmatpush.bf16.msrb.mxu3 %v9802_v49  ;;  %v9534_v26 = vor.u32 %v10830_v25, %v9533_v61  ;;  %v10850_v1 = vld [vmem:[#allocation6 + $0x674] sm:$0xf0] }
 0x3bc   :  { %5874 = vmatpush.bf16.msra.mxu1 %v8974_v6  ;;  %v9786_v6 = vor.u32 %v10891_v48, %v9783_v45  ;;  %v9358_v45 = vor.u32 %v10786_v38, %v9357_v57  ;;  %v10814_v61 = vld [vmem:[#allocation6 + $0x554] sm:$0xf0]  ;;  %v8911_v57 = vld [vmem:[#allocation6 + $0xf8] sm:$0xf0]  ;;  %v10704_v38 = vld [vmem:[#allocation6 + $0x1ec] sm:$0xf] }
 0x3bd   :  { %v10846_v25 = vld [vmem:[#allocation6 + $0x654] sm:$0xf0]  ;;  %v9470_v63 = vor.u32 %v10814_v61, %v9469_v18  ;;  %v8895_v18 = vld [vmem:[#allocation6 + $0xd8] sm:$0xf0] }
 0x3be   :  { %5887 = vmatpush.bf16.msra.mxu2 %v9102_v21  ;;  %5862 = vmatpush.bf16.msra.mxu0 %v8830_v31  ;;  %v9661_v21 = vld [vmem:[#allocation6 + $0x6c8] sm:$0xf]  ;;  %v9770_v31 = vor.u32 %v10887_v11, %v9767_v23 }
 0x3bf   :  { %v9662_v27 = vor.u32 %v10862_v22, %v9661_v21  ;;  %5845 = vmatpush.bf16.msrb.mxu3 %v9786_v6  ;;  %v9597_v6 = vld [vmem:[#allocation6 + $0x648] sm:$0xf]  ;;  %v10871_v21 = vld [vmem:[#allocation6 + $0x724] sm:$0xf]  ;;  %v9703_v22 = vld [vmem:[#allocation6 + $0x730] sm:$0xf0] }
 0x3c0   :  { %5875 = vmatpush.bf16.msra.mxu1 %v8958_v37  ;;  %v9645_v37 = vld [vmem:[#allocation6 + $0x6a8] sm:$0xf]  ;;  %v9598_v28 = vor.u32 %v10846_v25, %v9597_v6  ;;  %v9023_v6 = vld [vmem:[#allocation6 + $0x1d8] sm:$0xf0]  ;;  %v10732_v25 = vld [vmem:[#allocation6 + $0x2cc] sm:$0xf] }
 0x3c1   :  { %v9646_v34 = vor.u32 %v10858_v32, %v9645_v37  ;;  %v9453_v37 = vld [vmem:[#allocation6 + $0x528] sm:$0xf]  ;;  %v9706_v32 = vor.u32 %v10871_v21, %v9703_v22  ;;  %v9151_v21 = vld [vmem:[#allocation6 + $0x2d8] sm:$0xf0] }
 0x3c2   :  { %5888 = vmatpush.bf16.msra.mxu2 %v9086_v8  ;;  %5863 = vmatpush.bf16.msra.mxu0 %v8814_v39  ;;  %v10883_v8 = vld [vmem:[#allocation6 + $0x784] sm:$0xf]  ;;  %v9629_v39 = vld [vmem:[#allocation6 + $0x688] sm:$0xf] }
 0x3c3   :  { %5846 = vmatpush.bf16.msrb.mxu3 %v9770_v31  ;;  %v9754_v29 = vor.u32 %v10883_v8, %v9751_v47  ;;  %v10778_v31 = vld [vmem:[#allocation6 + $0x434] sm:$0xf0]  ;;  %v9581_v47 = vld [vmem:[#allocation6 + $0x628] sm:$0xf] }
 0x3c4   :  { %5876 = vmatpush.bf16.msra.mxu1 %v8942_v42  ;;  %v10854_v42 = vld [vmem:[#allocation6 + $0x694] sm:$0xf0]  ;;  %v9261_v22 = vld [vmem:[#allocation6 + $0x3a8] sm:$0xf] }
 0x3c5   :  { %v9630_v49 = vor.u32 %v10854_v42, %v9629_v39  ;;  %v10810_v8 = vld [vmem:[#allocation6 + $0x534] sm:$0xf0]  ;;  %v9309_v39 = vld [vmem:[#allocation6 + $0x408] sm:$0xf] }
 0x3c6   :  { %5889 = vmatpush.bf16.msra.mxu2 %v9070_v56  ;;  %5864 = vmatpush.bf16.msra.mxu0 %v8798_v3  ;;  %v9374_v56 = vor.u32 %v10790_v19, %v9373_v5  ;;  %v5658_v55 = vpop.f32.mrf.mxu0  ;;  %v10875_v3 = vld [vmem:[#allocation6 + $0x744] sm:$0xf]  ;;  %v9293_v19 = vld [vmem:[#allocation6 + $0x3e8] sm:$0xf]  ;;  %v10774_v42 = vld [vmem:[#allocation6 + $0x414] sm:$0xf0] }
 0x3c7   :  { %5847 = vmatpush.bf16.msrb.mxu3 %v9754_v29  ;;  %v5659_v41 = vadd.f32 %v5658_v55, %v4361_v36  ;;  %v9326_v36 = vor.u32 %v10778_v31, %v9325_v30  ;;  %v9454_v29 = vor.u32 %v10810_v8, %v9453_v37  ;;  %v9565_v55 = vld [vmem:[#allocation6 + $0x608] sm:$0xf]  ;;  %v9007_v30 = vld [vmem:[#allocation6 + $0x1b8] sm:$0xf0]  ;;  %v10728_v31 = vld [vmem:[#allocation6 + $0x2ac] sm:$0xf] }
 0x3c8   :  { %5877 = vmatpush.bf16.msra.mxu1 %v8926_v33  ;;  %v5671_v13 = vpop.f32.mrf.mxu1  ;;  %v9719_v33 = vld [vmem:[#allocation6 + $0x750] sm:$0xf0]  ;;  %v9135_v37 = vld [vmem:[#allocation6 + $0x2b8] sm:$0xf0]  ;;  %v10758_v8 = vld [vmem:[#allocation6 + $0x394] sm:$0xf0] }
 0x3c9   :  { %5865 = vmatmul.bf16.vlgmr.msra.gmra.mxu0 %v11455_v12  ;;  %v5672_v48 = vadd.f32 %v5671_v13, %v5659_v41  ;;  %5800 = vmatmul.bf16.vlgmr.msra.gmra.mxu3 %v11461_v59  ;;  %v9722_v50 = vor.u32 %v10875_v3, %v9719_v33  ;;  %v10838_v13 = vld [vmem:[#allocation6 + $0x614] sm:$0xf0] }
 0x3ca   :  { %5890 = vmatpush.bf16.msra.mxu2 %v9054_v10  ;;  %5909 = vmatpush.bf16.msrb.mxu0 %v9422_v44  ;;  %v9486_v10 = vor.u32 %v10818_v62, %v9485_v58  ;;  %v9614_v44 = vor.u32 %v10850_v1, %v9613_v0  ;;  %v9039_v62 = vld [vmem:[#allocation6 + $0x1f8] sm:$0xf0]  ;;  %v10736_v0 = vld [vmem:[#allocation6 + $0x2ec] sm:$0xf]  ;;  %v9566_v33 = vor.u32 %v10838_v13, %v9565_v55 }
 0x3cb   :  { %5878 = vmatmul.bf16.vlgmr.msra.gmra.mxu1 %v11457_v14  ;;  %5848 = vmatpush.bf16.msrb.mxu3 %v9738_v60  ;;  %v9310_v60 = vor.u32 %v10774_v42, %v9309_v39  ;;  %v9167_v1 = vld [vmem:[#allocation6 + $0x2f8] sm:$0xf0]  ;;  %v9229_v42 = vld [vmem:[#allocation6 + $0x368] sm:$0xf] }
 0x3cc   :  { %5922 = vmatpush.bf16.msrb.mxu1 %v9550_v16  ;;  %v9341_v16 = vld [vmem:[#allocation6 + $0x448] sm:$0xf]  ;;  %v9119_v39 = vld [vmem:[#allocation6 + $0x298] sm:$0xf0] }
 0x3cd   :  { %5891 = vmatmul.bf16.vlgmr.msra.gmra.mxu2 %v11459_v52 }
 0x3ce   :  { %5935 = vmatpush.bf16.msrb.mxu2 %v9678_v17  ;;  %5910 = vmatpush.bf16.msrb.mxu0 %v9406_v24  ;;  %v10782_v17 = vld [vmem:[#allocation6 + $0x454] sm:$0xf0] }
 0x3cf   :  { %v9342_v24 = vor.u32 %v10782_v17, %v9341_v16  ;;  %5849 = vmatpush.bf16.msrb.mxu3 %v9722_v50  ;;  %v9170_v16 = vor.u32 %v10736_v0, %v9167_v1  ;;  %v10668_v17 = vld [vmem:[#allocation6 + $0xcc] sm:$0xf]  ;;  %v9103_v0 = vld [vmem:[#allocation6 + $0x278] sm:$0xf0] }
 0x3d0   :  { %5923 = vmatpush.bf16.msrb.mxu1 %v9534_v26  ;;  %v5684_v11 = vpop.f32.mrf.mxu2  ;;  %v5660_v26 = vpop.f32.mrf.mxu0  ;;  %v10700_v50 = vld [vmem:[#allocation6 + $0x1cc] sm:$0xf] }
 0x3d1   :  { %v5685_v2 = vadd.f32 %v5684_v11, %v5672_v48  ;;  %v9277_v48 = vld [vmem:[#allocation6 + $0x3c8] sm:$0xf]  ;;  %v10762_v11 = vld [vmem:[#allocation6 + $0x3b4] sm:$0xf0]  ;;  %v10664_v26 = vld [vmem:[#allocation6 + $0xac] sm:$0xf] }
 0x3d2   :  { %5936 = vmatpush.bf16.msrb.mxu2 %v9662_v27  ;;  %5911 = vmatpush.bf16.msrb.mxu0 %v9390_v40  ;;  %v5697_v23 = vpop.f32.mrf.mxu3  ;;  %v5673_v27 = vpop.f32.mrf.mxu1  ;;  %v10842_v40 = vld [vmem:[#allocation6 + $0x634] sm:$0xf0] }
 0x3d3   :  { %v11527_v5 = vadd.f32 %v5697_v23, %v5685_v2  ;;  %v9582_v15 = vor.u32 %v10842_v40, %v9581_v47  ;;  %5850 = vmatpush.bf16.msrb.mxu3 %v9706_v32  ;;  %v8898_v23 = vor.u32 %v10668_v17, %v8895_v18  ;;  %v9154_v2 = vor.u32 %v10732_v25, %v9151_v21  ;;  %v8879_v27 = vld [vmem:[#allocation6 + $0xb8] sm:$0xf0]  ;;  %v9245_v32 = vld [vmem:[#allocation6 + $0x388] sm:$0xf]  ;;  %v10746_v25 = vld [vmem:[#allocation6 + $0x334] sm:$0xf0] }
 0x3d4   :  { %5924 = vmatpush.bf16.msrb.mxu1 %v9518_v35  ;;  %v10867_v35 = vld [vmem:[#allocation6 + $0x704] sm:$0xf]  ;;  %v8882_v47 = vor.u32 %v10664_v26, %v8879_v27  ;;  %v8959_v18 = vld [vmem:[#allocation6 + $0x158] sm:$0xf0]  ;;  %v10680_v27 = vld [vmem:[#allocation6 + $0x12c] sm:$0xf] }
 0x3d5   :  { %v8815_v26 = vld [vmem:[#allocation6 + $0x38] sm:$0xf0] }
 0x3d6   :  { %5937 = vmatpush.bf16.msrb.mxu2 %v9646_v34  ;;  %5912 = vmatpush.bf16.msrb.mxu0 %v9374_v56  ;;  %v9687_v34 = vld [vmem:[#allocation6 + $0x710] sm:$0xf0]  ;;  %v10806_v56 = vld [vmem:[#allocation6 + $0x514] sm:$0xf0] }
 0x3d7   :  { %v9690_v43 = vor.u32 %v10867_v35, %v9687_v34  ;;  %v9438_v3 = vor.u32 %v10806_v56, %v9437_v7  ;;  %v9138_v35 = vor.u32 %v10728_v31, %v9135_v37  ;;  %v10660_v34 = vld [vmem:[#allocation6 + $0x8c] sm:$0xf]  ;;  %v10754_v7 = vld [vmem:[#allocation6 + $0x374] sm:$0xf0]  ;;  %v9071_v31 = vld [vmem:[#allocation6 + $0x238] sm:$0xf0] }
 0x3d8   :  { %5925 = vmatpush.bf16.msrb.mxu1 %v9502_v46  ;;  %v9294_v46 = vor.u32 %v10770_v9, %v9293_v19  ;;  %v5686_v58 = vpop.f32.mrf.mxu2  ;;  %v10692_v19 = vld [vmem:[#allocation6 + $0x18c] sm:$0xf]  ;;  %v9246_v9 = vor.u32 %v10758_v8, %v9245_v32  ;;  %v9181_v37 = vld [vmem:[#allocation6 + $0x308] sm:$0xf]  ;;  %v10742_v32 = vld [vmem:[#allocation6 + $0x314] sm:$0xf0] }
 0x3d9   :  { %5851 = vmatpush.bf16.msrb.mxu3 %v9690_v43  ;;  %v10688_v58 = vld [vmem:[#allocation6 + $0x16c] sm:$0xf] }
 0x3da   :  { %5938 = vmatpush.bf16.msrb.mxu2 %v9630_v49  ;;  %5913 = vmatpush.bf16.msrb.mxu0 %v9358_v45  ;;  %v10672_v49 = vld [vmem:[#allocation6 + $0xec] sm:$0xf]  ;;  %v5699_v41 = vpop.f32.mrf.mxu3  ;;  %v10766_v45 = vld [vmem:[#allocation6 + $0x3d4] sm:$0xf0] }
 0x3db   :  { %v9278_v61 = vor.u32 %v10766_v45, %v9277_v48  ;;  %v9230_v41 = vor.u32 %v10754_v7, %v9229_v42  ;;  %v9055_v42 = vld [vmem:[#allocation6 + $0x218] sm:$0xf0] }
 0x3dc   :  { %5926 = vmatpush.bf16.msrb.mxu1 %v9486_v10  ;;  %v8914_v10 = vor.u32 %v10672_v49, %v8911_v57  ;;  %5852 = vmatmul.bf16.vlgmr.msrb.gmra.mxu3 %v11517_v54  ;;  %v10656_v57 = vld [vmem:[#allocation6 + $0x6c] sm:$0xf] }
 0x3dd   :  { %5896 = vmatpush.bf16.msra.mxu3 %v9294_v46 }
 0x3de   :  { %5939 = vmatpush.bf16.msrb.mxu2 %v9614_v44  ;;  %5914 = vmatpush.bf16.msrb.mxu0 %v9342_v24  ;;  %v9042_v44 = vor.u32 %v10704_v38, %v9039_v62  ;;  %v9026_v24 = vor.u32 %v10700_v50, %v9023_v6  ;;  %v8847_v38 = vld [vmem:[#allocation6 + $0x78] sm:$0xf0]  ;;  %v10720_v62 = vld [vmem:[#allocation6 + $0x26c] sm:$0xf]  ;;  %v9197_v6 = vld [vmem:[#allocation6 + $0x328] sm:$0xf] }
 0x3df   :  { %v8850_v48 = vor.u32 %v10656_v57, %v8847_v38  ;;  %v9106_v45 = vor.u32 %v10720_v62, %v9103_v0  ;;  %v10716_v50 = vld [vmem:[#allocation6 + $0x24c] sm:$0xf]  ;;  %v9679_v57 = vld [vmem:[#allocation6 + $0x6f8] sm:$0xf0] }
 0x3e0   :  { %5927 = vmatpush.bf16.msrb.mxu1 %v9470_v63  ;;  %v10696_v63 = vld [vmem:[#allocation6 + $0x1ac] sm:$0xf] }
 0x3e1   :  { %5897 = vmatpush.bf16.msra.mxu3 %v9278_v61  ;;  %v9010_v40 = vor.u32 %v10696_v63, %v9007_v30  ;;  %v9087_v61 = vld [vmem:[#allocation6 + $0x258] sm:$0xf0]  ;;  %v9198_v63 = vor.u32 %v10746_v25, %v9197_v6  ;;  %v10712_v30 = vld [vmem:[#allocation6 + $0x22c] sm:$0xf] }
 0x3e2   :  { %5940 = vmatpush.bf16.msrb.mxu2 %v9598_v28  ;;  %5915 = vmatpush.bf16.msrb.mxu0 %v9326_v36  ;;  %v9262_v28 = vor.u32 %v10762_v11, %v9261_v22  ;;  %v8863_v36 = vld [vmem:[#allocation6 + $0x98] sm:$0xf0]  ;;  %v10792_v25 = vld [vmem:[#allocation6 + $0x4ac] sm:$0xf] }
 0x3e3   :  { %v8866_v56 = vor.u32 %v10660_v34, %v8863_v36  ;;  %v9074_v34 = vor.u32 %v10712_v30, %v9071_v31  ;;  %v10644_v36 = vld [vmem:[#allocation6 + $0xc] sm:$0xf] }
 0x3e4   :  { %5928 = vmatpush.bf16.msrb.mxu1 %v9454_v29  ;;  %v8991_v29 = vld [vmem:[#allocation6 + $0x198] sm:$0xf0] }
 0x3e5   :  { %5898 = vmatpush.bf16.msra.mxu3 %v9262_v28  ;;  %v8994_v46 = vor.u32 %v10692_v19, %v8991_v29  ;;  %v8943_v28 = vld [vmem:[#allocation6 + $0x138] sm:$0xf0]  ;;  %v9182_v29 = vor.u32 %v10742_v32, %v9181_v37 }
 0x3e6   :  { %5941 = vmatpush.bf16.msrb.mxu2 %v9582_v15  ;;  %5916 = vmatpush.bf16.msrb.mxu0 %v9310_v60  ;;  %v10724_v15 = vld [vmem:[#allocation6 + $0x28c] sm:$0xf]  ;;  %v5710_v43 = vpop.f32.mrf.mxu0  ;;  %v8975_v60 = vld [vmem:[#allocation6 + $0x178] sm:$0xf0] }
 0x3e7   :  { %v5711_v55 = vadd.f32 %v5710_v43, %v11527_v5  ;;  %v9122_v49 = vor.u32 %v10724_v15, %v9119_v39  ;;  %v8978_v5 = vor.u32 %v10688_v58, %v8975_v60  ;;  %v8799_v19 = vld [vmem:[#allocation6 + $0x18] sm:$0xf0]  ;;  %v10708_v39 = vld [vmem:[#allocation6 + $0x20c] sm:$0xf]  ;;  %v9789_v58 = vld [vmem:[#allocation6 + $0x7c8] sm:$0xf] }
 0x3e8   :  { %5929 = vmatpush.bf16.msrb.mxu1 %v9438_v3  ;;  %v5723_v13 = vpop.f32.mrf.mxu1  ;;  %v9213_v3 = vld [vmem:[#allocation6 + $0x348] sm:$0xf]  ;;  %v8927_v15 = vld [vmem:[#allocation6 + $0x118] sm:$0xf0]  ;;  %v10800_v43 = vld [vmem:[#allocation6 + $0x4ec] sm:$0xf]  ;;  %v9058_v60 = vor.u32 %v10708_v39, %v9055_v42 }
 0x3e9   :  { %5917 = vmatmul.bf16.vlgmr.msrb.gmra.mxu0 %v11487_v51  ;;  %5899 = vmatpush.bf16.msra.mxu3 %v9246_v9  ;;  %v11534_v1 = vadd.f32 %v5723_v13, %v5711_v55  ;;  %v10676_v9 = vld [vmem:[#allocation6 + $0x10c] sm:$0xf]  ;;  %v8802_v13 = vor.u32 %v10644_v36, %v8799_v19  ;;  %v9375_v32 = vld [vmem:[#allocation6 + $0x498] sm:$0xf0] }
 0x3ea   :  { %5942 = vmatpush.bf16.msrb.mxu2 %v9566_v33  ;;  %5961 = vmatpush.bf16.msra.mxu0 %v8914_v10  ;;  %v10750_v33 = vld [vmem:[#allocation6 + $0x354] sm:$0xf0]  ;;  %v10652_v10 = vld [vmem:[#allocation6 + $0x4c] sm:$0xf]  ;;  %v8930_v38 = vor.u32 %v10676_v9, %v8927_v15  ;;  %v9359_v42 = vld [vmem:[#allocation6 + $0x478] sm:$0xf0] }
 0x3eb   :  { %5930 = vmatmul.bf16.vlgmr.msrb.gmra.mxu1 %v11489_v53  ;;  %v9214_v17 = vor.u32 %v10750_v33, %v9213_v3  ;;  %v10832_v55 = vld [vmem:[#allocation6 + $0x5ec] sm:$0xf] }
 0x3ec   :  { %5974 = vmatpush.bf16.msra.mxu1 %v9042_v44  ;;  %v8831_v44 = vld [vmem:[#allocation6 + $0x58] sm:$0xf0]  ;;  %v10796_v33 = vld [vmem:[#allocation6 + $0x4cc] sm:$0xf] }
 0x3ed   :  { %5943 = vmatmul.bf16.vlgmr.msrb.gmra.mxu2 %v11495_v20  ;;  %5900 = vmatpush.bf16.msra.mxu3 %v9230_v41  ;;  %v8834_v22 = vor.u32 %v10652_v10, %v8831_v44  ;;  %v10894_v41 = vld [vmem:[#allocation6 + $0x7d4] sm:$0xf0]  ;;  %v9535_v10 = vld [vmem:[#allocation6 + $0x5d8] sm:$0xf0]  ;;  %v10860_v44 = vld [vmem:[#allocation6 + $0x6cc] sm:$0xf] }
 0x3ee   :  { %5987 = vmatpush.bf16.msra.mxu2 %v9170_v16  ;;  %5962 = vmatpush.bf16.msra.mxu0 %v8898_v23  ;;  %v10684_v16 = vld [vmem:[#allocation6 + $0x14c] sm:$0xf]  ;;  %v5712_v21 = vpop.f32.mrf.mxu0 }
 0x3ef   :  { %v8962_v23 = vor.u32 %v10684_v16, %v8959_v18  ;;  %v9663_v16 = vld [vmem:[#allocation6 + $0x6d8] sm:$0xf0]  ;;  %v10890_v18 = vld [vmem:[#allocation6 + $0x7b4] sm:$0xf0]  ;;  %v10784_v39 = vld [vmem:[#allocation6 + $0x46c] sm:$0xf] }
 0x3f0   :  { %5975 = vmatpush.bf16.msra.mxu1 %v9026_v24  ;;  %v5725_v11 = vpop.f32.mrf.mxu1  ;;  %v9090_v24 = vor.u32 %v10716_v50, %v9087_v61  ;;  %v9666_v6 = vor.u32 %v10860_v44, %v9663_v16  ;;  %v9391_v21 = vld [vmem:[#allocation6 + $0x4b8] sm:$0xf0]  ;;  %v10874_v44 = vld [vmem:[#allocation6 + $0x734] sm:$0xf0] }
 0x3f1   :  { %5901 = vmatpush.bf16.msra.mxu3 %v9214_v17  ;;  %v9773_v17 = vld [vmem:[#allocation6 + $0x7a8] sm:$0xf] }
 0x3f2   :  { %5988 = vmatpush.bf16.msra.mxu2 %v9154_v2  ;;  %5963 = vmatpush.bf16.msra.mxu0 %v8882_v47  ;;  %v10648_v2 = vld [vmem:[#allocation6 + $0x2c] sm:$0xf]  ;;  %v9805_v47 = vld [vmem:[#allocation6 + $0x7e8] sm:$0xf]  ;;  %v9774_v11 = vor.u32 %v10890_v18, %v9773_v17 }
 0x3f3   :  { %v8818_v8 = vor.u32 %v10648_v2, %v8815_v26  ;;  %v9647_v2 = vld [vmem:[#allocation6 + $0x6b8] sm:$0xf0]  ;;  %v9757_v26 = vld [vmem:[#allocation6 + $0x788] sm:$0xf] }
 0x3f4   :  { %5976 = vmatpush.bf16.msra.mxu1 %v9010_v40  ;;  %v10898_v40 = vld [vmem:[#allocation6 + $0x7f4] sm:$0xf0] }
 0x3f5   :  { %5902 = vmatpush.bf16.msra.mxu3 %v9198_v63  ;;  %v9806_v7 = vor.u32 %v10898_v40, %v9805_v47  ;;  %v9394_v63 = vor.u32 %v10792_v25, %v9391_v21  ;;  %v10852_v40 = vld [vmem:[#allocation6 + $0x68c] sm:$0xf]  ;;  %v9327_v25 = vld [vmem:[#allocation6 + $0x438] sm:$0xf0] }
 0x3f6   :  { %5989 = vmatpush.bf16.msra.mxu2 %v9138_v35  ;;  %5964 = vmatpush.bf16.msra.mxu0 %v8866_v56  ;;  %v8946_v35 = vor.u32 %v10680_v27, %v8943_v28  ;;  %v9423_v56 = vld [vmem:[#allocation6 + $0x4f8] sm:$0xf0]  ;;  %v10886_v27 = vld [vmem:[#allocation6 + $0x794] sm:$0xf0]  ;;  %v4362_v28 = vperm.slane %v11521_v4, 1 }
 0x3f7   :  { %v9426_v62 = vor.u32 %v10800_v43, %v9423_v56  ;;  %v11541_v37 = vpop.f32.mrf.mxu2  ;;  %v9758_v47 = vor.u32 %v10886_v27, %v9757_v26  ;;  %v9487_v56 = vld [vmem:[#allocation6 + $0x578] sm:$0xf0]  ;;  %v10808_v21 = vld [vmem:[#allocation6 + $0x52c] sm:$0xf]  ;;  %v10870_v26 = vld [vmem:[#allocation6 + $0x714] sm:$0xf0] }
 0x3f8   :  { %5977 = vmatpush.bf16.msra.mxu1 %v8994_v46  ;;  %v9551_v46 = vld [vmem:[#allocation6 + $0x5f8] sm:$0xf0] }
 0x3f9   :  { %5903 = vmatpush.bf16.msra.mxu3 %v9182_v29  ;;  %v9554_v0 = vor.u32 %v10832_v55, %v9551_v46  ;;  %v10848_v55 = vld [vmem:[#allocation6 + $0x66c] sm:$0xf] }
 0x3fa   :  { %5990 = vmatpush.bf16.msra.mxu2 %v9122_v49  ;;  %5965 = vmatpush.bf16.msra.mxu0 %v8850_v48  ;;  %v10864_v49 = vld [vmem:[#allocation6 + $0x6ec] sm:$0xf]  ;;  %v9407_v48 = vld [vmem:[#allocation6 + $0x4d8] sm:$0xf0] }
 0x3fb   :  { %v9682_v3 = vor.u32 %v10864_v49, %v9679_v57  ;;  %v9410_v50 = vor.u32 %v10796_v33, %v9407_v48  ;;  %v9725_v49 = vld [vmem:[#allocation6 + $0x748] sm:$0xf]  ;;  %v10878_v57 = vld [vmem:[#allocation6 + $0x754] sm:$0xf0]  ;;  %v9471_v48 = vld [vmem:[#allocation6 + $0x558] sm:$0xf0] }
 0x3fc   :  { %5978 = vmatpush.bf16.msra.mxu1 %v8978_v5  ;;  %v10828_v5 = vld [vmem:[#allocation6 + $0x5cc] sm:$0xf]  ;;  %5904 = vmatmul.bf16.vlgmr.msra.gmra.mxu3 %v11461_v59  ;;  %v9726_v33 = vor.u32 %v10878_v57, %v9725_v49 }
 0x3fd   :  { %5948 = vmatpush.bf16.msrb.mxu3 %v9806_v7  ;;  %v9538_v61 = vor.u32 %v10828_v5, %v9535_v10  ;;  %v10816_v7 = vld [vmem:[#allocation6 + $0x56c] sm:$0xf]  ;;  %v9709_v10 = vld [vmem:[#allocation6 + $0x728] sm:$0xf] }
 0x3fe   :  { %5991 = vmatpush.bf16.msra.mxu2 %v9106_v45  ;;  %5966 = vmatpush.bf16.msra.mxu0 %v8834_v22  ;;  %v9790_v45 = vor.u32 %v10894_v41, %v9789_v58  ;;  %v10824_v22 = vld [vmem:[#allocation6 + $0x5ac] sm:$0xf]  ;;  %v9490_v58 = vor.u32 %v10816_v7, %v9487_v56  ;;  %v9861_v56 = vld [vmem:[#allocation9 + $0x60] sm:$0xf] }
 0x3ff   :  { %v10844_v5 = vld [vmem:[#allocation6 + $0x64c] sm:$0xf] }
 0x400   :  { %5979 = vmatpush.bf16.msra.mxu1 %v8962_v23  ;;  %v9519_v23 = vld [vmem:[#allocation6 + $0x5b8] sm:$0xf0] }
 0x401   :  { %5949 = vmatpush.bf16.msrb.mxu3 %v9790_v45  ;;  %v9522_v30 = vor.u32 %v10824_v22, %v9519_v23  ;;  %v9599_v45 = vld [vmem:[#allocation6 + $0x658] sm:$0xf0]  ;;  %v9710_v22 = vor.u32 %v10874_v44, %v9709_v10  ;;  %v10840_v23 = vld [vmem:[#allocation6 + $0x62c] sm:$0xf]  ;;  %v9845_v10 = vld [vmem:[#allocation9 + $0x40] sm:$0xf] }
 0x402   :  { %5992 = vmatpush.bf16.msra.mxu2 %v9090_v24  ;;  %5967 = vmatpush.bf16.msra.mxu0 %v8818_v8  ;;  %v10856_v24 = vld [vmem:[#allocation6 + $0x6ac] sm:$0xf] }
 0x403   :  { %v9650_v31 = vor.u32 %v10856_v24, %v9647_v2  ;;  %v10820_v8 = vld [vmem:[#allocation6 + $0x58c] sm:$0xf]  ;;  %v9583_v24 = vld [vmem:[#allocation6 + $0x638] sm:$0xf0]  ;;  %v9693_v2 = vld [vmem:[#allocation6 + $0x708] sm:$0xf] }
 0x404   :  { %5980 = vmatpush.bf16.msra.mxu1 %v8946_v35  ;;  %v9741_v35 = vld [vmem:[#allocation6 + $0x768] sm:$0xf]  ;;  %v10908_v44 = vld [vmem:[#allocation9 + $0x44] sm:$0xf0] }
 0x405   :  { %5950 = vmatpush.bf16.msrb.mxu3 %v9774_v11  ;;  %v9455_v11 = vld [vmem:[#allocation6 + $0x538] sm:$0xf0] }
 0x406   :  { %5993 = vmatpush.bf16.msra.mxu2 %v9074_v34  ;;  %5968 = vmatpush.bf16.msra.mxu0 %v8802_v13  ;;  %v10882_v34 = vld [vmem:[#allocation6 + $0x774] sm:$0xf0]  ;;  %v5762_v36 = vpop.f32.mrf.mxu0  ;;  %v9615_v13 = vld [vmem:[#allocation6 + $0x678] sm:$0xf0] }
 0x407   :  { %v5763_v9 = vadd.f32 %v5762_v36, %v4362_v28  ;;  %v9742_v43 = vor.u32 %v10882_v34, %v9741_v35  ;;  %v9618_v41 = vor.u32 %v10848_v55, %v9615_v13  ;;  %v9295_v28 = vld [vmem:[#allocation6 + $0x3f8] sm:$0xf0]  ;;  %v10912_v55 = vld [vmem:[#allocation9 + $0x64] sm:$0xf0] }
 0x408   :  { %5981 = vmatpush.bf16.msra.mxu1 %v8930_v38  ;;  %v5775_v19 = vpop.f32.mrf.mxu1  ;;  %v9362_v38 = vor.u32 %v10784_v39, %v9359_v42  ;;  %v9567_v36 = vld [vmem:[#allocation6 + $0x618] sm:$0xf0]  ;;  %v10760_v13 = vld [vmem:[#allocation6 + $0x3ac] sm:$0xf]  ;;  %v9862_v57 = vor.u32 %v10912_v55, %v9861_v56  ;;  %v9813_v56 = vld [vmem:[#allocation9] sm:$0xf] }
 0x409   :  { %5969 = vmatmul.bf16.vlgmr.msra.gmra.mxu0 %v11455_v12  ;;  %v10788_v12 = vld [vmem:[#allocation6 + $0x48c] sm:$0xf]  ;;  %5951 = vmatpush.bf16.msrb.mxu3 %v9758_v47  ;;  %v5776_v46 = vadd.f32 %v5775_v19, %v5763_v9  ;;  %v9869_v19 = vld [vmem:[#allocation9 + $0x70] sm:$0xf] }
 0x40a   :  { %5994 = vmatpush.bf16.msra.mxu2 %v9058_v60  ;;  %6013 = vmatpush.bf16.msrb.mxu0 %v9426_v62  ;;  %v9378_v4 = vor.u32 %v10788_v12, %v9375_v32  ;;  %v5738_v60 = vpop.f32.mrf.mxu2  ;;  %v10780_v62 = vld [vmem:[#allocation6 + $0x44c] sm:$0xf]  ;;  %v9311_v32 = vld [vmem:[#allocation6 + $0x418] sm:$0xf0] }
 0x40b   :  { %5982 = vmatmul.bf16.vlgmr.msra.gmra.mxu1 %v11457_v14  ;;  %v9503_v14 = vld [vmem:[#allocation6 + $0x598] sm:$0xf0]  ;;  %v10772_v12 = vld [vmem:[#allocation6 + $0x40c] sm:$0xf] }
 0x40c   :  { %6026 = vmatpush.bf16.msrb.mxu1 %v9554_v0  ;;  %v9506_v29 = vor.u32 %v10820_v8, %v9503_v14  ;;  %v9343_v0 = vld [vmem:[#allocation6 + $0x458] sm:$0xf0]  ;;  %v9694_v8 = vor.u32 %v10870_v26, %v9693_v2  ;;  %v10804_v14 = vld [vmem:[#allocation6 + $0x50c] sm:$0xf]  ;;  %v9314_v9 = vor.u32 %v10772_v12, %v9311_v32  ;;  %v9909_v12 = vld [vmem:[#allocation9 + $0xc0] sm:$0xf] }
 0x40d   :  { %5995 = vmatmul.bf16.vlgmr.msra.gmra.mxu2 %v11459_v52  ;;  %v9631_v52 = vld [vmem:[#allocation6 + $0x698] sm:$0xf0]  ;;  %5952 = vmatpush.bf16.msrb.mxu3 %v9742_v43  ;;  %v9346_v18 = vor.u32 %v10780_v62, %v9343_v0  ;;  %v9933_v0 = vld [vmem:[#allocation9 + $0xf0] sm:$0xf]  ;;  %v10924_v32 = vld [vmem:[#allocation9 + $0xc4] sm:$0xf0] }
 0x40e   :  { %6039 = vmatpush.bf16.msrb.mxu2 %v9682_v3  ;;  %6014 = vmatpush.bf16.msrb.mxu0 %v9410_v50  ;;  %v9634_v15 = vor.u32 %v10852_v40, %v9631_v52  ;;  %v10812_v3 = vld [vmem:[#allocation6 + $0x54c] sm:$0xf]  ;;  %v5764_v16 = vpop.f32.mrf.mxu0  ;;  %v9439_v40 = vld [vmem:[#allocation6 + $0x518] sm:$0xf0] }
 0x40f   :  { %v9474_v50 = vor.u32 %v10812_v3, %v9471_v48  ;;  %v10836_v52 = vld [vmem:[#allocation6 + $0x60c] sm:$0xf]  ;;  %v9442_v39 = vor.u32 %v10804_v14, %v9439_v40  ;;  %v10910_v60 = vld [vmem:[#allocation9 + $0x54] sm:$0xf0]  ;;  %v9925_v16 = vld [vmem:[#allocation9 + $0xe0] sm:$0xf] }
 0x410   :  { %6027 = vmatpush.bf16.msrb.mxu1 %v9538_v61  ;;  %v5777_v17 = vpop.f32.mrf.mxu1  ;;  %v9602_v61 = vor.u32 %v10844_v5, %v9599_v45  ;;  %v9570_v42 = vor.u32 %v10836_v52, %v9567_v36  ;;  %v9247_v62 = vld [vmem:[#allocation6 + $0x398] sm:$0xf0]  ;;  %v10752_v45 = vld [vmem:[#allocation6 + $0x36c] sm:$0xf]  ;;  %v9821_v36 = vld [vmem:[#allocation9 + $0x10] sm:$0xf] }
 0x411   :  { %5953 = vmatpush.bf16.msrb.mxu3 %v9726_v33  ;;  %v10930_v3 = vld [vmem:[#allocation9 + $0xf4] sm:$0xf0]  ;;  %v10928_v17 = vld [vmem:[#allocation9 + $0xe4] sm:$0xf0] }
 0x412   :  { %6040 = vmatpush.bf16.msrb.mxu2 %v9666_v6  ;;  %6015 = vmatpush.bf16.msrb.mxu0 %v9394_v63  ;;  %v10776_v6 = vld [vmem:[#allocation6 + $0x42c] sm:$0xf]  ;;  %v5788_v47 = vpop.f32.mrf.mxu2  ;;  %v9934_v33 = vor.u32 %v10930_v3, %v9933_v0 }
 0x413   :  { %v9330_v27 = vor.u32 %v10776_v6, %v9327_v25  ;;  %v10768_v63 = vld [vmem:[#allocation6 + $0x3ec] sm:$0xf]  ;;  %v11543_v34 = vadd.f32 %v5788_v47, %v5776_v46  ;;  %v9263_v46 = vld [vmem:[#allocation6 + $0x3b8] sm:$0xf0]  ;;  %v9837_v25 = vld [vmem:[#allocation9 + $0x30] sm:$0xf]  ;;  %v9910_v47 = vor.u32 %v10924_v32, %v9909_v12 }
 0x414   :  { %6028 = vmatpush.bf16.msrb.mxu1 %v9522_v30  ;;  %v9458_v30 = vor.u32 %v10808_v21, %v9455_v11  ;;  %v9298_v35 = vor.u32 %v10768_v63, %v9295_v28  ;;  %v10748_v6 = vld [vmem:[#allocation6 + $0x34c] sm:$0xf]  ;;  %v10906_v21 = vld [vmem:[#allocation9 + $0x34] sm:$0xf0]  ;;  %v9917_v11 = vld [vmem:[#allocation9 + $0xd0] sm:$0xf] }
 0x415   :  { %5954 = vmatpush.bf16.msrb.mxu3 %v9710_v22  ;;  %v9215_v22 = vld [vmem:[#allocation6 + $0x358] sm:$0xf0]  ;;  %v9838_v2 = vor.u32 %v10906_v21, %v9837_v25  ;;  %v9829_v63 = vld [vmem:[#allocation9 + $0x20] sm:$0xf]  ;;  %v10904_v28 = vld [vmem:[#allocation9 + $0x24] sm:$0xf0] }
 0x416   :  { %6041 = vmatpush.bf16.msrb.mxu2 %v9650_v31  ;;  %6016 = vmatpush.bf16.msrb.mxu0 %v9378_v4  ;;  %v9586_v31 = vor.u32 %v10840_v23, %v9583_v24  ;;  %v10914_v4 = vld [vmem:[#allocation9 + $0x74] sm:$0xf0]  ;;  %v9218_v26 = vor.u32 %v10748_v6, %v9215_v22  ;;  %v9830_v40 = vor.u32 %v10904_v28, %v9829_v63  ;;  %v10900_v55 = vld [vmem:[#allocation9 + $0x4] sm:$0xf0]  ;;  %v10929_v6 = vld [vmem:[#allocation9 + $0xf4] sm:$0xf] }
 0x417   :  { %v9870_v7 = vor.u32 %v10914_v4, %v9869_v19  ;;  %v10926_v23 = vld [vmem:[#allocation9 + $0xd4] sm:$0xf0]  ;;  %v9814_v0 = vor.u32 %v10900_v55, %v9813_v56  ;;  %v9935_v25 = vld [vmem:[#allocation9 + $0xf8] sm:$0xf0]  ;;  %v10909_v22 = vld [vmem:[#allocation9 + $0x54] sm:$0xf] }
 0x418   :  { %6029 = vmatpush.bf16.msrb.mxu1 %v9506_v29  ;;  %v10764_v29 = vld [vmem:[#allocation6 + $0x3cc] sm:$0xf]  ;;  %v9918_v24 = vor.u32 %v10926_v23, %v9917_v11  ;;  %v10902_v19 = vld [vmem:[#allocation9 + $0x14] sm:$0xf0]  ;;  %v9855_v11 = vld [vmem:[#allocation9 + $0x58] sm:$0xf0]  ;;  %v9938_v23 = vor.u32 %v10929_v6, %v9935_v25 }
 0x419   :  { %5955 = vmatpush.bf16.msrb.mxu3 %v9694_v8  ;;  %v9183_v4 = vld [vmem:[#allocation6 + $0x318] sm:$0xf0]  ;;  %v10880_v28 = vld [vmem:[#allocation6 + $0x76c] sm:$0xf]  ;;  %v9847_v12 = vld [vmem:[#allocation9 + $0x48] sm:$0xf0] }
 0x41a   :  { %6042 = vmatpush.bf16.msrb.mxu2 %v9634_v15  ;;  %6017 = vmatpush.bf16.msrb.mxu0 %v9362_v38  ;;  %v9279_v15 = vld [vmem:[#allocation6 + $0x3d8] sm:$0xf0]  ;;  %v5790_v49 = vpop.f32.mrf.mxu2  ;;  %v9266_v38 = vor.u32 %v10760_v13, %v9263_v46  ;;  %v10913_v13 = vld [vmem:[#allocation9 + $0x74] sm:$0xf]  ;;  %v9919_v56 = vld [vmem:[#allocation9 + $0xd8] sm:$0xf0] }
 0x41b   :  { %v9282_v43 = vor.u32 %v10764_v29, %v9279_v15  ;;  %v10922_v29 = vld [vmem:[#allocation9 + $0xb4] sm:$0xf0]  ;;  %v10896_v15 = vld [vmem:[#allocation6 + $0x7ec] sm:$0xf] }
 0x41c   :  { %6030 = vmatpush.bf16.msrb.mxu1 %v9490_v58  ;;  %5956 = vmatmul.bf16.vlgmr.msrb.gmra.mxu3 %v11517_v54  ;;  %v10756_v58 = vld [vmem:[#allocation6 + $0x38c] sm:$0xf]  ;;  %v9743_v32 = vld [vmem:[#allocation6 + $0x778] sm:$0xf0] }
 0x41d   :  { %6000 = vmatpush.bf16.msra.mxu3 %v9298_v35  ;;  %v9250_v5 = vor.u32 %v10756_v58, %v9247_v62  ;;  %v10740_v35 = vld [vmem:[#allocation6 + $0x30c] sm:$0xf] }
 0x41e   :  { %6043 = vmatpush.bf16.msrb.mxu2 %v9618_v41  ;;  %6018 = vmatpush.bf16.msrb.mxu0 %v9346_v18  ;;  %v9853_v41 = vld [vmem:[#allocation9 + $0x50] sm:$0xf]  ;;  %v10920_v58 = vld [vmem:[#allocation9 + $0xa4] sm:$0xf0] }
 0x41f   :  { %v9854_v48 = vor.u32 %v10910_v60, %v9853_v41  ;;  %v10892_v41 = vld [vmem:[#allocation6 + $0x7cc] sm:$0xf]  ;;  %v9791_v60 = vld [vmem:[#allocation6 + $0x7d8] sm:$0xf0] }
 0x420   :  { %6031 = vmatpush.bf16.msrb.mxu1 %v9474_v50 }
 0x421   :  { %6001 = vmatpush.bf16.msra.mxu3 %v9282_v43  ;;  %v9186_v43 = vor.u32 %v10740_v35, %v9183_v4 }
 0x422   :  { %6044 = vmatpush.bf16.msrb.mxu2 %v9602_v61  ;;  %6019 = vmatpush.bf16.msrb.mxu0 %v9330_v27  ;;  %v9846_v61 = vor.u32 %v10908_v44, %v9845_v10  ;;  %v10744_v27 = vld [vmem:[#allocation6 + $0x32c] sm:$0xf]  ;;  %v9863_v10 = vld [vmem:[#allocation9 + $0x68] sm:$0xf0] }
 0x424   :  { %6032 = vmatpush.bf16.msrb.mxu1 %v9458_v30 }
 0x425   :  { %6002 = vmatpush.bf16.msra.mxu3 %v9266_v38  ;;  %v9893_v38 = vld [vmem:[#allocation9 + $0xa0] sm:$0xf] }
 0x426   :  { %6045 = vmatpush.bf16.msrb.mxu2 %v9586_v31  ;;  %6020 = vmatpush.bf16.msrb.mxu0 %v9314_v9  ;;  %v11549_v18 = vpop.f32.mrf.mxu0  ;;  %v9199_v31 = vld [vmem:[#allocation6 + $0x338] sm:$0xf0]  ;;  %v9901_v9 = vld [vmem:[#allocation9 + $0xb0] sm:$0xf]  ;;  %v9894_v62 = vor.u32 %v10920_v58, %v9893_v38  ;;  %v10903_v38 = vld [vmem:[#allocation9 + $0x24] sm:$0xf] }
 0x427   :  { %v9202_v52 = vor.u32 %v10744_v27, %v9199_v31  ;;  %v10907_v31 = vld [vmem:[#allocation9 + $0x44] sm:$0xf]  ;;  %v9831_v58 = vld [vmem:[#allocation9 + $0x28] sm:$0xf0] }
 0x428   :  { %6033 = vmatpush.bf16.msrb.mxu1 %v9442_v39  ;;  %v11551_v50 = vpop.f32.mrf.mxu1  ;;  %v9807_v39 = vld [vmem:[#allocation6 + $0x7f8] sm:$0xf0] }
 0x429   :  { %6021 = vmatmul.bf16.vlgmr.msrb.gmra.mxu0 %v11487_v51  ;;  %v9231_v51 = vld [vmem:[#allocation6 + $0x378] sm:$0xf0]  ;;  %6003 = vmatpush.bf16.msra.mxu3 %v9250_v5  ;;  %v9810_v49 = vor.u32 %v10896_v15, %v9807_v39  ;;  %v10876_v15 = vld [vmem:[#allocation6 + $0x74c] sm:$0xf]  ;;  %v10905_v39 = vld [vmem:[#allocation9 + $0x34] sm:$0xf] }
 0x42a   :  { %6046 = vmatpush.bf16.msrb.mxu2 %v9570_v42  ;;  %6463 = vmatpush.bf16.msra.mxu0 %v9870_v7  ;;  %v9902_v42 = vor.u32 %v10922_v29, %v9901_v9  ;;  %v9822_v7 = vor.u32 %v10902_v19, %v9821_v36  ;;  %v10918_v5 = vld [vmem:[#allocation9 + $0x94] sm:$0xf0]  ;;  %v9850_v36 = vor.u32 %v10907_v31, %v9847_v12 }
 0x42b   :  { %6034 = vmatmul.bf16.vlgmr.msrb.gmra.mxu1 %v11489_v53  ;;  %v9926_v53 = vor.u32 %v10928_v17, %v9925_v16  ;;  %v10916_v16 = vld [vmem:[#allocation9 + $0x84] sm:$0xf0]  ;;  %v9746_v29 = vor.u32 %v10880_v28, %v9743_v32  ;;  %v10946_v28 = vld [vmem:[#allocation9 + $0x174] sm:$0xf0] }
 0x42c   :  { %6476 = vmatpush.bf16.msra.mxu1 %v9934_v33  ;;  %v10911_v33 = vld [vmem:[#allocation9 + $0x64] sm:$0xf]  ;;  %v10888_v17 = vld [vmem:[#allocation6 + $0x7ac] sm:$0xf] }
 0x42d   :  { %6047 = vmatmul.bf16.vlgmr.msrb.gmra.mxu2 %v11495_v20  ;;  %v9234_v20 = vor.u32 %v10752_v45, %v9231_v51  ;;  %v9794_v45 = vor.u32 %v10892_v41, %v9791_v60  ;;  %v9877_v51 = vld [vmem:[#allocation9 + $0x80] sm:$0xf]  ;;  %v9711_v41 = vld [vmem:[#allocation6 + $0x738] sm:$0xf0]  ;;  %v10923_v60 = vld [vmem:[#allocation9 + $0xc4] sm:$0xf] }
 0x42e   :  { %6464 = vmatpush.bf16.msra.mxu0 %v9862_v57  ;;  %v5816_v8 = vpop.f32.mrf.mxu0  ;;  %v9871_v57 = vld [vmem:[#allocation9 + $0x78] sm:$0xf0] }
 0x42f   :  { %6004 = vmatpush.bf16.msra.mxu3 %v9234_v20  ;;  %v9874_v3 = vor.u32 %v10913_v13, %v9871_v57  ;;  %v9878_v20 = vor.u32 %v10916_v16, %v9877_v51  ;;  %v10927_v8 = vld [vmem:[#allocation9 + $0xe4] sm:$0xf]  ;;  %v10872_v57 = vld [vmem:[#allocation6 + $0x72c] sm:$0xf]  ;;  %v10901_v16 = vld [vmem:[#allocation9 + $0x14] sm:$0xf] }
 0x430   :  { %6477 = vmatpush.bf16.msra.mxu1 %v9926_v53  ;;  %v11553_v30 = vpop.f32.mrf.mxu2  ;;  %v5829_v14 = vpop.f32.mrf.mxu1  ;;  %v9775_v53 = vld [vmem:[#allocation6 + $0x7b8] sm:$0xf0]  ;;  %v10868_v51 = vld [vmem:[#allocation6 + $0x70c] sm:$0xf] }
 0x431   :  { %v9778_v21 = vor.u32 %v10888_v17, %v9775_v53  ;;  %v5737_v14 = vadd.f32 %v11541_v37, %v11534_v1  ;;  %v9823_v17 = vld [vmem:[#allocation9 + $0x18] sm:$0xf0]  ;;  %v9695_v53 = vld [vmem:[#allocation6 + $0x718] sm:$0xf0] }
 0x432   :  { %6465 = vmatpush.bf16.msra.mxu0 %v9854_v48  ;;  %v9885_v48 = vld [vmem:[#allocation9 + $0x90] sm:$0xf]  ;;  %v9826_v25 = vor.u32 %v10901_v16, %v9823_v17  ;;  %v9999_v16 = vld [vmem:[#allocation9 + $0x178] sm:$0xf0] }
 0x433   :  { %6005 = vmatpush.bf16.msra.mxu3 %v9218_v26  ;;  %v9886_v44 = vor.u32 %v10918_v5, %v9885_v48  ;;  %v11556_v26 = vld [vmem:[#allocation7] sm:$0xf] }
 0x434   :  { %6478 = vmatpush.bf16.msra.mxu1 %v9918_v24  ;;  %v10884_v24 = vld [vmem:[#allocation6 + $0x78c] sm:$0xf]  ;;  %v4363_v27 = vperm.slane %v11556_v26, 2 }
 0x436   :  { %6466 = vmatpush.bf16.msra.mxu0 %v9846_v61  ;;  %v9866_v61 = vor.u32 %v10911_v33, %v9863_v10 }
 0x437   :  { %6006 = vmatpush.bf16.msra.mxu3 %v9202_v52 }
 0x438   :  { %6479 = vmatpush.bf16.msra.mxu1 %v9910_v47  ;;  %v5842_v46 = vpop.f32.mrf.mxu2  ;;  %v9927_v47 = vld [vmem:[#allocation9 + $0xe8] sm:$0xf0] }
 0x43a   :  { %6467 = vmatpush.bf16.msra.mxu0 %v9838_v2  ;;  %v9759_v2 = vld [vmem:[#allocation6 + $0x798] sm:$0xf0] }
 0x43b   :  { %6007 = vmatpush.bf16.msra.mxu3 %v9186_v43  ;;  %v9762_v63 = vor.u32 %v10884_v24, %v9759_v2  ;;  %v10925_v43 = vld [vmem:[#allocation9 + $0xd4] sm:$0xf]  ;;  %v9895_v24 = vld [vmem:[#allocation9 + $0xa8] sm:$0xf0] }
 0x43c   :  { %6480 = vmatpush.bf16.msra.mxu1 %v9902_v42  ;;  %v5749_v35 = vpop.f32.mrf.mxu3  ;;  %v9839_v42 = vld [vmem:[#allocation9 + $0x38] sm:$0xf0]  ;;  %v9922_v1 = vor.u32 %v10925_v43, %v9919_v56  ;;  %v10917_v2 = vld [vmem:[#allocation9 + $0x94] sm:$0xf] }
 0x43d   :  { %v5750_v9 = vadd.f32 %v5749_v35, %v5737_v14  ;;  %v9842_v37 = vor.u32 %v10905_v39, %v9839_v42  ;;  %v10915_v14 = vld [vmem:[#allocation9 + $0x84] sm:$0xf]  ;;  %v9981_v42 = vld [vmem:[#allocation9 + $0x150] sm:$0xf] }
 0x43e   :  { %6468 = vmatpush.bf16.msra.mxu0 %v9830_v40  ;;  %6008 = vmatmul.bf16.vlgmr.msra.gmra.mxu3 %v11461_v59  ;;  %v9858_v59 = vor.u32 %v10909_v22, %v9855_v11  ;;  %v9930_v40 = vor.u32 %v10927_v8, %v9927_v47  ;;  %v9815_v22 = vld [vmem:[#allocation9 + $0x8] sm:$0xf0]  ;;  %v9698_v11 = vor.u32 %v10868_v51, %v9695_v53  ;;  %v10945_v51 = vld [vmem:[#allocation9 + $0x174] sm:$0xf] }
 0x43f   :  { %6052 = vmatpush.bf16.msrb.mxu3 %v9810_v49  ;;  %v6065_v13 = vmax.f32 %v5750_v9, 0.0  ;;  %v10944_v9 = vld [vmem:[#allocation9 + $0x164] sm:$0xf0]  ;;  %v10002_v53 = vor.u32 %v10945_v51, %v9999_v16 }
 0x440   :  { %6481 = vmatpush.bf16.msra.mxu1 %v9894_v62  ;;  %v9911_v62 = vld [vmem:[#allocation9 + $0xc8] sm:$0xf0] }
 0x441   :  { %v6069_v46 = vpack.c.bf16 %v6065_v13, %v6065_v13 }
 0x442   :  { %6469 = vmatpush.bf16.msra.mxu0 %v9822_v7  ;;  %v9727_v7 = vld [vmem:[#allocation6 + $0x758] sm:$0xf0] }
 0x443   :  { %6053 = vmatpush.bf16.msrb.mxu3 %v9794_v45  ;;  %v9730_v49 = vor.u32 %v10876_v15, %v9727_v7  ;;  %v9834_v45 = vor.u32 %v10903_v38, %v9831_v58 }
 0x444   :  { %6482 = vmatpush.bf16.msra.mxu1 %v9886_v44  ;;  %v5751_v5 = vpop.f32.mrf.mxu3  ;;  %v9714_v44 = vor.u32 %v10872_v57, %v9711_v41  ;;  %v10938_v57 = vld [vmem:[#allocation9 + $0x134] sm:$0xf0] }
 0x446   :  { %6470 = vmatpush.bf16.msra.mxu0 %v9814_v0  ;;  %v5866_v52 = vpop.f32.mrf.mxu0 }
 0x447   :  { %6054 = vmatpush.bf16.msrb.mxu3 %v9778_v21  ;;  %v5867_v19 = vadd.f32 %v5866_v52, %v4363_v27  ;;  %v10899_v21 = vld [vmem:[#allocation9 + $0x4] sm:$0xf] }
 0x448   :  { %6483 = vmatpush.bf16.msra.mxu1 %v9878_v20  ;;  %v5879_v4 = vpop.f32.mrf.mxu1  ;;  %v9903_v20 = vld [vmem:[#allocation9 + $0xb8] sm:$0xf0]  ;;  %v9818_v8 = vor.u32 %v10899_v21, %v9815_v22  ;;  %v10941_v21 = vld [vmem:[#allocation9 + $0x154] sm:$0xf] }
 0x449   :  { %v5880_v55 = vadd.f32 %v5879_v4, %v5867_v19  ;;  %6471 = vmatmul.bf16.vlgmr.msra.gmra.mxu0 %v6069_v46  ;;  %v9989_v4 = vld [vmem:[#allocation9 + $0x160] sm:$0xf]  ;;  %v9983_v22 = vld [vmem:[#allocation9 + $0x158] sm:$0xf0] }
 0x44a   :  { %6515 = vmatpush.bf16.msrb.mxu0 %v9874_v3  ;;  %v9914_v3 = vor.u32 %v10923_v60, %v9911_v62  ;;  %v10936_v62 = vld [vmem:[#allocation9 + $0x124] sm:$0xf0] }
 0x44b   :  { %6055 = vmatpush.bf16.msrb.mxu3 %v9762_v63  ;;  %v9997_v63 = vld [vmem:[#allocation9 + $0x170] sm:$0xf] }
 0x44c   :  { %6528 = vmatpush.bf16.msrb.mxu1 %v9938_v23  ;;  %v10919_v23 = vld [vmem:[#allocation9 + $0xa4] sm:$0xf]  ;;  %v9998_v12 = vor.u32 %v10946_v28, %v9997_v63  ;;  %v5801_v32 = vpop.f32.mrf.mxu3  ;;  %v9975_v28 = vld [vmem:[#allocation9 + $0x148] sm:$0xf0] }
 0x44d   :  { %v9898_v27 = vor.u32 %v10919_v23, %v9895_v24  ;;  %v5802_v52 = vadd.f32 %v5801_v32, %v11543_v34  ;;  %v9986_v23 = vor.u32 %v10941_v21, %v9983_v22  ;;  %v10939_v63 = vld [vmem:[#allocation9 + $0x144] sm:$0xf]  ;;  %v10937_v32 = vld [vmem:[#allocation9 + $0x134] sm:$0xf]  ;;  %v10005_v21 = vld [vmem:[#allocation9 + $0x180] sm:$0xf] }
 0x44e   :  { %6516 = vmatpush.bf16.msrb.mxu0 %v9866_v61  ;;  %v5868_v48 = vpop.f32.mrf.mxu0  ;;  %v10921_v61 = vld [vmem:[#allocation9 + $0xb4] sm:$0xf]  ;;  %6489 = vmatpush.bf16.msra.mxu2 %v9998_v12  ;;  %v10948_v22 = vld [vmem:[#allocation9 + $0x184] sm:$0xf0] }
 0x44f   :  { %6056 = vmatpush.bf16.msrb.mxu3 %v9746_v29  ;;  %v9906_v6 = vor.u32 %v10921_v61, %v9903_v20  ;;  %v5815_v19 = vadd.f32 %v11549_v18, %v5802_v52  ;;  %v9990_v29 = vor.u32 %v10944_v9, %v9989_v4  ;;  %v10940_v18 = vld [vmem:[#allocation9 + $0x144] sm:$0xf0]  ;;  %v10934_v48 = vld [vmem:[#allocation9 + $0x114] sm:$0xf0]  ;;  %v10943_v61 = vld [vmem:[#allocation9 + $0x164] sm:$0xf] }
 0x450   :  { %6529 = vmatpush.bf16.msrb.mxu1 %v9930_v40  ;;  %v5892_v0 = vpop.f32.mrf.mxu2  ;;  %v5881_v10 = vpop.f32.mrf.mxu1  ;;  %v9879_v40 = vld [vmem:[#allocation9 + $0x88] sm:$0xf0]  ;;  %v10933_v4 = vld [vmem:[#allocation9 + $0x114] sm:$0xf]  ;;  %v9951_v9 = vld [vmem:[#allocation9 + $0x118] sm:$0xf0] }
 0x451   :  { %v11561_v33 = vadd.f32 %v5892_v0, %v5880_v55  ;;  %v9882_v35 = vor.u32 %v10915_v14, %v9879_v40  ;;  %v5828_v15 = vadd.f32 %v11551_v50, %v5815_v19  ;;  %v9973_v55 = vld [vmem:[#allocation9 + $0x140] sm:$0xf]  ;;  %v9991_v20 = vld [vmem:[#allocation9 + $0x168] sm:$0xf0] }
 0x452   :  { %6517 = vmatpush.bf16.msrb.mxu0 %v9858_v59  ;;  %v9887_v59 = vld [vmem:[#allocation9 + $0x98] sm:$0xf0]  ;;  %6490 = vmatpush.bf16.msra.mxu2 %v9990_v29  ;;  %v9941_v10 = vld [vmem:[#allocation9 + $0x100] sm:$0xf]  ;;  %v9954_v29 = vor.u32 %v10933_v4, %v9951_v9  ;;  %v10023_v4 = vld [vmem:[#allocation9 + $0x1a8] sm:$0xf0] }
 0x453   :  { %6057 = vmatpush.bf16.msrb.mxu3 %v9730_v49  ;;  %v9890_v47 = vor.u32 %v10917_v2, %v9887_v59  ;;  %v5841_v43 = vadd.f32 %v11553_v30, %v5828_v15  ;;  %v9965_v49 = vld [vmem:[#allocation9 + $0x130] sm:$0xf]  ;;  %v9957_v30 = vld [vmem:[#allocation9 + $0x120] sm:$0xf] }
 0x454   :  { %6530 = vmatpush.bf16.msrb.mxu1 %v9922_v1  ;;  %v9974_v1 = vor.u32 %v10940_v18, %v9973_v55  ;;  %v9966_v41 = vor.u32 %v10938_v57, %v9965_v49  ;;  %v9958_v0 = vor.u32 %v10936_v62, %v9957_v30  ;;  %v10061_v15 = vld [vmem:[#allocation9 + $0x1f0] sm:$0xf]  ;;  %v10956_v62 = vld [vmem:[#allocation9 + $0x1c4] sm:$0xf0] }
 0x455   :  { %v10045_v57 = vld [vmem:[#allocation9 + $0x1d0] sm:$0xf] }
 0x456   :  { %6518 = vmatpush.bf16.msrb.mxu0 %v9850_v36  ;;  %v5803_v36 = vpop.f32.mrf.mxu3 }
 0x457   :  { %6058 = vmatpush.bf16.msrb.mxu3 %v9714_v44  ;;  %v10932_v44 = vld [vmem:[#allocation9 + $0x104] sm:$0xf0]  ;;  %v9959_v36 = vld [vmem:[#allocation9 + $0x128] sm:$0xf0] }
 0x458   :  { %6531 = vmatpush.bf16.msrb.mxu1 %v9914_v3  ;;  %v5894_v31 = vpop.f32.mrf.mxu2  ;;  %v9949_v3 = vld [vmem:[#allocation9 + $0x110] sm:$0xf]  ;;  %v9942_v17 = vor.u32 %v10932_v44, %v9941_v10 }
 0x459   :  { %v9978_v31 = vor.u32 %v10939_v63, %v9975_v28  ;;  %v10055_v63 = vld [vmem:[#allocation9 + $0x1e8] sm:$0xf0] }
 0x45a   :  { %6519 = vmatpush.bf16.msrb.mxu0 %v9842_v37 }
 0x45b   :  { %6059 = vmatpush.bf16.msrb.mxu3 %v9698_v11 }
 0x45c   :  { %6532 = vmatpush.bf16.msrb.mxu1 %v9906_v6  ;;  %v9994_v6 = vor.u32 %v10943_v61, %v9991_v20  ;;  %v10013_v20 = vld [vmem:[#allocation9 + $0x190] sm:$0xf] }
 0x45e   :  { %6520 = vmatpush.bf16.msrb.mxu0 %v9834_v45  ;;  %6060 = vmatmul.bf16.vlgmr.msrb.gmra.mxu3 %v11517_v54  ;;  %v10942_v54 = vld [vmem:[#allocation9 + $0x154] sm:$0xf0]  ;;  %v9950_v45 = vor.u32 %v10934_v48, %v9949_v3 }
 0x45f   :  { %v9982_v34 = vor.u32 %v10942_v54, %v9981_v42  ;;  %v5853_v56 = vpop.f32.mrf.mxu3  ;;  %v10962_v42 = vld [vmem:[#allocation9 + $0x1f4] sm:$0xf0] }
 0x460   :  { %6533 = vmatpush.bf16.msrb.mxu1 %v9898_v27  ;;  %v5854_v13 = vadd.f32 %v5853_v56, %v5841_v43  ;;  %v9943_v43 = vld [vmem:[#allocation9 + $0x108] sm:$0xf0]  ;;  %v10062_v56 = vor.u32 %v10962_v42, %v10061_v15  ;;  %v10015_v15 = vld [vmem:[#allocation9 + $0x198] sm:$0xf0] }
 0x461   :  { %6491 = vmatpush.bf16.msra.mxu2 %v9982_v34  ;;  %v10931_v34 = vld [vmem:[#allocation9 + $0x104] sm:$0xf] }
 0x462   :  { %6521 = vmatpush.bf16.msrb.mxu0 %v9826_v25  ;;  %v6066_v37 = vmax.f32 %v5854_v13, 0.0  ;;  %v4364_v25 = vperm.slane %v11556_v26, 3  ;;  %6502 = vmatpush.bf16.msra.mxu3 %v10062_v56  ;;  %v9946_v55 = vor.u32 %v10931_v34, %v9943_v43  ;;  %v10947_v43 = vld [vmem:[#allocation9 + $0x184] sm:$0xf]  ;;  %v10007_v56 = vld [vmem:[#allocation9 + $0x188] sm:$0xf0] }
 0x464   :  { %6534 = vmatpush.bf16.msrb.mxu1 %v9890_v47  ;;  %v6070_v38 = vpack.c.bf16 %v6066_v37, %v6066_v37  ;;  %v10960_v37 = vld [vmem:[#allocation9 + $0x1e4] sm:$0xf0] }
 0x465   :  { %6492 = vmatpush.bf16.msra.mxu2 %v9974_v1  ;;  %v10053_v1 = vld [vmem:[#allocation9 + $0x1e0] sm:$0xf] }
 0x466   :  { %6522 = vmatpush.bf16.msrb.mxu0 %v9818_v8  ;;  %v11567_v39 = vpop.f32.mrf.mxu0  ;;  %6484 = vmatmul.bf16.vlgmr.msra.gmra.mxu1 %v6070_v38  ;;  %v9967_v8 = vld [vmem:[#allocation9 + $0x138] sm:$0xf0] }
 0x467   :  { %v5855_v60 = vpop.f32.mrf.mxu3  ;;  %v9970_v14 = vor.u32 %v10937_v32, %v9967_v8  ;;  %v10955_v8 = vld [vmem:[#allocation9 + $0x1c4] sm:$0xf] }
 0x468   :  { %6535 = vmatpush.bf16.msrb.mxu1 %v9882_v35  ;;  %v11569_v7 = vpop.f32.mrf.mxu1  ;;  %v10935_v35 = vld [vmem:[#allocation9 + $0x124] sm:$0xf] }
 0x469   :  { %6523 = vmatmul.bf16.vlgmr.msrb.gmra.mxu0 %v6069_v46  ;;  %6493 = vmatpush.bf16.msra.mxu2 %v9966_v41  ;;  %v9962_v19 = vor.u32 %v10935_v35, %v9959_v36  ;;  %v10031_v35 = vld [vmem:[#allocation9 + $0x1b8] sm:$0xf0] }
 0x46d   :  { %6494 = vmatpush.bf16.msra.mxu2 %v9958_v0 }
 0x46e   :  { %v5920_v50 = vpop.f32.mrf.mxu0 }
 0x46f   :  { %v10054_v50 = vor.u32 %v10960_v37, %v10053_v1 }
 0x470   :  { %v11572_v46 = vpop.f32.mrf.mxu2  ;;  %v5933_v58 = vpop.f32.mrf.mxu1 }
 0x471   :  { %6495 = vmatpush.bf16.msra.mxu2 %v9950_v45  ;;  %6503 = vmatpush.bf16.msra.mxu3 %v10054_v50  ;;  %v10954_v45 = vld [vmem:[#allocation9 + $0x1b4] sm:$0xf0] }
 0x475   :  { %6496 = vmatpush.bf16.msra.mxu2 %v9942_v17  ;;  %v10021_v17 = vld [vmem:[#allocation9 + $0x1a0] sm:$0xf] }
 0x476   :  { %6536 = vmatmul.bf16.vlgmr.msrb.gmra.mxu1 %v6070_v38  ;;  %v10958_v38 = vld [vmem:[#allocation9 + $0x1d4] sm:$0xf0] }
 0x477   :  { %v10046_v41 = vor.u32 %v10958_v38, %v10045_v57 }
 0x478   :  { %v5946_v5 = vpop.f32.mrf.mxu2 }
 0x479   :  { %6541 = vmatpush.bf16.msrb.mxu2 %v10002_v53  ;;  %6504 = vmatpush.bf16.msra.mxu3 %v10046_v41  ;;  %v10029_v5 = vld [vmem:[#allocation9 + $0x1b0] sm:$0xf]  ;;  %v10952_v53 = vld [vmem:[#allocation9 + $0x1a4] sm:$0xf0] }
 0x47a   :  { %v10030_v44 = vor.u32 %v10954_v45, %v10029_v5  ;;  %v10022_v61 = vor.u32 %v10952_v53, %v10021_v17  ;;  %v10977_v17 = vld [vmem:[#allocation12 + $0x70] sm:$0xff]  ;;  %v10968_v53 = vld [vmem:[#allocation12 + $0x28] sm:$0xff] }
 0x47d   :  { %6542 = vmatpush.bf16.msrb.mxu2 %v9994_v6  ;;  %v10950_v6 = vld [vmem:[#allocation9 + $0x194] sm:$0xf0] }
 0x47f   :  { %v5905_v59 = vpop.f32.mrf.mxu3 }
 0x480   :  { %v5906_v18 = vadd.f32 %v5905_v59, %v11561_v33  ;;  %v10037_v33 = vld [vmem:[#allocation9 + $0x1c0] sm:$0xf]  ;;  %v10959_v59 = vld [vmem:[#allocation9 + $0x1e4] sm:$0xf] }
 0x481   :  { %6543 = vmatpush.bf16.msrb.mxu2 %v9986_v23  ;;  %v10961_v23 = vld [vmem:[#allocation9 + $0x1f4] sm:$0xf]  ;;  %v10058_v28 = vor.u32 %v10959_v59, %v10055_v63  ;;  %v10972_v63 = vld [vmem:[#allocation12 + $0x48] sm:$0xff] }
 0x482   :  { %v5919_v13 = vadd.f32 %v11567_v39, %v5906_v18  ;;  %v10038_v39 = vor.u32 %v10956_v62, %v10037_v33  ;;  %v6137_v62 = vld [vmem:[#allocation10] sm:$0x3]  ;;  %v10973_v59 = vld [vmem:[#allocation12 + $0x50] sm:$0xff] }
 0x483   :  { %v6140_v45 = vperm.slane %v6137_v62, 1 }
 0x484   :  { %v5932_v49 = vadd.f32 %v11569_v7, %v5919_v13  ;;  %6505 = vmatpush.bf16.msra.mxu3 %v10038_v39  ;;  %v6139_v39 = vperm.slane %v6137_v62, 0 }
 0x485   :  { %6544 = vmatpush.bf16.msrb.mxu2 %v9978_v31  ;;  %v10957_v31 = vld [vmem:[#allocation9 + $0x1d4] sm:$0xf] }
 0x486   :  { %v5970_v11 = vpop.f32.mrf.mxu0  ;;  %v5945_v30 = vadd.f32 %v11572_v46, %v5932_v49 }
 0x487   :  { %v5971_v24 = vadd.f32 %v5970_v11, %v4364_v25  ;;  %v5907_v52 = vpop.f32.mrf.mxu3  ;;  %v10014_v25 = vor.u32 %v10950_v6, %v10013_v20  ;;  %v10966_v20 = vld [vmem:[#allocation12 + $0x18] sm:$0xff] }
 0x488   :  { %v5983_v2 = vpop.f32.mrf.mxu1  ;;  %6506 = vmatpush.bf16.msra.mxu3 %v10030_v44  ;;  %v10953_v52 = vld [vmem:[#allocation9 + $0x1b4] sm:$0xf] }
 0x489   :  { %v5984_v27 = vadd.f32 %v5983_v2, %v5971_v24  ;;  %6545 = vmatpush.bf16.msrb.mxu2 %v9970_v14  ;;  %v10063_v24 = vld [vmem:[#allocation9 + $0x1f8] sm:$0xf0]  ;;  %v10006_v2 = vor.u32 %v10948_v22, %v10005_v21  ;;  %v10034_v36 = vor.u32 %v10953_v52, %v10031_v35 }
 0x48c   :  { %6507 = vmatpush.bf16.msra.mxu3 %v10022_v61 }
 0x48d   :  { %6546 = vmatpush.bf16.msrb.mxu2 %v9962_v19  ;;  %v10951_v19 = vld [vmem:[#allocation9 + $0x1a4] sm:$0xf] }
 0x48e   :  { %v5972_v26 = vpop.f32.mrf.mxu0  ;;  %v10026_v9 = vor.u32 %v10951_v19, %v10023_v4 }
 0x48f   :  { %v10039_v26 = vld [vmem:[#allocation9 + $0x1c8] sm:$0xf0] }
 0x490   :  { %v5996_v12 = vpop.f32.mrf.mxu2  ;;  %v5985_v40 = vpop.f32.mrf.mxu1  ;;  %6508 = vmatpush.bf16.msra.mxu3 %v10014_v25  ;;  %v10965_v25 = vld [vmem:[#allocation12 + $0x10] sm:$0xff] }
 0x491   :  { %v11575_v47 = vadd.f32 %v5996_v12, %v5984_v27  ;;  %6547 = vmatpush.bf16.msrb.mxu2 %v9954_v29  ;;  %v10066_v27 = vor.u32 %v10961_v23, %v10063_v24  ;;  %v10047_v12 = vld [vmem:[#allocation9 + $0x1d8] sm:$0xf0]  ;;  %v10042_v40 = vor.u32 %v10955_v8, %v10039_v26  ;;  %v10949_v29 = vld [vmem:[#allocation9 + $0x194] sm:$0xf]  ;;  %v10976_v23 = vld [vmem:[#allocation12 + $0x68] sm:$0xff] }
 0x492   :  { %v10050_v32 = vor.u32 %v10957_v31, %v10047_v12  ;;  %v10018_v34 = vor.u32 %v10949_v29, %v10015_v15  ;;  %v10963_v24 = vld [vmem:[#allocation12] sm:$0xff] }
 0x493   :  { %v10995_v15 = vld [vmem:[#allocation13] ss:$0 sm:$0xff] }
 0x494   :  { %6509 = vmatpush.bf16.msra.mxu3 %v10006_v2  ;;  %v10975_v2 = vld [vmem:[#allocation12 + $0x60] sm:$0xff] }
 0x495   :  { %6548 = vmatpush.bf16.msrb.mxu2 %v9946_v55  ;;  %v10010_v55 = vor.u32 %v10947_v43, %v10007_v56 }
 0x498   :  { %v5998_v54 = vpop.f32.mrf.mxu2  ;;  %6554 = vmatpush.bf16.msrb.mxu3 %v10066_v27  ;;  %v10974_v27 = vld [vmem:[#allocation12 + $0x58] sm:$0xff] }
 0x49c   :  { %6555 = vmatpush.bf16.msrb.mxu3 %v10058_v28  ;;  %v10971_v28 = vld [vmem:[#allocation12 + $0x40] sm:$0xff] }
 0x49f   :  { %v5957_v0 = vpop.f32.mrf.mxu3 }
 0x4a0   :  { %v5958_v3 = vadd.f32 %v5957_v0, %v5945_v30  ;;  %6556 = vmatpush.bf16.msrb.mxu3 %v10050_v32 }
 0x4a2   :  { %v6067_v48 = vmax.f32 %v5958_v3, 0.0 }
 0x4a4   :  { %v6071_v51 = vpack.c.bf16 %v6067_v48, %v6067_v48  ;;  %6557 = vmatpush.bf16.msrb.mxu3 %v10042_v40 }
 0x4a6   :  { %v11580_v58 = vpop.f32.mrf.mxu0  ;;  %6497 = vmatmul.bf16.vlgmr.msra.gmra.mxu2 %v6071_v51 }
 0x4a7   :  { %v5959_v46 = vpop.f32.mrf.mxu3 }
 0x4a8   :  { %v11582_v60 = vpop.f32.mrf.mxu1  ;;  %6558 = vmatpush.bf16.msrb.mxu3 %v10034_v36  ;;  %v10967_v46 = vld [vmem:[#allocation12 + $0x20] sm:$0xff] }
 0x4ac   :  { %6559 = vmatpush.bf16.msrb.mxu3 %v10026_v9 }
 0x4ae   :  { %v6024_v10 = vpop.f32.mrf.mxu0 }
 0x4b0   :  { %v6048_v7 = vpop.f32.mrf.mxu2  ;;  %v6037_v16 = vpop.f32.mrf.mxu1  ;;  %6560 = vmatpush.bf16.msrb.mxu3 %v10018_v34 }
 0x4b1   :  { %v10969_v16 = vld [vmem:[#allocation12 + $0x30] sm:$0xff] }
 0x4b4   :  { %6561 = vmatpush.bf16.msrb.mxu3 %v10010_v55 }
 0x4b6   :  { %6549 = vmatmul.bf16.vlgmr.msrb.gmra.mxu2 %v6071_v51  ;;  %v10978_v51 = vld [vmem:[#allocation12 + $0x78] sm:$0xff] }
 0x4b7   :  { %6716 = vmatpush.bf16.msra.mxu1 %v10978_v51 }
 0x4b8   :  { %v6050_v11 = vpop.f32.mrf.mxu2 }
 0x4b9   :  { %v10964_v11 = vld [vmem:[#allocation12 + $0x8] sm:$0xff] }
 0x4bb   :  { %6717 = vmatpush.bf16.msra.mxu1 %v10977_v17 }
 0x4bf   :  { %6718 = vmatpush.bf16.msra.mxu1 %v10976_v23 }
 0x4c1   :  { %v6009_v14 = vpop.f32.mrf.mxu3 }
 0x4c2   :  { %v6010_v18 = vadd.f32 %v6009_v14, %v11575_v47 }
 0x4c3   :  { %6719 = vmatpush.bf16.msra.mxu1 %v10975_v2 }
 0x4c4   :  { %v6023_v1 = vadd.f32 %v11580_v58, %v6010_v18 }
 0x4c6   :  { %v6472_v54 = vpop.f32.mrf.mxu0  ;;  %v6036_v37 = vadd.f32 %v11582_v60, %v6023_v1 }
 0x4c7   :  { %v6473_v3 = vadd.f32 %v6472_v54, %v6139_v39  ;;  %6720 = vmatpush.bf16.msra.mxu1 %v10974_v27 }
 0x4c8   :  { %v6049_v49 = vadd.f32 %v6048_v7, %v6036_v37  ;;  %v10970_v7 = vld [vmem:[#allocation12 + $0x38] sm:$0xff] }
 0x4c9   :  { %v6011_v42 = vpop.f32.mrf.mxu3  ;;  %6703 = vmatpush.bf16.msra.mxu0 %v10970_v7 }
 0x4cb   :  { %6721 = vmatpush.bf16.msra.mxu1 %v10973_v59 }
 0x4cd   :  { %6704 = vmatpush.bf16.msra.mxu0 %v10969_v16 }
 0x4ce   :  { %v6474_v13 = vpop.f32.mrf.mxu0 }
 0x4cf   :  { %6722 = vmatpush.bf16.msra.mxu1 %v10972_v63 }
 0x4d1   :  { %6705 = vmatpush.bf16.msra.mxu0 %v10968_v53 }
 0x4d3   :  { %6723 = vmatpush.bf16.msra.mxu1 %v10971_v28 }
 0x4d5   :  { %6706 = vmatpush.bf16.msra.mxu0 %v10967_v46 }
 0x4d9   :  { %6707 = vmatpush.bf16.msra.mxu0 %v10966_v20 }
 0x4dd   :  { %6708 = vmatpush.bf16.msra.mxu0 %v10965_v25 }
 0x4e1   :  { %v6061_v57 = vpop.f32.mrf.mxu3  ;;  %6709 = vmatpush.bf16.msra.mxu0 %v10964_v11 }
 0x4e2   :  { %v6062_v38 = vadd.f32 %v6061_v57, %v6049_v49 }
 0x4e3   :  { %v6485_v48 = vpop.f32.mrf.mxu1 }
 0x4e4   :  { %v6068_v41 = vmax.f32 %v6062_v38, 0.0  ;;  %v6486_v47 = vadd.f32 %v6485_v48, %v6473_v3 }
 0x4e5   :  { %6710 = vmatpush.bf16.msra.mxu0 %v10963_v24 }
 0x4e6   :  { %v6524_v50 = vpop.f32.mrf.mxu0  ;;  %v6072_v30 = vpack.c.bf16 %v6068_v41, %v6068_v41 }
 0x4e7   :  { %v6525_v58 = vadd.f32 %v6524_v50, %v6140_v45 }
 0x4e8   :  { %6510 = vmatmul.bf16.vlgmr.msra.gmra.mxu3 %v6072_v30 }
 0x4e9   :  { %v6063_v0 = vpop.f32.mrf.mxu3 }
 0x4eb   :  { %v6487_v5 = vpop.f32.mrf.mxu1 }
 0x4ee   :  { %v6526_v33 = vpop.f32.mrf.mxu0 }
 0x4f3   :  { %v6537_v10 = vpop.f32.mrf.mxu1 }
 0x4f4   :  { %v6538_v60 = vadd.f32 %v6537_v10, %v6525_v58 }
 0x4f8   :  { %6562 = vmatmul.bf16.vlgmr.msrb.gmra.mxu3 %v6072_v30 }
 0x4fb   :  { %v6539_v44 = vpop.f32.mrf.mxu1 }
 0x529   :  { %v6498_v61 = vpop.f32.mrf.mxu2 }
 0x52a   :  { %v6499_v31 = vadd.f32 %v6498_v61, %v6486_v47 }
 0x531   :  { %v6500_v6 = vpop.f32.mrf.mxu2 }
 0x539   :  { %v6550_v21 = vpop.f32.mrf.mxu2 }
 0x53a   :  { %v6551_v40 = vadd.f32 %v6550_v21, %v6538_v60 }
 0x541   :  { %v6552_v22 = vpop.f32.mrf.mxu2 }
 0x56b   :  { %v6511_v12 = vpop.f32.mrf.mxu3 }
 0x56c   :  { %v6512_v32 = vadd.f32 %v6511_v12, %v6499_v31 }
 0x56e   :  { %v6567_v8 = vmax.f32 %v6512_v32, 0.0 }
 0x570   :  { %v6569_v26 = vpack.c.bf16 %v6567_v8, %v6567_v8 }
 0x572   :  { %6711 = vmatmul.bf16.vlgmr.msra.gmra.mxu0 %v6569_v26 }
 0x573   :  { %v6513_v14 = vpop.f32.mrf.mxu3 }
 0x57b   :  { %v6563_v52 = vpop.f32.mrf.mxu3 }
 0x57c   :  { %v6564_v35 = vadd.f32 %v6563_v52, %v6551_v40 }
 0x57e   :  { %v6568_v36 = vmax.f32 %v6564_v35, 0.0 }
 0x580   :  { %v6570_v19 = vpack.c.bf16 %v6568_v36, %v6568_v36 }
 0x582   :  { %6724 = vmatmul.bf16.vlgmr.msra.gmra.mxu1 %v6570_v19 }
 0x583   :  { %v6565_v4 = vpop.f32.mrf.mxu3 }
 0x5ef   :  { %v6712_v9 = vpop.f32.mrf.mxu0 }
 0x5f0   :  { %v6713_v42 = vadd.f32 %v10995_v15, %v6712_v9 }
 0x5f7   :  { %v6714_v29 = vpop.f32.mrf.mxu0 }
 0x5ff   :  { %v6725_v54 = vpop.f32.mrf.mxu1 }
 0x600   :  { %v6726_v34 = vadd.f32 %v6725_v54, %v6713_v42 }
 0x602   :  { %6729 = vst [vmem:[%s11600_s9] sm:$0xff] %v6726_v34 }
 0x607   :  { %v6727_v43 = vpop.f32.mrf.mxu1 }
 0x608   :  { %6734 = vsyncpa [#allocation3], 1 }
 0x609   :  { %6735 = vsyncpa [#allocation5], 1 }
 0x60a   :  { %6736 = vsyncpa [#allocation8], 1 }
 0x60b   :  { %6737 = vsyncpa [#allocation11], 1 }
 0x60c   :  { %6738 = vsyncpa [#allocation14], 1 }

</bundles_post_ra>
